<compile_context>
chip_gen: v5e
topology: v5e:2x2
jax: 0.10.0
libtpu: 0.0.40
codegen_flags: <defaults>
</compile_context>

<pallas_src>
import functools
import math

import jax
import jax.numpy as jnp
from jax import lax
from jax.experimental import pallas as pl
from jax.experimental.pallas import tpu as pltpu


# ----------------------------- tiling helpers ------------------------------

_ROW_TILES = (512, 256, 128, 64, 32, 16, 8)       # sublane axis (multiples of 8)
_LANE_TILES = (512, 256, 128)                      # lane axis (multiples of 128)
_ATTN_ROW_TILES = (256, 128, 64, 32, 16, 8)        # flash q / kv tiles


def _pick_tile(dim, prefs):
    """Largest preferred tile that divides `dim`; falls back to the full dim (toy shapes)."""
    for t in prefs:
        if dim % t == 0:
            return t
    return dim


# ----------------------------- Pallas kernels ------------------------------

def _matmul_kernel(x_ref, w_ref, b_ref, o_ref, acc_ref, *, activation):
    """Tiled matmul, bf16 MXU operands + f32 accumulator; bias (+ReLU) on finalize."""
    @pl.when(pl.program_id(2) == 0)
    def _():
        acc_ref[...] = jnp.zeros_like(acc_ref)

    acc_ref[...] += jnp.dot(x_ref[...].astype(jnp.bfloat16),
                            w_ref[...].astype(jnp.bfloat16),
                            preferred_element_type=jnp.float32)

    @pl.when(pl.program_id(2) == pl.num_programs(2) - 1)
    def _():
        out = acc_ref[...] + b_ref[...]
        if activation == "relu":
            out = jnp.maximum(out, 0.0)
        o_ref[...] = out.astype(o_ref.dtype)


def linear(x, w, b, activation=None):
    """x: (M, K) @ w: (K, N) + b: (N,) -> (M, N)."""
    M, K = x.shape
    N = w.shape[1]
    tm = _pick_tile(M, _ROW_TILES)
    tn = _pick_tile(N, _LANE_TILES)
    tk = _pick_tile(K, _LANE_TILES)
    grid = (M // tm, N // tn, K // tk)
    return pl.pallas_call(
        functools.partial(_matmul_kernel, activation=activation),
        out_shape=jax.ShapeDtypeStruct((M, N), x.dtype),
        grid=grid,
        in_specs=[
            pl.BlockSpec((tm, tk), lambda i, j, k: (i, k)),
            pl.BlockSpec((tk, tn), lambda i, j, k: (k, j)),
            pl.BlockSpec((1, tn), lambda i, j, k: (0, j)),
        ],
        out_specs=pl.BlockSpec((tm, tn), lambda i, j, k: (i, j)),
        scratch_shapes=[pltpu.VMEM((tm, tn), jnp.float32)],
        compiler_params=pltpu.CompilerParams(
            dimension_semantics=("parallel", "parallel", "arbitrary")),
    )(x, w, b.reshape(1, N))


def _split_matmul_kernel(x_ref, w_ref, b_ref, o_ref, acc_ref):
    """Matmul against stacked weights (n_split, K, D); output lands at (split, m-tile, :)."""
    @pl.when(pl.program_id(2) == 0)
    def _():
        acc_ref[...] = jnp.zeros_like(acc_ref)

    acc_ref[...] += jnp.dot(x_ref[...].astype(jnp.bfloat16),
                            w_ref[0].astype(jnp.bfloat16),
                            preferred_element_type=jnp.float32)

    @pl.when(pl.program_id(2) == pl.num_programs(2) - 1)
    def _():
        o_ref[0] = (acc_ref[...] + b_ref[0]).astype(o_ref.dtype)


def split_linear(x, w, b):
    """x: (M, K), w: (n_split, K, D), b: (n_split, 1, D) -> (n_split, M, D).

    Q/K/V (or K/V) land on the leading axis directly via the output BlockSpec, so the
    attention kernel can pick them with its index_map — no HBM slice copies."""
    M, K = x.shape
    n_split, _, D = w.shape
    tm = _pick_tile(M, _ROW_TILES)
    tk = _pick_tile(K, _LANE_TILES)
    grid = (M // tm, n_split, K // tk)
    return pl.pallas_call(
        _split_matmul_kernel,
        out_shape=jax.ShapeDtypeStruct((n_split, M, D), x.dtype),
        grid=grid,
        in_specs=[
            pl.BlockSpec((tm, tk), lambda i, j, k: (i, k)),
            pl.BlockSpec((1, tk, D), lambda i, j, k: (j, k, 0)),
            pl.BlockSpec((1, 1, D), lambda i, j, k: (j, 0, 0)),
        ],
        out_specs=pl.BlockSpec((1, tm, D), lambda i, j, k: (j, i, 0)),
        scratch_shapes=[pltpu.VMEM((tm, D), jnp.float32)],
        compiler_params=pltpu.CompilerParams(
            dimension_semantics=("parallel", "parallel", "arbitrary")),
    )(x, w, b)


def _matmul_add_ln_kernel(x_ref, w_ref, b_ref, r_ref, g_ref, bt_ref, o_ref, acc_ref, *, eps):
    """(x @ w + b) then fused residual-add + LayerNorm in the finalize branch."""
    @pl.when(pl.program_id(1) == 0)
    def _():
        acc_ref[...] = jnp.zeros_like(acc_ref)

    acc_ref[...] += jnp.dot(x_ref[...].astype(jnp.bfloat16),
                            w_ref[...].astype(jnp.bfloat16),
                            preferred_element_type=jnp.float32)

    @pl.when(pl.program_id(1) == pl.num_programs(1) - 1)
    def _():
        y = acc_ref[...] + b_ref[...] + r_ref[...]
        mu = jnp.mean(y, axis=-1, keepdims=True)
        c = y - mu
        var = jnp.mean(c * c, axis=-1, keepdims=True)
        o_ref[...] = ((c * lax.rsqrt(var + eps)) * g_ref[...] + bt_ref[...]).astype(o_ref.dtype)


def linear_add_ln(x, w, b, residual, gamma, beta, eps=1e-5):
    """LN((x @ w + b) + residual). N (= d_model) is a single lane-dense tile."""
    M, K = x.shape
    N = w.shape[1]
    tm = _pick_tile(M, _ROW_TILES)
    tk = _pick_tile(K, _LANE_TILES)
    grid = (M // tm, K // tk)
    return pl.pallas_call(
        functools.partial(_matmul_add_ln_kernel, eps=eps),
        out_shape=jax.ShapeDtypeStruct((M, N), x.dtype),
        grid=grid,
        in_specs=[
            pl.BlockSpec((tm, tk), lambda i, k: (i, k)),
            pl.BlockSpec((tk, N), lambda i, k: (k, 0)),
            pl.BlockSpec((1, N), lambda i, k: (0, 0)),
            pl.BlockSpec((tm, N), lambda i, k: (i, 0)),
            pl.BlockSpec((1, N), lambda i, k: (0, 0)),
            pl.BlockSpec((1, N), lambda i, k: (0, 0)),
        ],
        out_specs=pl.BlockSpec((tm, N), lambda i, k: (i, 0)),
        scratch_shapes=[pltpu.VMEM((tm, N), jnp.float32)],
        compiler_params=pltpu.CompilerParams(
            dimension_semantics=("parallel", "arbitrary")),
    )(x, w, b.reshape(1, N), residual, gamma.reshape(1, N), beta.reshape(1, N))


def _flash_attn_kernel(q_ref, k_ref, v_ref, o_ref, m_ref, l_ref, acc_ref, *,
                       num_heads, scale):
    """Flash-style online-softmax attention over kv tiles; heads packed in the lane axis.

    Scratch m/l are replicated per-head across each head's dh lanes so the finalize is a
    single lane-dense store (no concatenate, no repeat)."""
    ki = pl.program_id(2)

    @pl.when(ki == 0)
    def _():
        m_ref[...] = jnp.full_like(m_ref, -jnp.inf)
        l_ref[...] = jnp.zeros_like(l_ref)
        acc_ref[...] = jnp.zeros_like(acc_ref)

    q = q_ref[0, 0]                      # (tq, D)
    k = k_ref[0, 0]                      # (tk, D)
    v = v_ref[0, 0]                      # (tk, D)
    tq, D = q.shape
    dh = D // num_heads

    qb = q.astype(jnp.bfloat16)
    kb = k.astype(jnp.bfloat16)
    vb = v.astype(jnp.bfloat16)

    # TODO(synk): boolean attention masks (src_mask / tgt_mask incl. causal) not plumbed;
    # the reference forward() is exercised with the default mask=None path.
    for h in range(num_heads):
        lo = h * dh
        s = lax.dot_general(qb[:, lo:lo + dh], kb[:, lo:lo + dh],
                            (((1,), (1,)), ((), ())),
                            preferred_element_type=jnp.float32) * scale      # (tq, tk)
        m_prev = m_ref[:, lo:lo + 1]                                          # (tq, 1)
        l_prev = l_ref[:, lo:lo + 1]                                          # (tq, 1)
        m_new = jnp.maximum(m_prev, jnp.max(s, axis=-1, keepdims=True))
        alpha = jnp.exp(m_prev - m_new)
        p = jnp.exp(s - m_new)                                                # (tq, tk)
        l_new = alpha * l_prev + jnp.sum(p, axis=-1, keepdims=True)
        pv = jnp.dot(p.astype(jnp.bfloat16), vb[:, lo:lo + dh],
                     preferred_element_type=jnp.float32)                      # (tq, dh)
        acc_ref[:, lo:lo + dh] = alpha * acc_ref[:, lo:lo + dh] + pv
        m_ref[:, lo:lo + dh] = jnp.broadcast_to(m_new, (tq, dh))
        l_ref[:, lo:lo + dh] = jnp.broadcast_to(l_new, (tq, dh))

    @pl.when(ki == pl.num_programs(2) - 1)
    def _():
        # Exact division (no approx reciprocal) to stay close to the reference softmax.
        o_ref[0] = (acc_ref[...] / l_ref[...]).astype(o_ref.dtype)


def attention(q_arr, kv_arr, *, q_index, k_index, v_index, num_heads, scale):
    """q_arr: (Pq, B, Sq, D), kv_arr: (Pkv, B, Skv, D) -> (B, Sq, D).

    q/k/v are picked from the stacked projection output purely via index_maps."""
    _, B, Sq, D = q_arr.shape
    Skv = kv_arr.shape[2]
    tq = _pick_tile(Sq, _ATTN_ROW_TILES)
    tk = _pick_tile(Skv, _ATTN_ROW_TILES)
    grid = (B, Sq // tq, Skv // tk)
    return pl.pallas_call(
        functools.partial(_flash_attn_kernel, num_heads=num_heads, scale=scale),
        out_shape=jax.ShapeDtypeStruct((B, Sq, D), q_arr.dtype),
        grid=grid,
        in_specs=[
            pl.BlockSpec((1, 1, tq, D), lambda b, qi, ki: (q_index, b, qi, 0)),
            pl.BlockSpec((1, 1, tk, D), lambda b, qi, ki: (k_index, b, ki, 0)),
            pl.BlockSpec((1, 1, tk, D), lambda b, qi, ki: (v_index, b, ki, 0)),
        ],
        out_specs=pl.BlockSpec((1, tq, D), lambda b, qi, ki: (b, qi, 0)),
        scratch_shapes=[pltpu.VMEM((tq, D), jnp.float32),
                        pltpu.VMEM((tq, D), jnp.float32),
                        pltpu.VMEM((tq, D), jnp.float32)],
        compiler_params=pltpu.CompilerParams(
            dimension_semantics=("parallel", "parallel", "arbitrary")),
    )(q_arr, kv_arr, kv_arr)


# ----------------------------- model definition ----------------------------

def _sinusoidal_pe(max_seq_len, d_model):
    pos = jnp.arange(max_seq_len, dtype=jnp.float32)[:, None]
    i = jnp.arange(d_model, dtype=jnp.float32)[None, :]
    angle = pos / jnp.power(10000.0, (2.0 * jnp.floor(i / 2.0)) / d_model)
    pe = jnp.where((jnp.arange(d_model) % 2) == 0, jnp.sin(angle), jnp.cos(angle))
    return pe.astype(jnp.float32)


def _init_linear(key, fan_in, fan_out):
    kw, kb = jax.random.split(key)
    lim = 1.0 / math.sqrt(fan_in)
    w = jax.random.uniform(kw, (fan_in, fan_out), jnp.float32, -lim, lim)
    b = jax.random.uniform(kb, (fan_out,), jnp.float32, -lim, lim)
    return w, b


def _init_mha(key, d_model, fuse_qkv):
    ks = jax.random.split(key, 4)
    wq, bq = _init_linear(ks[0], d_model, d_model)
    wk, bk = _init_linear(ks[1], d_model, d_model)
    wv, bv = _init_linear(ks[2], d_model, d_model)
    wo, bo = _init_linear(ks[3], d_model, d_model)
    if fuse_qkv:
        # Self-attention: stacked (3, D, D) projection -> split_linear output (3, M, D).
        return {"wqkv": jnp.stack([wq, wk, wv], axis=0),
                "bqkv": jnp.stack([bq, bk, bv], axis=0)[:, None, :],
                "wo": wo, "bo": bo}
    # Cross-attention: Q separate, K|V stacked (2, D, D).
    return {"wq": wq, "bq": bq,
            "wkv": jnp.stack([wk, wv], axis=0),
            "bkv": jnp.stack([bk, bv], axis=0)[:, None, :],
            "wo": wo, "bo": bo}


def _init_enc_layer(key, d_model, d_ff):
    k1, k2, k3 = jax.random.split(key, 3)
    p = {"self_attn": _init_mha(k1, d_model, fuse_qkv=True)}
    p["w1"], p["b1"] = _init_linear(k2, d_model, d_ff)
    p["w2"], p["b2"] = _init_linear(k3, d_ff, d_model)
    p["ln1_g"] = jnp.ones((d_model,), jnp.float32)
    p["ln1_b"] = jnp.zeros((d_model,), jnp.float32)
    p["ln2_g"] = jnp.ones((d_model,), jnp.float32)
    p["ln2_b"] = jnp.zeros((d_model,), jnp.float32)
    return p


def _init_dec_layer(key, d_model, d_ff):
    k1, k2, k3, k4 = jax.random.split(key, 4)
    p = {"self_attn": _init_mha(k1, d_model, fuse_qkv=True),
         "cross_attn": _init_mha(k2, d_model, fuse_qkv=False)}
    p["w1"], p["b1"] = _init_linear(k3, d_model, d_ff)
    p["w2"], p["b2"] = _init_linear(k4, d_ff, d_model)
    for n in ("ln1", "ln2", "ln3"):
        p[n + "_g"] = jnp.ones((d_model,), jnp.float32)
        p[n + "_b"] = jnp.zeros((d_model,), jnp.float32)
    return p


def init_transformer(key, vocab_size, d_model, num_heads, num_layers, d_ff, max_seq_len):
    del num_heads  # static config, not stored in the (traced) param tree
    keys = jax.random.split(key, 2 + 2 * num_layers)
    params = {
        "emb": jax.random.normal(keys[0], (vocab_size, d_model), jnp.float32) * 0.02,
        "pe": _sinusoidal_pe(max_seq_len, d_model),
        "enc_layers": [_init_enc_layer(keys[2 + i], d_model, d_ff) for i in range(num_layers)],
        "dec_layers": [_init_dec_layer(keys[2 + num_layers + i], d_model, d_ff)
                       for i in range(num_layers)],
    }
    params["fc_w"], params["fc_b"] = _init_linear(keys[1], d_model, vocab_size)
    return params


def _encoder_layer(x, p, B, S, H, D):
    """x: (B*S, D)."""
    sa = p["self_attn"]
    dh = D // H
    qkv = split_linear(x, sa["wqkv"], sa["bqkv"]).reshape(3, B, S, D)     # free reshape
    attn = attention(qkv, qkv, q_index=0, k_index=1, v_index=2,
                     num_heads=H, scale=1.0 / math.sqrt(dh))
    # out-projection + residual + LN fused
    x = linear_add_ln(attn.reshape(B * S, D), sa["wo"], sa["bo"],
                      x, p["ln1_g"], p["ln1_b"])
    h = linear(x, p["w1"], p["b1"], activation="relu")
    # FFN second matmul + residual + LN fused (F axis tiled via K-reduction grid)
    x = linear_add_ln(h, p["w2"], p["b2"], x, p["ln2_g"], p["ln2_b"])
    return x


def _decoder_layer(x, enc, p, B, S_t, S_s, H, D):
    sa = p["self_attn"]
    ca = p["cross_attn"]
    dh = D // H

    qkv = split_linear(x, sa["wqkv"], sa["bqkv"]).reshape(3, B, S_t, D)
    attn = attention(qkv, qkv, q_index=0, k_index=1, v_index=2,
                     num_heads=H, scale=1.0 / math.sqrt(dh))
    x = linear_add_ln(attn.reshape(B * S_t, D), sa["wo"], sa["bo"],
                      x, p["ln1_g"], p["ln1_b"])

    q = linear(x, ca["wq"], ca["bq"]).reshape(1, B, S_t, D)
    kv = split_linear(enc, ca["wkv"], ca["bkv"]).reshape(2, B, S_s, D)
    cross = attention(q, kv, q_index=0, k_index=0, v_index=1,
                      num_heads=H, scale=1.0 / math.sqrt(dh))
    x = linear_add_ln(cross.reshape(B * S_t, D), ca["wo"], ca["bo"],
                      x, p["ln2_g"], p["ln2_b"])

    h = linear(x, p["w1"], p["b1"], activation="relu")
    x = linear_add_ln(h, p["w2"], p["b2"], x, p["ln3_g"], p["ln3_b"])
    return x


def transformer_forward(params, src, tgt, *, num_heads):
    """src, tgt: (B, S) int32 token ids -> logits (B, S_tgt, vocab_size)."""
    D = params["emb"].shape[1]
    V = params["fc_w"].shape[1]
    H = num_heads
    B, S_s = src.shape
    _, S_t = tgt.shape
    scale = math.sqrt(D)

    # Preprocessor: embedding * sqrt(d_model) + sinusoidal positional encoding (dropout = id).
    src_emb = (params["emb"][src] * scale + params["pe"][:S_s][None, :, :]).reshape(B * S_s, D)
    tgt_emb = (params["emb"][tgt] * scale + params["pe"][:S_t][None, :, :]).reshape(B * S_t, D)

    enc = src_emb
    for lp in params["enc_layers"]:
        enc = _encoder_layer(enc, lp, B, S_s, H, D)

    dec = tgt_emb
    for lp in params["dec_layers"]:
        dec = _decoder_layer(dec, enc, lp, B, S_t, S_s, H, D)

    logits = linear(dec, params["fc_w"], params["fc_b"])
    return logits.reshape(B, S_t, V)


# ----------------------------------- main -----------------------------------

if __name__ == "__main__":
    vocab_size = 64
    d_model = 32
    num_heads = 4
    num_layers = 2
    d_ff = 64
    max_seq_len = 16

    batch = 2
    seq = 8

    key = jax.random.PRNGKey(0)
    kp, ks, kt = jax.random.split(key, 3)

    params = init_transformer(kp, vocab_size, d_model, num_heads, num_layers, d_ff, max_seq_len)
    src = jax.random.randint(ks, (batch, seq), 0, vocab_size, dtype=jnp.int32)
    tgt = jax.random.randint(kt, (batch, seq), 0, vocab_size, dtype=jnp.int32)

    forward = jax.jit(functools.partial(transformer_forward, num_heads=num_heads))
    out = forward(params, src, tgt)
    out = jax.block_until_ready(out)

    assert out.shape == (batch, seq, vocab_size), out.shape
    assert jnp.all(jnp.isfinite(out))
    print("KERNEL_OK")
</pallas_src>

<mosaic_0001>
module attributes {stable_mosaic.version = 11 : i64} {
  func.func @_flash_attn_kernel(%arg0: i32, %arg1: i32, %arg2: i32, %arg3: memref<1x1x8x32xf32, #tpu.memory_space<vmem>>, %arg4: memref<1x1x8x32xf32, #tpu.memory_space<vmem>>, %arg5: memref<1x1x8x32xf32, #tpu.memory_space<vmem>>, %arg6: memref<1x8x32xf32, #tpu.memory_space<vmem>>, %arg7: memref<8x32xf32, #tpu.memory_space<vmem>>, %arg8: memref<8x32xf32, #tpu.memory_space<vmem>>, %arg9: memref<8x32xf32, #tpu.memory_space<vmem>>) attributes {dimension_semantics = [#tpu.dimension_semantics<parallel>, #tpu.dimension_semantics<parallel>, #tpu.dimension_semantics<arbitrary>], iteration_bounds = array<i64: 2, 1, 1>, scalar_prefetch = 0 : i64, scratch_operands = 3 : i64, tpu.core_type = #tpu.core_type<tc>, window_params = [{transform_indices = @transform_0, window_bounds = array<i64: 1, 1, 8, 32>}, {transform_indices = @transform_1, window_bounds = array<i64: 1, 1, 8, 32>}, {transform_indices = @transform_2, window_bounds = array<i64: 1, 1, 8, 32>}, {transform_indices = @transform_3, window_bounds = array<i64: 1, 8, 32>}]} {
    %c0_i32 = arith.constant 0 : i32
    %0 = arith.cmpi eq, %arg2, %c0_i32 : i32
    %1 = arith.extui %0 : i1 to i32
    %c0_i32_0 = arith.constant 0 : i32
    %2 = arith.cmpi ne, %1, %c0_i32_0 : i32
    scf.if %2 {
      %cst_78 = arith.constant 0xFF800000 : f32
      %147 = vector.broadcast %cst_78 : f32 to vector<8x32xf32>
      %c0_79 = arith.constant 0 : index
      %c0_80 = arith.constant 0 : index
      %148 = vector.load %arg7[%c0_79, %c0_80] : memref<8x32xf32, #tpu.memory_space<vmem>>, vector<8x32xf32>
      tpu.vector_store %arg7[%c0_79, %c0_80], %147 {strides = array<i32>} : memref<8x32xf32, #tpu.memory_space<vmem>>, vector<8x32xf32>,
      %cst_81 = arith.constant 0.000000e+00 : f32
      %149 = vector.broadcast %cst_81 : f32 to vector<8x32xf32>
      %c0_82 = arith.constant 0 : index
      %c0_83 = arith.constant 0 : index
      %150 = vector.load %arg8[%c0_82, %c0_83] : memref<8x32xf32, #tpu.memory_space<vmem>>, vector<8x32xf32>
      tpu.vector_store %arg8[%c0_82, %c0_83], %149 {strides = array<i32>} : memref<8x32xf32, #tpu.memory_space<vmem>>, vector<8x32xf32>,
      %cst_84 = arith.constant 0.000000e+00 : f32
      %151 = vector.broadcast %cst_84 : f32 to vector<8x32xf32>
      %c0_85 = arith.constant 0 : index
      %c0_86 = arith.constant 0 : index
      %152 = vector.load %arg9[%c0_85, %c0_86] : memref<8x32xf32, #tpu.memory_space<vmem>>, vector<8x32xf32>
      tpu.vector_store %arg9[%c0_85, %c0_86], %151 {strides = array<i32>} : memref<8x32xf32, #tpu.memory_space<vmem>>, vector<8x32xf32>,
    } else {
    }
    %c0 = arith.constant 0 : index
    %c0_1 = arith.constant 0 : index
    %c0_2 = arith.constant 0 : index
    %c0_3 = arith.constant 0 : index
    %3 = vector.load %arg3[%c0, %c0_1, %c0_2, %c0_3] : memref<1x1x8x32xf32, #tpu.memory_space<vmem>>, vector<1x1x8x32xf32>
    %4 = vector.shape_cast %3 : vector<1x1x8x32xf32> to vector<8x32xf32>
    %c0_4 = arith.constant 0 : index
    %c0_5 = arith.constant 0 : index
    %c0_6 = arith.constant 0 : index
    %c0_7 = arith.constant 0 : index
    %5 = vector.load %arg4[%c0_4, %c0_5, %c0_6, %c0_7] : memref<1x1x8x32xf32, #tpu.memory_space<vmem>>, vector<1x1x8x32xf32>
    %6 = vector.shape_cast %5 : vector<1x1x8x32xf32> to vector<8x32xf32>
    %c0_8 = arith.constant 0 : index
    %c0_9 = arith.constant 0 : index
    %c0_10 = arith.constant 0 : index
    %c0_11 = arith.constant 0 : index
    %7 = vector.load %arg5[%c0_8, %c0_9, %c0_10, %c0_11] : memref<1x1x8x32xf32, #tpu.memory_space<vmem>>, vector<1x1x8x32xf32>
    %8 = vector.shape_cast %7 : vector<1x1x8x32xf32> to vector<8x32xf32>
    %9 = arith.truncf %4 : vector<8x32xf32> to vector<8x32xbf16>
    %10 = arith.truncf %6 : vector<8x32xf32> to vector<8x32xbf16>
    %11 = arith.truncf %8 : vector<8x32xf32> to vector<8x32xbf16>
    %12 = vector.extract_strided_slice %9 {offsets = [0, 0], sizes = [8, 8], strides = [1, 1]} : vector<8x32xbf16> to vector<8x8xbf16>
    %13 = vector.extract_strided_slice %10 {offsets = [0, 0], sizes = [8, 8], strides = [1, 1]} : vector<8x32xbf16> to vector<8x8xbf16>
    %cst = arith.constant dense<0.000000e+00> : vector<8x8xf32>
    %14 = tpu.matmul %12, %13, %cst {dimension_numbers = #tpu.dot_dimension_numbers<[1], [1], [0], [0], [0, 0, 1, 0], [], []>} : vector<8x8xbf16>, vector<8x8xbf16>, vector<8x8xf32> -> vector<8x8xf32>
    %cst_12 = arith.constant 0.353553385 : f32
    %15 = vector.broadcast %cst_12 : f32 to vector<8x8xf32>
    %16 = arith.mulf %14, %15 : vector<8x8xf32>
    %c0_13 = arith.constant 0 : index
    %c0_14 = arith.constant 0 : index
    %17 = vector.load %arg7[%c0_13, %c0_14] : memref<8x32xf32, #tpu.memory_space<vmem>>, vector<8x1xf32>
    %c0_15 = arith.constant 0 : index
    %c0_16 = arith.constant 0 : index
    %18 = vector.load %arg8[%c0_15, %c0_16] : memref<8x32xf32, #tpu.memory_space<vmem>>, vector<8x1xf32>
    %cst_17 = arith.constant dense<0xFF800000> : vector<8xf32>
    %19 = vector.multi_reduction <maximumf>, %16, %cst_17 [1] : vector<8x8xf32> to vector<8xf32>
    %20 = vector.shape_cast %19 : vector<8xf32> to vector<8x1xf32>
    %21 = arith.maximumf %17, %20 : vector<8x1xf32>
    %22 = arith.subf %17, %21 : vector<8x1xf32>
    %23 = math.exp %22 : vector<8x1xf32>
    %24 = vector.broadcast %21 : vector<8x1xf32> to vector<8x8xf32>
    %25 = arith.subf %16, %24 : vector<8x8xf32>
    %26 = math.exp %25 : vector<8x8xf32>
    %27 = arith.mulf %23, %18 : vector<8x1xf32>
    %cst_18 = arith.constant dense<0.000000e+00> : vector<8xf32>
    %28 = vector.multi_reduction <add>, %26, %cst_18 [1] : vector<8x8xf32> to vector<8xf32>
    %29 = vector.shape_cast %28 : vector<8xf32> to vector<8x1xf32>
    %30 = arith.addf %27, %29 : vector<8x1xf32>
    %31 = arith.truncf %26 : vector<8x8xf32> to vector<8x8xbf16>
    %32 = vector.extract_strided_slice %11 {offsets = [0, 0], sizes = [8, 8], strides = [1, 1]} : vector<8x32xbf16> to vector<8x8xbf16>
    %cst_19 = arith.constant dense<0.000000e+00> : vector<8x8xf32>
    %33 = tpu.matmul %31, %32, %cst_19 {dimension_numbers = #tpu.dot_dimension_numbers<[1], [0], [0], [1], [0, 0, 1, 1], [], []>} : vector<8x8xbf16>, vector<8x8xbf16>, vector<8x8xf32> -> vector<8x8xf32>
    %c0_20 = arith.constant 0 : index
    %c0_21 = arith.constant 0 : index
    %34 = vector.load %arg9[%c0_20, %c0_21] : memref<8x32xf32, #tpu.memory_space<vmem>>, vector<8x8xf32>
    %35 = vector.broadcast %23 : vector<8x1xf32> to vector<8x8xf32>
    %36 = arith.mulf %35, %34 : vector<8x8xf32>
    %37 = arith.addf %36, %33 : vector<8x8xf32>
    %c0_22 = arith.constant 0 : index
    %c0_23 = arith.constant 0 : index
    %38 = vector.load %arg9[%c0_22, %c0_23] : memref<8x32xf32, #tpu.memory_space<vmem>>, vector<8x8xf32>
    tpu.vector_store %arg9[%c0_22, %c0_23], %37 {strides = array<i32>} : memref<8x32xf32, #tpu.memory_space<vmem>>, vector<8x8xf32>,
    %39 = vector.shape_cast %21 : vector<8x1xf32> to vector<8x1xf32>
    %40 = vector.broadcast %39 : vector<8x1xf32> to vector<8x8xf32>
    %c0_24 = arith.constant 0 : index
    %c0_25 = arith.constant 0 : index
    %41 = vector.load %arg7[%c0_24, %c0_25] : memref<8x32xf32, #tpu.memory_space<vmem>>, vector<8x8xf32>
    tpu.vector_store %arg7[%c0_24, %c0_25], %40 {strides = array<i32>} : memref<8x32xf32, #tpu.memory_space<vmem>>, vector<8x8xf32>,
    %42 = vector.shape_cast %30 : vector<8x1xf32> to vector<8x1xf32>
    %43 = vector.broadcast %42 : vector<8x1xf32> to vector<8x8xf32>
    %c0_26 = arith.constant 0 : index
    %c0_27 = arith.constant 0 : index
    %44 = vector.load %arg8[%c0_26, %c0_27] : memref<8x32xf32, #tpu.memory_space<vmem>>, vector<8x8xf32>
    tpu.vector_store %arg8[%c0_26, %c0_27], %43 {strides = array<i32>} : memref<8x32xf32, #tpu.memory_space<vmem>>, vector<8x8xf32>,
    %45 = vector.extract_strided_slice %9 {offsets = [0, 8], sizes = [8, 8], strides = [1, 1]} : vector<8x32xbf16> to vector<8x8xbf16>
    %46 = vector.extract_strided_slice %10 {offsets = [0, 8], sizes = [8, 8], strides = [1, 1]} : vector<8x32xbf16> to vector<8x8xbf16>
    %cst_28 = arith.constant dense<0.000000e+00> : vector<8x8xf32>
    %47 = tpu.matmul %45, %46, %cst_28 {dimension_numbers = #tpu.dot_dimension_numbers<[1], [1], [0], [0], [0, 0, 1, 0], [], []>} : vector<8x8xbf16>, vector<8x8xbf16>, vector<8x8xf32> -> vector<8x8xf32>
    %cst_29 = arith.constant 0.353553385 : f32
    %48 = vector.broadcast %cst_29 : f32 to vector<8x8xf32>
    %49 = arith.mulf %47, %48 : vector<8x8xf32>
    %c0_30 = arith.constant 0 : index
    %c8 = arith.constant 8 : index
    %50 = vector.load %arg7[%c0_30, %c8] : memref<8x32xf32, #tpu.memory_space<vmem>>, vector<8x1xf32>
    %c0_31 = arith.constant 0 : index
    %c8_32 = arith.constant 8 : index
    %51 = vector.load %arg8[%c0_31, %c8_32] : memref<8x32xf32, #tpu.memory_space<vmem>>, vector<8x1xf32>
    %cst_33 = arith.constant dense<0xFF800000> : vector<8xf32>
    %52 = vector.multi_reduction <maximumf>, %49, %cst_33 [1] : vector<8x8xf32> to vector<8xf32>
    %53 = vector.shape_cast %52 : vector<8xf32> to vector<8x1xf32>
    %54 = arith.maximumf %50, %53 : vector<8x1xf32>
    %55 = arith.subf %50, %54 : vector<8x1xf32>
    %56 = math.exp %55 : vector<8x1xf32>
    %57 = vector.broadcast %54 : vector<8x1xf32> to vector<8x8xf32>
    %58 = arith.subf %49, %57 : vector<8x8xf32>
    %59 = math.exp %58 : vector<8x8xf32>
    %60 = arith.mulf %56, %51 : vector<8x1xf32>
    %cst_34 = arith.constant dense<0.000000e+00> : vector<8xf32>
    %61 = vector.multi_reduction <add>, %59, %cst_34 [1] : vector<8x8xf32> to vector<8xf32>
    %62 = vector.shape_cast %61 : vector<8xf32> to vector<8x1xf32>
    %63 = arith.addf %60, %62 : vector<8x1xf32>
    %64 = arith.truncf %59 : vector<8x8xf32> to vector<8x8xbf16>
    %65 = vector.extract_strided_slice %11 {offsets = [0, 8], sizes = [8, 8], strides = [1, 1]} : vector<8x32xbf16> to vector<8x8xbf16>
    %cst_35 = arith.constant dense<0.000000e+00> : vector<8x8xf32>
    %66 = tpu.matmul %64, %65, %cst_35 {dimension_numbers = #tpu.dot_dimension_numbers<[1], [0], [0], [1], [0, 0, 1, 1], [], []>} : vector<8x8xbf16>, vector<8x8xbf16>, vector<8x8xf32> -> vector<8x8xf32>
    %c0_36 = arith.constant 0 : index
    %c8_37 = arith.constant 8 : index
    %67 = vector.load %arg9[%c0_36, %c8_37] : memref<8x32xf32, #tpu.memory_space<vmem>>, vector<8x8xf32>
    %68 = vector.broadcast %56 : vector<8x1xf32> to vector<8x8xf32>
    %69 = arith.mulf %68, %67 : vector<8x8xf32>
    %70 = arith.addf %69, %66 : vector<8x8xf32>
    %c0_38 = arith.constant 0 : index
    %c8_39 = arith.constant 8 : index
    %71 = vector.load %arg9[%c0_38, %c8_39] : memref<8x32xf32, #tpu.memory_space<vmem>>, vector<8x8xf32>
    tpu.vector_store %arg9[%c0_38, %c8_39], %70 {strides = array<i32>} : memref<8x32xf32, #tpu.memory_space<vmem>>, vector<8x8xf32>,
    %72 = vector.shape_cast %54 : vector<8x1xf32> to vector<8x1xf32>
    %73 = vector.broadcast %72 : vector<8x1xf32> to vector<8x8xf32>
    %c0_40 = arith.constant 0 : index
    %c8_41 = arith.constant 8 : index
    %74 = vector.load %arg7[%c0_40, %c8_41] : memref<8x32xf32, #tpu.memory_space<vmem>>, vector<8x8xf32>
    tpu.vector_store %arg7[%c0_40, %c8_41], %73 {strides = array<i32>} : memref<8x32xf32, #tpu.memory_space<vmem>>, vector<8x8xf32>,
    %75 = vector.shape_cast %63 : vector<8x1xf32> to vector<8x1xf32>
    %76 = vector.broadcast %75 : vector<8x1xf32> to vector<8x8xf32>
    %c0_42 = arith.constant 0 : index
    %c8_43 = arith.constant 8 : index
    %77 = vector.load %arg8[%c0_42, %c8_43] : memref<8x32xf32, #tpu.memory_space<vmem>>, vector<8x8xf32>
    tpu.vector_store %arg8[%c0_42, %c8_43], %76 {strides = array<i32>} : memref<8x32xf32, #tpu.memory_space<vmem>>, vector<8x8xf32>,
    %78 = vector.extract_strided_slice %9 {offsets = [0, 16], sizes = [8, 8], strides = [1, 1]} : vector<8x32xbf16> to vector<8x8xbf16>
    %79 = vector.extract_strided_slice %10 {offsets = [0, 16], sizes = [8, 8], strides = [1, 1]} : vector<8x32xbf16> to vector<8x8xbf16>
    %cst_44 = arith.constant dense<0.000000e+00> : vector<8x8xf32>
    %80 = tpu.matmul %78, %79, %cst_44 {dimension_numbers = #tpu.dot_dimension_numbers<[1], [1], [0], [0], [0, 0, 1, 0], [], []>} : vector<8x8xbf16>, vector<8x8xbf16>, vector<8x8xf32> -> vector<8x8xf32>
    %cst_45 = arith.constant 0.353553385 : f32
    %81 = vector.broadcast %cst_45 : f32 to vector<8x8xf32>
    %82 = arith.mulf %80, %81 : vector<8x8xf32>
    %c0_46 = arith.constant 0 : index
    %c16 = arith.constant 16 : index
    %83 = vector.load %arg7[%c0_46, %c16] : memref<8x32xf32, #tpu.memory_space<vmem>>, vector<8x1xf32>
    %c0_47 = arith.constant 0 : index
    %c16_48 = arith.constant 16 : index
    %84 = vector.load %arg8[%c0_47, %c16_48] : memref<8x32xf32, #tpu.memory_space<vmem>>, vector<8x1xf32>
    %cst_49 = arith.constant dense<0xFF800000> : vector<8xf32>
    %85 = vector.multi_reduction <maximumf>, %82, %cst_49 [1] : vector<8x8xf32> to vector<8xf32>
    %86 = vector.shape_cast %85 : vector<8xf32> to vector<8x1xf32>
    %87 = arith.maximumf %83, %86 : vector<8x1xf32>
    %88 = arith.subf %83, %87 : vector<8x1xf32>
    %89 = math.exp %88 : vector<8x1xf32>
    %90 = vector.broadcast %87 : vector<8x1xf32> to vector<8x8xf32>
    %91 = arith.subf %82, %90 : vector<8x8xf32>
    %92 = math.exp %91 : vector<8x8xf32>
    %93 = arith.mulf %89, %84 : vector<8x1xf32>
    %cst_50 = arith.constant dense<0.000000e+00> : vector<8xf32>
    %94 = vector.multi_reduction <add>, %92, %cst_50 [1] : vector<8x8xf32> to vector<8xf32>
    %95 = vector.shape_cast %94 : vector<8xf32> to vector<8x1xf32>
    %96 = arith.addf %93, %95 : vector<8x1xf32>
    %97 = arith.truncf %92 : vector<8x8xf32> to vector<8x8xbf16>
    %98 = vector.extract_strided_slice %11 {offsets = [0, 16], sizes = [8, 8], strides = [1, 1]} : vector<8x32xbf16> to vector<8x8xbf16>
    %cst_51 = arith.constant dense<0.000000e+00> : vector<8x8xf32>
    %99 = tpu.matmul %97, %98, %cst_51 {dimension_numbers = #tpu.dot_dimension_numbers<[1], [0], [0], [1], [0, 0, 1, 1], [], []>} : vector<8x8xbf16>, vector<8x8xbf16>, vector<8x8xf32> -> vector<8x8xf32>
    %c0_52 = arith.constant 0 : index
    %c16_53 = arith.constant 16 : index
    %100 = vector.load %arg9[%c0_52, %c16_53] : memref<8x32xf32, #tpu.memory_space<vmem>>, vector<8x8xf32>
    %101 = vector.broadcast %89 : vector<8x1xf32> to vector<8x8xf32>
    %102 = arith.mulf %101, %100 : vector<8x8xf32>
    %103 = arith.addf %102, %99 : vector<8x8xf32>
    %c0_54 = arith.constant 0 : index
    %c16_55 = arith.constant 16 : index
    %104 = vector.load %arg9[%c0_54, %c16_55] : memref<8x32xf32, #tpu.memory_space<vmem>>, vector<8x8xf32>
    tpu.vector_store %arg9[%c0_54, %c16_55], %103 {strides = array<i32>} : memref<8x32xf32, #tpu.memory_space<vmem>>, vector<8x8xf32>,
    %105 = vector.shape_cast %87 : vector<8x1xf32> to vector<8x1xf32>
    %106 = vector.broadcast %105 : vector<8x1xf32> to vector<8x8xf32>
    %c0_56 = arith.constant 0 : index
    %c16_57 = arith.constant 16 : index
    %107 = vector.load %arg7[%c0_56, %c16_57] : memref<8x32xf32, #tpu.memory_space<vmem>>, vector<8x8xf32>
    tpu.vector_store %arg7[%c0_56, %c16_57], %106 {strides = array<i32>} : memref<8x32xf32, #tpu.memory_space<vmem>>, vector<8x8xf32>,
    %108 = vector.shape_cast %96 : vector<8x1xf32> to vector<8x1xf32>
    %109 = vector.broadcast %108 : vector<8x1xf32> to vector<8x8xf32>
    %c0_58 = arith.constant 0 : index
    %c16_59 = arith.constant 16 : index
    %110 = vector.load %arg8[%c0_58, %c16_59] : memref<8x32xf32, #tpu.memory_space<vmem>>, vector<8x8xf32>
    tpu.vector_store %arg8[%c0_58, %c16_59], %109 {strides = array<i32>} : memref<8x32xf32, #tpu.memory_space<vmem>>, vector<8x8xf32>,
    %111 = vector.extract_strided_slice %9 {offsets = [0, 24], sizes = [8, 8], strides = [1, 1]} : vector<8x32xbf16> to vector<8x8xbf16>
    %112 = vector.extract_strided_slice %10 {offsets = [0, 24], sizes = [8, 8], strides = [1, 1]} : vector<8x32xbf16> to vector<8x8xbf16>
    %cst_60 = arith.constant dense<0.000000e+00> : vector<8x8xf32>
    %113 = tpu.matmul %111, %112, %cst_60 {dimension_numbers = #tpu.dot_dimension_numbers<[1], [1], [0], [0], [0, 0, 1, 0], [], []>} : vector<8x8xbf16>, vector<8x8xbf16>, vector<8x8xf32> -> vector<8x8xf32>
    %cst_61 = arith.constant 0.353553385 : f32
    %114 = vector.broadcast %cst_61 : f32 to vector<8x8xf32>
    %115 = arith.mulf %113, %114 : vector<8x8xf32>
    %c0_62 = arith.constant 0 : index
    %c24 = arith.constant 24 : index
    %116 = vector.load %arg7[%c0_62, %c24] : memref<8x32xf32, #tpu.memory_space<vmem>>, vector<8x1xf32>
    %c0_63 = arith.constant 0 : index
    %c24_64 = arith.constant 24 : index
    %117 = vector.load %arg8[%c0_63, %c24_64] : memref<8x32xf32, #tpu.memory_space<vmem>>, vector<8x1xf32>
    %cst_65 = arith.constant dense<0xFF800000> : vector<8xf32>
    %118 = vector.multi_reduction <maximumf>, %115, %cst_65 [1] : vector<8x8xf32> to vector<8xf32>
    %119 = vector.shape_cast %118 : vector<8xf32> to vector<8x1xf32>
    %120 = arith.maximumf %116, %119 : vector<8x1xf32>
    %121 = arith.subf %116, %120 : vector<8x1xf32>
    %122 = math.exp %121 : vector<8x1xf32>
    %123 = vector.broadcast %120 : vector<8x1xf32> to vector<8x8xf32>
    %124 = arith.subf %115, %123 : vector<8x8xf32>
    %125 = math.exp %124 : vector<8x8xf32>
    %126 = arith.mulf %122, %117 : vector<8x1xf32>
    %cst_66 = arith.constant dense<0.000000e+00> : vector<8xf32>
    %127 = vector.multi_reduction <add>, %125, %cst_66 [1] : vector<8x8xf32> to vector<8xf32>
    %128 = vector.shape_cast %127 : vector<8xf32> to vector<8x1xf32>
    %129 = arith.addf %126, %128 : vector<8x1xf32>
    %130 = arith.truncf %125 : vector<8x8xf32> to vector<8x8xbf16>
    %131 = vector.extract_strided_slice %11 {offsets = [0, 24], sizes = [8, 8], strides = [1, 1]} : vector<8x32xbf16> to vector<8x8xbf16>
    %cst_67 = arith.constant dense<0.000000e+00> : vector<8x8xf32>
    %132 = tpu.matmul %130, %131, %cst_67 {dimension_numbers = #tpu.dot_dimension_numbers<[1], [0], [0], [1], [0, 0, 1, 1], [], []>} : vector<8x8xbf16>, vector<8x8xbf16>, vector<8x8xf32> -> vector<8x8xf32>
    %c0_68 = arith.constant 0 : index
    %c24_69 = arith.constant 24 : index
    %133 = vector.load %arg9[%c0_68, %c24_69] : memref<8x32xf32, #tpu.memory_space<vmem>>, vector<8x8xf32>
    %134 = vector.broadcast %122 : vector<8x1xf32> to vector<8x8xf32>
    %135 = arith.mulf %134, %133 : vector<8x8xf32>
    %136 = arith.addf %135, %132 : vector<8x8xf32>
    %c0_70 = arith.constant 0 : index
    %c24_71 = arith.constant 24 : index
    %137 = vector.load %arg9[%c0_70, %c24_71] : memref<8x32xf32, #tpu.memory_space<vmem>>, vector<8x8xf32>
    tpu.vector_store %arg9[%c0_70, %c24_71], %136 {strides = array<i32>} : memref<8x32xf32, #tpu.memory_space<vmem>>, vector<8x8xf32>,
    %138 = vector.shape_cast %120 : vector<8x1xf32> to vector<8x1xf32>
    %139 = vector.broadcast %138 : vector<8x1xf32> to vector<8x8xf32>
    %c0_72 = arith.constant 0 : index
    %c24_73 = arith.constant 24 : index
    %140 = vector.load %arg7[%c0_72, %c24_73] : memref<8x32xf32, #tpu.memory_space<vmem>>, vector<8x8xf32>
    tpu.vector_store %arg7[%c0_72, %c24_73], %139 {strides = array<i32>} : memref<8x32xf32, #tpu.memory_space<vmem>>, vector<8x8xf32>,
    %141 = vector.shape_cast %129 : vector<8x1xf32> to vector<8x1xf32>
    %142 = vector.broadcast %141 : vector<8x1xf32> to vector<8x8xf32>
    %c0_74 = arith.constant 0 : index
    %c24_75 = arith.constant 24 : index
    %143 = vector.load %arg8[%c0_74, %c24_75] : memref<8x32xf32, #tpu.memory_space<vmem>>, vector<8x8xf32>
    tpu.vector_store %arg8[%c0_74, %c24_75], %142 {strides = array<i32>} : memref<8x32xf32, #tpu.memory_space<vmem>>, vector<8x8xf32>,
    %c0_i32_76 = arith.constant 0 : i32
    %144 = arith.cmpi eq, %arg2, %c0_i32_76 : i32
    %145 = arith.extui %144 : i1 to i32
    %c0_i32_77 = arith.constant 0 : i32
    %146 = arith.cmpi ne, %145, %c0_i32_77 : i32
    scf.if %146 {
      %c0_78 = arith.constant 0 : index
      %c0_79 = arith.constant 0 : index
      %147 = vector.load %arg9[%c0_78, %c0_79] : memref<8x32xf32, #tpu.memory_space<vmem>>, vector<8x32xf32>
      %c0_80 = arith.constant 0 : index
      %c0_81 = arith.constant 0 : index
      %148 = vector.load %arg8[%c0_80, %c0_81] : memref<8x32xf32, #tpu.memory_space<vmem>>, vector<8x32xf32>
      %149 = arith.divf %147, %148 : vector<8x32xf32>
      %c0_82 = arith.constant 0 : index
      %c0_83 = arith.constant 0 : index
      %c0_84 = arith.constant 0 : index
      %150 = vector.load %arg6[%c0_82, %c0_83, %c0_84] : memref<1x8x32xf32, #tpu.memory_space<vmem>>, vector<1x8x32xf32>
      %151 = vector.shape_cast %150 : vector<1x8x32xf32> to vector<8x32xf32>
      %152 = vector.shape_cast %149 : vector<8x32xf32> to vector<1x8x32xf32>
      tpu.vector_store %arg6[%c0_82, %c0_83, %c0_84], %152 {strides = array<i32>} : memref<1x8x32xf32, #tpu.memory_space<vmem>>, vector<1x8x32xf32>,
    } else {
    }
    return
  }
  func.func @transform_0(%arg0: i32, %arg1: i32, %arg2: i32) -> (i32, i32, i32, i32) {
    %c0_i32 = arith.constant 0 : i32
    %c0_i32_0 = arith.constant 0 : i32
    %c0_i32_1 = arith.constant 0 : i32
    return %c0_i32, %arg0, %arg1, %c0_i32_0 : i32, i32, i32, i32
  }
  func.func @transform_1(%arg0: i32, %arg1: i32, %arg2: i32) -> (i32, i32, i32, i32) {
    %c1_i32 = arith.constant 1 : i32
    %c0_i32 = arith.constant 0 : i32
    %c0_i32_0 = arith.constant 0 : i32
    return %c1_i32, %arg0, %arg2, %c0_i32 : i32, i32, i32, i32
  }
  func.func @transform_2(%arg0: i32, %arg1: i32, %arg2: i32) -> (i32, i32, i32, i32) {
    %c2_i32 = arith.constant 2 : i32
    %c0_i32 = arith.constant 0 : i32
    %c0_i32_0 = arith.constant 0 : i32
    return %c2_i32, %arg0, %arg2, %c0_i32 : i32, i32, i32, i32
  }
  func.func @transform_3(%arg0: i32, %arg1: i32, %arg2: i32) -> (i32, i32, i32) {
    %c0_i32 = arith.constant 0 : i32
    %c0_i32_0 = arith.constant 0 : i32
    return %arg0, %arg1, %c0_i32 : i32, i32, i32
  }
}

module attributes {stable_mosaic.version = 11 : i64} {
  func.func @_matmul_kernel(%arg0: i32, %arg1: i32, %arg2: i32, %arg3: memref<16x32xf32, #tpu.memory_space<vmem>>, %arg4: memref<32x64xf32, #tpu.memory_space<vmem>>, %arg5: memref<1x64xf32, #tpu.memory_space<vmem>>, %arg6: memref<16x64xf32, #tpu.memory_space<vmem>>, %arg7: memref<16x64xf32, #tpu.memory_space<vmem>>) attributes {dimension_semantics = [#tpu.dimension_semantics<parallel>, #tpu.dimension_semantics<parallel>, #tpu.dimension_semantics<arbitrary>], iteration_bounds = array<i64: 1, 1, 1>, scalar_prefetch = 0 : i64, scratch_operands = 1 : i64, tpu.core_type = #tpu.core_type<tc>, window_params = [{transform_indices = @transform_0, window_bounds = array<i64: 16, 32>}, {transform_indices = @transform_1, window_bounds = array<i64: 32, 64>}, {transform_indices = @transform_2, window_bounds = array<i64: 1, 64>}, {transform_indices = @transform_3, window_bounds = array<i64: 16, 64>}]} {
    %c0_i32 = arith.constant 0 : i32
    %0 = arith.cmpi eq, %arg2, %c0_i32 : i32
    %1 = arith.extui %0 : i1 to i32
    %c0_i32_0 = arith.constant 0 : i32
    %2 = arith.cmpi ne, %1, %c0_i32_0 : i32
    scf.if %2 {
      %cst_10 = arith.constant 0.000000e+00 : f32
      %14 = vector.broadcast %cst_10 : f32 to vector<16x64xf32>
      %c0_11 = arith.constant 0 : index
      %c0_12 = arith.constant 0 : index
      %15 = vector.load %arg7[%c0_11, %c0_12] : memref<16x64xf32, #tpu.memory_space<vmem>>, vector<16x64xf32>
      tpu.vector_store %arg7[%c0_11, %c0_12], %14 {strides = array<i32>} : memref<16x64xf32, #tpu.memory_space<vmem>>, vector<16x64xf32>,
    } else {
    }
    %c0 = arith.constant 0 : index
    %c0_1 = arith.constant 0 : index
    %3 = vector.load %arg7[%c0, %c0_1] : memref<16x64xf32, #tpu.memory_space<vmem>>, vector<16x64xf32>
    %c0_2 = arith.constant 0 : index
    %c0_3 = arith.constant 0 : index
    %4 = vector.load %arg3[%c0_2, %c0_3] : memref<16x32xf32, #tpu.memory_space<vmem>>, vector<16x32xf32>
    %5 = arith.truncf %4 : vector<16x32xf32> to vector<16x32xbf16>
    %c0_4 = arith.constant 0 : index
    %c0_5 = arith.constant 0 : index
    %6 = vector.load %arg4[%c0_4, %c0_5] : memref<32x64xf32, #tpu.memory_space<vmem>>, vector<32x64xf32>
    %7 = arith.truncf %6 : vector<32x64xf32> to vector<32x64xbf16>
    %cst = arith.constant dense<0.000000e+00> : vector<16x64xf32>
    %8 = tpu.matmul %5, %7, %cst {dimension_numbers = #tpu.dot_dimension_numbers<[1], [0], [0], [1], [0, 0, 1, 1], [], []>} : vector<16x32xbf16>, vector<32x64xbf16>, vector<16x64xf32> -> vector<16x64xf32>
    %9 = arith.addf %3, %8 : vector<16x64xf32>
    %c0_6 = arith.constant 0 : index
    %c0_7 = arith.constant 0 : index
    %10 = vector.load %arg7[%c0_6, %c0_7] : memref<16x64xf32, #tpu.memory_space<vmem>>, vector<16x64xf32>
    tpu.vector_store %arg7[%c0_6, %c0_7], %9 {strides = array<i32>} : memref<16x64xf32, #tpu.memory_space<vmem>>, vector<16x64xf32>,
    %c0_i32_8 = arith.constant 0 : i32
    %11 = arith.cmpi eq, %arg2, %c0_i32_8 : i32
    %12 = arith.extui %11 : i1 to i32
    %c0_i32_9 = arith.constant 0 : i32
    %13 = arith.cmpi ne, %12, %c0_i32_9 : i32
    scf.if %13 {
      %c0_10 = arith.constant 0 : index
      %c0_11 = arith.constant 0 : index
      %14 = vector.load %arg7[%c0_10, %c0_11] : memref<16x64xf32, #tpu.memory_space<vmem>>, vector<16x64xf32>
      %c0_12 = arith.constant 0 : index
      %c0_13 = arith.constant 0 : index
      %15 = vector.load %arg5[%c0_12, %c0_13] : memref<1x64xf32, #tpu.memory_space<vmem>>, vector<1x64xf32>
      %16 = vector.broadcast %15 : vector<1x64xf32> to vector<16x64xf32>
      %17 = arith.addf %14, %16 : vector<16x64xf32>
      %cst_14 = arith.constant 0.000000e+00 : f32
      %18 = vector.broadcast %cst_14 : f32 to vector<16x64xf32>
      %19 = arith.maximumf %17, %18 : vector<16x64xf32>
      %c0_15 = arith.constant 0 : index
      %c0_16 = arith.constant 0 : index
      %20 = vector.load %arg6[%c0_15, %c0_16] : memref<16x64xf32, #tpu.memory_space<vmem>>, vector<16x64xf32>
      tpu.vector_store %arg6[%c0_15, %c0_16], %19 {strides = array<i32>} : memref<16x64xf32, #tpu.memory_space<vmem>>, vector<16x64xf32>,
    } else {
    }
    return
  }
  func.func @transform_0(%arg0: i32, %arg1: i32, %arg2: i32) -> (i32, i32) {
    %c0_i32 = arith.constant 0 : i32
    return %arg0, %arg2 : i32, i32
  }
  func.func @transform_1(%arg0: i32, %arg1: i32, %arg2: i32) -> (i32, i32) {
    %c0_i32 = arith.constant 0 : i32
    return %arg2, %arg1 : i32, i32
  }
  func.func @transform_2(%arg0: i32, %arg1: i32, %arg2: i32) -> (i32, i32) {
    %c0_i32 = arith.constant 0 : i32
    %c0_i32_0 = arith.constant 0 : i32
    return %c0_i32, %arg1 : i32, i32
  }
  func.func @transform_3(%arg0: i32, %arg1: i32, %arg2: i32) -> (i32, i32) {
    %c0_i32 = arith.constant 0 : i32
    return %arg0, %arg1 : i32, i32
  }
}

module attributes {stable_mosaic.version = 11 : i64} {
  func.func @_split_matmul_kernel(%arg0: i32, %arg1: i32, %arg2: i32, %arg3: memref<16x32xf32, #tpu.memory_space<vmem>>, %arg4: memref<1x32x32xf32, #tpu.memory_space<vmem>>, %arg5: memref<1x1x32xf32, #tpu.memory_space<vmem>>, %arg6: memref<1x16x32xf32, #tpu.memory_space<vmem>>, %arg7: memref<16x32xf32, #tpu.memory_space<vmem>>) attributes {dimension_semantics = [#tpu.dimension_semantics<parallel>, #tpu.dimension_semantics<parallel>, #tpu.dimension_semantics<arbitrary>], iteration_bounds = array<i64: 1, 3, 1>, scalar_prefetch = 0 : i64, scratch_operands = 1 : i64, tpu.core_type = #tpu.core_type<tc>, window_params = [{transform_indices = @transform_0, window_bounds = array<i64: 16, 32>}, {transform_indices = @transform_1, window_bounds = array<i64: 1, 32, 32>}, {transform_indices = @transform_2, window_bounds = array<i64: 1, 1, 32>}, {transform_indices = @transform_3, window_bounds = array<i64: 1, 16, 32>}]} {
    %c0_i32 = arith.constant 0 : i32
    %0 = arith.cmpi eq, %arg2, %c0_i32 : i32
    %1 = arith.extui %0 : i1 to i32
    %c0_i32_0 = arith.constant 0 : i32
    %2 = arith.cmpi ne, %1, %c0_i32_0 : i32
    scf.if %2 {
      %cst_11 = arith.constant 0.000000e+00 : f32
      %15 = vector.broadcast %cst_11 : f32 to vector<16x32xf32>
      %c0_12 = arith.constant 0 : index
      %c0_13 = arith.constant 0 : index
      %16 = vector.load %arg7[%c0_12, %c0_13] : memref<16x32xf32, #tpu.memory_space<vmem>>, vector<16x32xf32>
      tpu.vector_store %arg7[%c0_12, %c0_13], %15 {strides = array<i32>} : memref<16x32xf32, #tpu.memory_space<vmem>>, vector<16x32xf32>,
    } else {
    }
    %c0 = arith.constant 0 : index
    %c0_1 = arith.constant 0 : index
    %3 = vector.load %arg7[%c0, %c0_1] : memref<16x32xf32, #tpu.memory_space<vmem>>, vector<16x32xf32>
    %c0_2 = arith.constant 0 : index
    %c0_3 = arith.constant 0 : index
    %4 = vector.load %arg3[%c0_2, %c0_3] : memref<16x32xf32, #tpu.memory_space<vmem>>, vector<16x32xf32>
    %5 = arith.truncf %4 : vector<16x32xf32> to vector<16x32xbf16>
    %c0_4 = arith.constant 0 : index
    %c0_5 = arith.constant 0 : index
    %c0_6 = arith.constant 0 : index
    %6 = vector.load %arg4[%c0_4, %c0_5, %c0_6] : memref<1x32x32xf32, #tpu.memory_space<vmem>>, vector<1x32x32xf32>
    %7 = vector.shape_cast %6 : vector<1x32x32xf32> to vector<32x32xf32>
    %8 = arith.truncf %7 : vector<32x32xf32> to vector<32x32xbf16>
    %cst = arith.constant dense<0.000000e+00> : vector<16x32xf32>
    %9 = tpu.matmul %5, %8, %cst {dimension_numbers = #tpu.dot_dimension_numbers<[1], [0], [0], [1], [0, 0, 1, 1], [], []>} : vector<16x32xbf16>, vector<32x32xbf16>, vector<16x32xf32> -> vector<16x32xf32>
    %10 = arith.addf %3, %9 : vector<16x32xf32>
    %c0_7 = arith.constant 0 : index
    %c0_8 = arith.constant 0 : index
    %11 = vector.load %arg7[%c0_7, %c0_8] : memref<16x32xf32, #tpu.memory_space<vmem>>, vector<16x32xf32>
    tpu.vector_store %arg7[%c0_7, %c0_8], %10 {strides = array<i32>} : memref<16x32xf32, #tpu.memory_space<vmem>>, vector<16x32xf32>,
    %c0_i32_9 = arith.constant 0 : i32
    %12 = arith.cmpi eq, %arg2, %c0_i32_9 : i32
    %13 = arith.extui %12 : i1 to i32
    %c0_i32_10 = arith.constant 0 : i32
    %14 = arith.cmpi ne, %13, %c0_i32_10 : i32
    scf.if %14 {
      %c0_11 = arith.constant 0 : index
      %c0_12 = arith.constant 0 : index
      %15 = vector.load %arg7[%c0_11, %c0_12] : memref<16x32xf32, #tpu.memory_space<vmem>>, vector<16x32xf32>
      %c0_13 = arith.constant 0 : index
      %c0_14 = arith.constant 0 : index
      %c0_15 = arith.constant 0 : index
      %16 = vector.load %arg5[%c0_13, %c0_14, %c0_15] : memref<1x1x32xf32, #tpu.memory_space<vmem>>, vector<1x1x32xf32>
      %17 = vector.shape_cast %16 : vector<1x1x32xf32> to vector<1x32xf32>
      %18 = vector.broadcast %17 : vector<1x32xf32> to vector<16x32xf32>
      %19 = arith.addf %15, %18 : vector<16x32xf32>
      %c0_16 = arith.constant 0 : index
      %c0_17 = arith.constant 0 : index
      %c0_18 = arith.constant 0 : index
      %20 = vector.load %arg6[%c0_16, %c0_17, %c0_18] : memref<1x16x32xf32, #tpu.memory_space<vmem>>, vector<1x16x32xf32>
      %21 = vector.shape_cast %20 : vector<1x16x32xf32> to vector<16x32xf32>
      %22 = vector.shape_cast %19 : vector<16x32xf32> to vector<1x16x32xf32>
      tpu.vector_store %arg6[%c0_16, %c0_17, %c0_18], %22 {strides = array<i32>} : memref<1x16x32xf32, #tpu.memory_space<vmem>>, vector<1x16x32xf32>,
    } else {
    }
    return
  }
  func.func @transform_0(%arg0: i32, %arg1: i32, %arg2: i32) -> (i32, i32) {
    %c0_i32 = arith.constant 0 : i32
    return %arg0, %arg2 : i32, i32
  }
  func.func @transform_1(%arg0: i32, %arg1: i32, %arg2: i32) -> (i32, i32, i32) {
    %c0_i32 = arith.constant 0 : i32
    %c0_i32_0 = arith.constant 0 : i32
    return %arg1, %arg2, %c0_i32 : i32, i32, i32
  }
  func.func @transform_2(%arg0: i32, %arg1: i32, %arg2: i32) -> (i32, i32, i32) {
    %c0_i32 = arith.constant 0 : i32
    %c0_i32_0 = arith.constant 0 : i32
    %c0_i32_1 = arith.constant 0 : i32
    return %arg1, %c0_i32, %c0_i32_0 : i32, i32, i32
  }
  func.func @transform_3(%arg0: i32, %arg1: i32, %arg2: i32) -> (i32, i32, i32) {
    %c0_i32 = arith.constant 0 : i32
    %c0_i32_0 = arith.constant 0 : i32
    return %arg1, %arg0, %c0_i32 : i32, i32, i32
  }
}

module attributes {stable_mosaic.version = 11 : i64} {
  func.func @_matmul_add_ln_kernel(%arg0: i32, %arg1: i32, %arg2: memref<16x32xf32, #tpu.memory_space<vmem>>, %arg3: memref<32x32xf32, #tpu.memory_space<vmem>>, %arg4: memref<1x32xf32, #tpu.memory_space<vmem>>, %arg5: memref<16x32xf32, #tpu.memory_space<vmem>>, %arg6: memref<1x32xf32, #tpu.memory_space<vmem>>, %arg7: memref<1x32xf32, #tpu.memory_space<vmem>>, %arg8: memref<16x32xf32, #tpu.memory_space<vmem>>, %arg9: memref<16x32xf32, #tpu.memory_space<vmem>>) attributes {dimension_semantics = [#tpu.dimension_semantics<parallel>, #tpu.dimension_semantics<arbitrary>], iteration_bounds = array<i64: 1, 1>, scalar_prefetch = 0 : i64, scratch_operands = 1 : i64, tpu.core_type = #tpu.core_type<tc>, window_params = [{transform_indices = @transform_0, window_bounds = array<i64: 16, 32>}, {transform_indices = @transform_1, window_bounds = array<i64: 32, 32>}, {pipeline_mode = #tpu.pipeline_mode<synchronous>, transform_indices = @transform_2, window_bounds = array<i64: 1, 32>}, {transform_indices = @transform_3, window_bounds = array<i64: 16, 32>}, {pipeline_mode = #tpu.pipeline_mode<synchronous>, transform_indices = @transform_4, window_bounds = array<i64: 1, 32>}, {pipeline_mode = #tpu.pipeline_mode<synchronous>, transform_indices = @transform_5, window_bounds = array<i64: 1, 32>}, {transform_indices = @transform_6, window_bounds = array<i64: 16, 32>}]} {
    %c0_i32 = arith.constant 0 : i32
    %0 = arith.cmpi eq, %arg1, %c0_i32 : i32
    %1 = arith.extui %0 : i1 to i32
    %c0_i32_0 = arith.constant 0 : i32
    %2 = arith.cmpi ne, %1, %c0_i32_0 : i32
    scf.if %2 {
      %cst_10 = arith.constant 0.000000e+00 : f32
      %14 = vector.broadcast %cst_10 : f32 to vector<16x32xf32>
      %c0_11 = arith.constant 0 : index
      %c0_12 = arith.constant 0 : index
      %15 = vector.load %arg9[%c0_11, %c0_12] : memref<16x32xf32, #tpu.memory_space<vmem>>, vector<16x32xf32>
      tpu.vector_store %arg9[%c0_11, %c0_12], %14 {strides = array<i32>} : memref<16x32xf32, #tpu.memory_space<vmem>>, vector<16x32xf32>,
    } else {
    }
    %c0 = arith.constant 0 : index
    %c0_1 = arith.constant 0 : index
    %3 = vector.load %arg9[%c0, %c0_1] : memref<16x32xf32, #tpu.memory_space<vmem>>, vector<16x32xf32>
    %c0_2 = arith.constant 0 : index
    %c0_3 = arith.constant 0 : index
    %4 = vector.load %arg2[%c0_2, %c0_3] : memref<16x32xf32, #tpu.memory_space<vmem>>, vector<16x32xf32>
    %5 = arith.truncf %4 : vector<16x32xf32> to vector<16x32xbf16>
    %c0_4 = arith.constant 0 : index
    %c0_5 = arith.constant 0 : index
    %6 = vector.load %arg3[%c0_4, %c0_5] : memref<32x32xf32, #tpu.memory_space<vmem>>, vector<32x32xf32>
    %7 = arith.truncf %6 : vector<32x32xf32> to vector<32x32xbf16>
    %cst = arith.constant dense<0.000000e+00> : vector<16x32xf32>
    %8 = tpu.matmul %5, %7, %cst {dimension_numbers = #tpu.dot_dimension_numbers<[1], [0], [0], [1], [0, 0, 1, 1], [], []>} : vector<16x32xbf16>, vector<32x32xbf16>, vector<16x32xf32> -> vector<16x32xf32>
    %9 = arith.addf %3, %8 : vector<16x32xf32>
    %c0_6 = arith.constant 0 : index
    %c0_7 = arith.constant 0 : index
    %10 = vector.load %arg9[%c0_6, %c0_7] : memref<16x32xf32, #tpu.memory_space<vmem>>, vector<16x32xf32>
    tpu.vector_store %arg9[%c0_6, %c0_7], %9 {strides = array<i32>} : memref<16x32xf32, #tpu.memory_space<vmem>>, vector<16x32xf32>,
    %c0_i32_8 = arith.constant 0 : i32
    %11 = arith.cmpi eq, %arg1, %c0_i32_8 : i32
    %12 = arith.extui %11 : i1 to i32
    %c0_i32_9 = arith.constant 0 : i32
    %13 = arith.cmpi ne, %12, %c0_i32_9 : i32
    scf.if %13 {
      %c0_10 = arith.constant 0 : index
      %c0_11 = arith.constant 0 : index
      %14 = vector.load %arg9[%c0_10, %c0_11] : memref<16x32xf32, #tpu.memory_space<vmem>>, vector<16x32xf32>
      %c0_12 = arith.constant 0 : index
      %c0_13 = arith.constant 0 : index
      %15 = vector.load %arg4[%c0_12, %c0_13] : memref<1x32xf32, #tpu.memory_space<vmem>>, vector<1x32xf32>
      %16 = vector.broadcast %15 : vector<1x32xf32> to vector<16x32xf32>
      %17 = arith.addf %14, %16 : vector<16x32xf32>
      %c0_14 = arith.constant 0 : index
      %c0_15 = arith.constant 0 : index
      %18 = vector.load %arg5[%c0_14, %c0_15] : memref<16x32xf32, #tpu.memory_space<vmem>>, vector<16x32xf32>
      %19 = arith.addf %17, %18 : vector<16x32xf32>
      %cst_16 = arith.constant dense<0.000000e+00> : vector<16xf32>
      %20 = vector.multi_reduction <add>, %19, %cst_16 [1] : vector<16x32xf32> to vector<16xf32>
      %21 = vector.shape_cast %20 : vector<16xf32> to vector<16x1xf32>
      %cst_17 = arith.constant 3.200000e+01 : f32
      %22 = vector.broadcast %cst_17 : f32 to vector<16x1xf32>
      %23 = arith.divf %21, %22 : vector<16x1xf32>
      %24 = vector.broadcast %23 : vector<16x1xf32> to vector<16x32xf32>
      %25 = arith.subf %19, %24 : vector<16x32xf32>
      %26 = arith.mulf %25, %25 : vector<16x32xf32>
      %cst_18 = arith.constant dense<0.000000e+00> : vector<16xf32>
      %27 = vector.multi_reduction <add>, %26, %cst_18 [1] : vector<16x32xf32> to vector<16xf32>
      %28 = vector.shape_cast %27 : vector<16xf32> to vector<16x1xf32>
      %cst_19 = arith.constant 3.200000e+01 : f32
      %29 = vector.broadcast %cst_19 : f32 to vector<16x1xf32>
      %30 = arith.divf %28, %29 : vector<16x1xf32>
      %cst_20 = arith.constant 9.99999974E-6 : f32
      %31 = vector.broadcast %cst_20 : f32 to vector<16x1xf32>
      %32 = arith.addf %30, %31 : vector<16x1xf32>
      %33 = math.rsqrt %32 : vector<16x1xf32>
      %34 = vector.broadcast %33 : vector<16x1xf32> to vector<16x32xf32>
      %35 = arith.mulf %25, %34 : vector<16x32xf32>
      %c0_21 = arith.constant 0 : index
      %c0_22 = arith.constant 0 : index
      %36 = vector.load %arg6[%c0_21, %c0_22] : memref<1x32xf32, #tpu.memory_space<vmem>>, vector<1x32xf32>
      %37 = vector.broadcast %36 : vector<1x32xf32> to vector<16x32xf32>
      %38 = arith.mulf %35, %37 : vector<16x32xf32>
      %c0_23 = arith.constant 0 : index
      %c0_24 = arith.constant 0 : index
      %39 = vector.load %arg7[%c0_23, %c0_24] : memref<1x32xf32, #tpu.memory_space<vmem>>, vector<1x32xf32>
      %40 = vector.broadcast %39 : vector<1x32xf32> to vector<16x32xf32>
      %41 = arith.addf %38, %40 : vector<16x32xf32>
      %c0_25 = arith.constant 0 : index
      %c0_26 = arith.constant 0 : index
      %42 = vector.load %arg8[%c0_25, %c0_26] : memref<16x32xf32, #tpu.memory_space<vmem>>, vector<16x32xf32>
      tpu.vector_store %arg8[%c0_25, %c0_26], %41 {strides = array<i32>} : memref<16x32xf32, #tpu.memory_space<vmem>>, vector<16x32xf32>,
    } else {
    }
    return
  }
  func.func @transform_0(%arg0: i32, %arg1: i32) -> (i32, i32) {
    %c0_i32 = arith.constant 0 : i32
    return %arg0, %arg1 : i32, i32
  }
  func.func @transform_1(%arg0: i32, %arg1: i32) -> (i32, i32) {
    %c0_i32 = arith.constant 0 : i32
    %c0_i32_0 = arith.constant 0 : i32
    return %arg1, %c0_i32 : i32, i32
  }
  func.func @transform_2(%arg0: i32, %arg1: i32) -> (i32, i32) {
    %c0_i32 = arith.constant 0 : i32
    %c0_i32_0 = arith.constant 0 : i32
    %c0_i32_1 = arith.constant 0 : i32
    return %c0_i32, %c0_i32_0 : i32, i32
  }
  func.func @transform_3(%arg0: i32, %arg1: i32) -> (i32, i32) {
    %c0_i32 = arith.constant 0 : i32
    %c0_i32_0 = arith.constant 0 : i32
    return %arg0, %c0_i32 : i32, i32
  }
  func.func @transform_4(%arg0: i32, %arg1: i32) -> (i32, i32) {
    %c0_i32 = arith.constant 0 : i32
    %c0_i32_0 = arith.constant 0 : i32
    %c0_i32_1 = arith.constant 0 : i32
    return %c0_i32, %c0_i32_0 : i32, i32
  }
  func.func @transform_5(%arg0: i32, %arg1: i32) -> (i32, i32) {
    %c0_i32 = arith.constant 0 : i32
    %c0_i32_0 = arith.constant 0 : i32
    %c0_i32_1 = arith.constant 0 : i32
    return %c0_i32, %c0_i32_0 : i32, i32
  }
  func.func @transform_6(%arg0: i32, %arg1: i32) -> (i32, i32) {
    %c0_i32 = arith.constant 0 : i32
    %c0_i32_0 = arith.constant 0 : i32
    return %arg0, %c0_i32 : i32, i32
  }
}

module attributes {stable_mosaic.version = 11 : i64} {
  func.func @_matmul_add_ln_kernel(%arg0: i32, %arg1: i32, %arg2: memref<16x64xf32, #tpu.memory_space<vmem>>, %arg3: memref<64x32xf32, #tpu.memory_space<vmem>>, %arg4: memref<1x32xf32, #tpu.memory_space<vmem>>, %arg5: memref<16x32xf32, #tpu.memory_space<vmem>>, %arg6: memref<1x32xf32, #tpu.memory_space<vmem>>, %arg7: memref<1x32xf32, #tpu.memory_space<vmem>>, %arg8: memref<16x32xf32, #tpu.memory_space<vmem>>, %arg9: memref<16x32xf32, #tpu.memory_space<vmem>>) attributes {dimension_semantics = [#tpu.dimension_semantics<parallel>, #tpu.dimension_semantics<arbitrary>], iteration_bounds = array<i64: 1, 1>, scalar_prefetch = 0 : i64, scratch_operands = 1 : i64, tpu.core_type = #tpu.core_type<tc>, window_params = [{transform_indices = @transform_0, window_bounds = array<i64: 16, 64>}, {transform_indices = @transform_1, window_bounds = array<i64: 64, 32>}, {pipeline_mode = #tpu.pipeline_mode<synchronous>, transform_indices = @transform_2, window_bounds = array<i64: 1, 32>}, {transform_indices = @transform_3, window_bounds = array<i64: 16, 32>}, {pipeline_mode = #tpu.pipeline_mode<synchronous>, transform_indices = @transform_4, window_bounds = array<i64: 1, 32>}, {pipeline_mode = #tpu.pipeline_mode<synchronous>, transform_indices = @transform_5, window_bounds = array<i64: 1, 32>}, {transform_indices = @transform_6, window_bounds = array<i64: 16, 32>}]} {
    %c0_i32 = arith.constant 0 : i32
    %0 = arith.cmpi eq, %arg1, %c0_i32 : i32
    %1 = arith.extui %0 : i1 to i32
    %c0_i32_0 = arith.constant 0 : i32
    %2 = arith.cmpi ne, %1, %c0_i32_0 : i32
    scf.if %2 {
      %cst_10 = arith.constant 0.000000e+00 : f32
      %14 = vector.broadcast %cst_10 : f32 to vector<16x32xf32>
      %c0_11 = arith.constant 0 : index
      %c0_12 = arith.constant 0 : index
      %15 = vector.load %arg9[%c0_11, %c0_12] : memref<16x32xf32, #tpu.memory_space<vmem>>, vector<16x32xf32>
      tpu.vector_store %arg9[%c0_11, %c0_12], %14 {strides = array<i32>} : memref<16x32xf32, #tpu.memory_space<vmem>>, vector<16x32xf32>,
    } else {
    }
    %c0 = arith.constant 0 : index
    %c0_1 = arith.constant 0 : index
    %3 = vector.load %arg9[%c0, %c0_1] : memref<16x32xf32, #tpu.memory_space<vmem>>, vector<16x32xf32>
    %c0_2 = arith.constant 0 : index
    %c0_3 = arith.constant 0 : index
    %4 = vector.load %arg2[%c0_2, %c0_3] : memref<16x64xf32, #tpu.memory_space<vmem>>, vector<16x64xf32>
    %5 = arith.truncf %4 : vector<16x64xf32> to vector<16x64xbf16>
    %c0_4 = arith.constant 0 : index
    %c0_5 = arith.constant 0 : index
    %6 = vector.load %arg3[%c0_4, %c0_5] : memref<64x32xf32, #tpu.memory_space<vmem>>, vector<64x32xf32>
    %7 = arith.truncf %6 : vector<64x32xf32> to vector<64x32xbf16>
    %cst = arith.constant dense<0.000000e+00> : vector<16x32xf32>
    %8 = tpu.matmul %5, %7, %cst {dimension_numbers = #tpu.dot_dimension_numbers<[1], [0], [0], [1], [0, 0, 1, 1], [], []>} : vector<16x64xbf16>, vector<64x32xbf16>, vector<16x32xf32> -> vector<16x32xf32>
    %9 = arith.addf %3, %8 : vector<16x32xf32>
    %c0_6 = arith.constant 0 : index
    %c0_7 = arith.constant 0 : index
    %10 = vector.load %arg9[%c0_6, %c0_7] : memref<16x32xf32, #tpu.memory_space<vmem>>, vector<16x32xf32>
    tpu.vector_store %arg9[%c0_6, %c0_7], %9 {strides = array<i32>} : memref<16x32xf32, #tpu.memory_space<vmem>>, vector<16x32xf32>,
    %c0_i32_8 = arith.constant 0 : i32
    %11 = arith.cmpi eq, %arg1, %c0_i32_8 : i32
    %12 = arith.extui %11 : i1 to i32
    %c0_i32_9 = arith.constant 0 : i32
    %13 = arith.cmpi ne, %12, %c0_i32_9 : i32
    scf.if %13 {
      %c0_10 = arith.constant 0 : index
      %c0_11 = arith.constant 0 : index
      %14 = vector.load %arg9[%c0_10, %c0_11] : memref<16x32xf32, #tpu.memory_space<vmem>>, vector<16x32xf32>
      %c0_12 = arith.constant 0 : index
      %c0_13 = arith.constant 0 : index
      %15 = vector.load %arg4[%c0_12, %c0_13] : memref<1x32xf32, #tpu.memory_space<vmem>>, vector<1x32xf32>
      %16 = vector.broadcast %15 : vector<1x32xf32> to vector<16x32xf32>
      %17 = arith.addf %14, %16 : vector<16x32xf32>
      %c0_14 = arith.constant 0 : index
      %c0_15 = arith.constant 0 : index
      %18 = vector.load %arg5[%c0_14, %c0_15] : memref<16x32xf32, #tpu.memory_space<vmem>>, vector<16x32xf32>
      %19 = arith.addf %17, %18 : vector<16x32xf32>
      %cst_16 = arith.constant dense<0.000000e+00> : vector<16xf32>
      %20 = vector.multi_reduction <add>, %19, %cst_16 [1] : vector<16x32xf32> to vector<16xf32>
      %21 = vector.shape_cast %20 : vector<16xf32> to vector<16x1xf32>
      %cst_17 = arith.constant 3.200000e+01 : f32
      %22 = vector.broadcast %cst_17 : f32 to vector<16x1xf32>
      %23 = arith.divf %21, %22 : vector<16x1xf32>
      %24 = vector.broadcast %23 : vector<16x1xf32> to vector<16x32xf32>
      %25 = arith.subf %19, %24 : vector<16x32xf32>
      %26 = arith.mulf %25, %25 : vector<16x32xf32>
      %cst_18 = arith.constant dense<0.000000e+00> : vector<16xf32>
      %27 = vector.multi_reduction <add>, %26, %cst_18 [1] : vector<16x32xf32> to vector<16xf32>
      %28 = vector.shape_cast %27 : vector<16xf32> to vector<16x1xf32>
      %cst_19 = arith.constant 3.200000e+01 : f32
      %29 = vector.broadcast %cst_19 : f32 to vector<16x1xf32>
      %30 = arith.divf %28, %29 : vector<16x1xf32>
      %cst_20 = arith.constant 9.99999974E-6 : f32
      %31 = vector.broadcast %cst_20 : f32 to vector<16x1xf32>
      %32 = arith.addf %30, %31 : vector<16x1xf32>
      %33 = math.rsqrt %32 : vector<16x1xf32>
      %34 = vector.broadcast %33 : vector<16x1xf32> to vector<16x32xf32>
      %35 = arith.mulf %25, %34 : vector<16x32xf32>
      %c0_21 = arith.constant 0 : index
      %c0_22 = arith.constant 0 : index
      %36 = vector.load %arg6[%c0_21, %c0_22] : memref<1x32xf32, #tpu.memory_space<vmem>>, vector<1x32xf32>
      %37 = vector.broadcast %36 : vector<1x32xf32> to vector<16x32xf32>
      %38 = arith.mulf %35, %37 : vector<16x32xf32>
      %c0_23 = arith.constant 0 : index
      %c0_24 = arith.constant 0 : index
      %39 = vector.load %arg7[%c0_23, %c0_24] : memref<1x32xf32, #tpu.memory_space<vmem>>, vector<1x32xf32>
      %40 = vector.broadcast %39 : vector<1x32xf32> to vector<16x32xf32>
      %41 = arith.addf %38, %40 : vector<16x32xf32>
      %c0_25 = arith.constant 0 : index
      %c0_26 = arith.constant 0 : index
      %42 = vector.load %arg8[%c0_25, %c0_26] : memref<16x32xf32, #tpu.memory_space<vmem>>, vector<16x32xf32>
      tpu.vector_store %arg8[%c0_25, %c0_26], %41 {strides = array<i32>} : memref<16x32xf32, #tpu.memory_space<vmem>>, vector<16x32xf32>,
    } else {
    }
    return
  }
  func.func @transform_0(%arg0: i32, %arg1: i32) -> (i32, i32) {
    %c0_i32 = arith.constant 0 : i32
    return %arg0, %arg1 : i32, i32
  }
  func.func @transform_1(%arg0: i32, %arg1: i32) -> (i32, i32) {
    %c0_i32 = arith.constant 0 : i32
    %c0_i32_0 = arith.constant 0 : i32
    return %arg1, %c0_i32 : i32, i32
  }
  func.func @transform_2(%arg0: i32, %arg1: i32) -> (i32, i32) {
    %c0_i32 = arith.constant 0 : i32
    %c0_i32_0 = arith.constant 0 : i32
    %c0_i32_1 = arith.constant 0 : i32
    return %c0_i32, %c0_i32_0 : i32, i32
  }
  func.func @transform_3(%arg0: i32, %arg1: i32) -> (i32, i32) {
    %c0_i32 = arith.constant 0 : i32
    %c0_i32_0 = arith.constant 0 : i32
    return %arg0, %c0_i32 : i32, i32
  }
  func.func @transform_4(%arg0: i32, %arg1: i32) -> (i32, i32) {
    %c0_i32 = arith.constant 0 : i32
    %c0_i32_0 = arith.constant 0 : i32
    %c0_i32_1 = arith.constant 0 : i32
    return %c0_i32, %c0_i32_0 : i32, i32
  }
  func.func @transform_5(%arg0: i32, %arg1: i32) -> (i32, i32) {
    %c0_i32 = arith.constant 0 : i32
    %c0_i32_0 = arith.constant 0 : i32
    %c0_i32_1 = arith.constant 0 : i32
    return %c0_i32, %c0_i32_0 : i32, i32
  }
  func.func @transform_6(%arg0: i32, %arg1: i32) -> (i32, i32) {
    %c0_i32 = arith.constant 0 : i32
    %c0_i32_0 = arith.constant 0 : i32
    return %arg0, %c0_i32 : i32, i32
  }
}

module attributes {stable_mosaic.version = 11 : i64} {
  func.func @_matmul_kernel(%arg0: i32, %arg1: i32, %arg2: i32, %arg3: memref<16x32xf32, #tpu.memory_space<vmem>>, %arg4: memref<32x64xf32, #tpu.memory_space<vmem>>, %arg5: memref<1x64xf32, #tpu.memory_space<vmem>>, %arg6: memref<16x64xf32, #tpu.memory_space<vmem>>, %arg7: memref<16x64xf32, #tpu.memory_space<vmem>>) attributes {dimension_semantics = [#tpu.dimension_semantics<parallel>, #tpu.dimension_semantics<parallel>, #tpu.dimension_semantics<arbitrary>], iteration_bounds = array<i64: 1, 1, 1>, scalar_prefetch = 0 : i64, scratch_operands = 1 : i64, tpu.core_type = #tpu.core_type<tc>, window_params = [{transform_indices = @transform_0, window_bounds = array<i64: 16, 32>}, {transform_indices = @transform_1, window_bounds = array<i64: 32, 64>}, {transform_indices = @transform_2, window_bounds = array<i64: 1, 64>}, {transform_indices = @transform_3, window_bounds = array<i64: 16, 64>}]} {
    %c0_i32 = arith.constant 0 : i32
    %0 = arith.cmpi eq, %arg2, %c0_i32 : i32
    %1 = arith.extui %0 : i1 to i32
    %c0_i32_0 = arith.constant 0 : i32
    %2 = arith.cmpi ne, %1, %c0_i32_0 : i32
    scf.if %2 {
      %cst_10 = arith.constant 0.000000e+00 : f32
      %14 = vector.broadcast %cst_10 : f32 to vector<16x64xf32>
      %c0_11 = arith.constant 0 : index
      %c0_12 = arith.constant 0 : index
      %15 = vector.load %arg7[%c0_11, %c0_12] : memref<16x64xf32, #tpu.memory_space<vmem>>, vector<16x64xf32>
      tpu.vector_store %arg7[%c0_11, %c0_12], %14 {strides = array<i32>} : memref<16x64xf32, #tpu.memory_space<vmem>>, vector<16x64xf32>,
    } else {
    }
    %c0 = arith.constant 0 : index
    %c0_1 = arith.constant 0 : index
    %3 = vector.load %arg7[%c0, %c0_1] : memref<16x64xf32, #tpu.memory_space<vmem>>, vector<16x64xf32>
    %c0_2 = arith.constant 0 : index
    %c0_3 = arith.constant 0 : index
    %4 = vector.load %arg3[%c0_2, %c0_3] : memref<16x32xf32, #tpu.memory_space<vmem>>, vector<16x32xf32>
    %5 = arith.truncf %4 : vector<16x32xf32> to vector<16x32xbf16>
    %c0_4 = arith.constant 0 : index
    %c0_5 = arith.constant 0 : index
    %6 = vector.load %arg4[%c0_4, %c0_5] : memref<32x64xf32, #tpu.memory_space<vmem>>, vector<32x64xf32>
    %7 = arith.truncf %6 : vector<32x64xf32> to vector<32x64xbf16>
    %cst = arith.constant dense<0.000000e+00> : vector<16x64xf32>
    %8 = tpu.matmul %5, %7, %cst {dimension_numbers = #tpu.dot_dimension_numbers<[1], [0], [0], [1], [0, 0, 1, 1], [], []>} : vector<16x32xbf16>, vector<32x64xbf16>, vector<16x64xf32> -> vector<16x64xf32>
    %9 = arith.addf %3, %8 : vector<16x64xf32>
    %c0_6 = arith.constant 0 : index
    %c0_7 = arith.constant 0 : index
    %10 = vector.load %arg7[%c0_6, %c0_7] : memref<16x64xf32, #tpu.memory_space<vmem>>, vector<16x64xf32>
    tpu.vector_store %arg7[%c0_6, %c0_7], %9 {strides = array<i32>} : memref<16x64xf32, #tpu.memory_space<vmem>>, vector<16x64xf32>,
    %c0_i32_8 = arith.constant 0 : i32
    %11 = arith.cmpi eq, %arg2, %c0_i32_8 : i32
    %12 = arith.extui %11 : i1 to i32
    %c0_i32_9 = arith.constant 0 : i32
    %13 = arith.cmpi ne, %12, %c0_i32_9 : i32
    scf.if %13 {
      %c0_10 = arith.constant 0 : index
      %c0_11 = arith.constant 0 : index
      %14 = vector.load %arg7[%c0_10, %c0_11] : memref<16x64xf32, #tpu.memory_space<vmem>>, vector<16x64xf32>
      %c0_12 = arith.constant 0 : index
      %c0_13 = arith.constant 0 : index
      %15 = vector.load %arg5[%c0_12, %c0_13] : memref<1x64xf32, #tpu.memory_space<vmem>>, vector<1x64xf32>
      %16 = vector.broadcast %15 : vector<1x64xf32> to vector<16x64xf32>
      %17 = arith.addf %14, %16 : vector<16x64xf32>
      %cst_14 = arith.constant 0.000000e+00 : f32
      %18 = vector.broadcast %cst_14 : f32 to vector<16x64xf32>
      %19 = arith.maximumf %17, %18 : vector<16x64xf32>
      %c0_15 = arith.constant 0 : index
      %c0_16 = arith.constant 0 : index
      %20 = vector.load %arg6[%c0_15, %c0_16] : memref<16x64xf32, #tpu.memory_space<vmem>>, vector<16x64xf32>
      tpu.vector_store %arg6[%c0_15, %c0_16], %19 {strides = array<i32>} : memref<16x64xf32, #tpu.memory_space<vmem>>, vector<16x64xf32>,
    } else {
    }
    return
  }
  func.func @transform_0(%arg0: i32, %arg1: i32, %arg2: i32) -> (i32, i32) {
    %c0_i32 = arith.constant 0 : i32
    return %arg0, %arg2 : i32, i32
  }
  func.func @transform_1(%arg0: i32, %arg1: i32, %arg2: i32) -> (i32, i32) {
    %c0_i32 = arith.constant 0 : i32
    return %arg2, %arg1 : i32, i32
  }
  func.func @transform_2(%arg0: i32, %arg1: i32, %arg2: i32) -> (i32, i32) {
    %c0_i32 = arith.constant 0 : i32
    %c0_i32_0 = arith.constant 0 : i32
    return %c0_i32, %arg1 : i32, i32
  }
  func.func @transform_3(%arg0: i32, %arg1: i32, %arg2: i32) -> (i32, i32) {
    %c0_i32 = arith.constant 0 : i32
    return %arg0, %arg1 : i32, i32
  }
}

module attributes {stable_mosaic.version = 11 : i64} {
  func.func @_matmul_add_ln_kernel(%arg0: i32, %arg1: i32, %arg2: memref<16x32xf32, #tpu.memory_space<vmem>>, %arg3: memref<32x32xf32, #tpu.memory_space<vmem>>, %arg4: memref<1x32xf32, #tpu.memory_space<vmem>>, %arg5: memref<16x32xf32, #tpu.memory_space<vmem>>, %arg6: memref<1x32xf32, #tpu.memory_space<vmem>>, %arg7: memref<1x32xf32, #tpu.memory_space<vmem>>, %arg8: memref<16x32xf32, #tpu.memory_space<vmem>>, %arg9: memref<16x32xf32, #tpu.memory_space<vmem>>) attributes {dimension_semantics = [#tpu.dimension_semantics<parallel>, #tpu.dimension_semantics<arbitrary>], iteration_bounds = array<i64: 1, 1>, scalar_prefetch = 0 : i64, scratch_operands = 1 : i64, tpu.core_type = #tpu.core_type<tc>, window_params = [{transform_indices = @transform_0, window_bounds = array<i64: 16, 32>}, {transform_indices = @transform_1, window_bounds = array<i64: 32, 32>}, {pipeline_mode = #tpu.pipeline_mode<synchronous>, transform_indices = @transform_2, window_bounds = array<i64: 1, 32>}, {transform_indices = @transform_3, window_bounds = array<i64: 16, 32>}, {pipeline_mode = #tpu.pipeline_mode<synchronous>, transform_indices = @transform_4, window_bounds = array<i64: 1, 32>}, {pipeline_mode = #tpu.pipeline_mode<synchronous>, transform_indices = @transform_5, window_bounds = array<i64: 1, 32>}, {transform_indices = @transform_6, window_bounds = array<i64: 16, 32>}]} {
    %c0_i32 = arith.constant 0 : i32
    %0 = arith.cmpi eq, %arg1, %c0_i32 : i32
    %1 = arith.extui %0 : i1 to i32
    %c0_i32_0 = arith.constant 0 : i32
    %2 = arith.cmpi ne, %1, %c0_i32_0 : i32
    scf.if %2 {
      %cst_10 = arith.constant 0.000000e+00 : f32
      %14 = vector.broadcast %cst_10 : f32 to vector<16x32xf32>
      %c0_11 = arith.constant 0 : index
      %c0_12 = arith.constant 0 : index
      %15 = vector.load %arg9[%c0_11, %c0_12] : memref<16x32xf32, #tpu.memory_space<vmem>>, vector<16x32xf32>
      tpu.vector_store %arg9[%c0_11, %c0_12], %14 {strides = array<i32>} : memref<16x32xf32, #tpu.memory_space<vmem>>, vector<16x32xf32>,
    } else {
    }
    %c0 = arith.constant 0 : index
    %c0_1 = arith.constant 0 : index
    %3 = vector.load %arg9[%c0, %c0_1] : memref<16x32xf32, #tpu.memory_space<vmem>>, vector<16x32xf32>
    %c0_2 = arith.constant 0 : index
    %c0_3 = arith.constant 0 : index
    %4 = vector.load %arg2[%c0_2, %c0_3] : memref<16x32xf32, #tpu.memory_space<vmem>>, vector<16x32xf32>
    %5 = arith.truncf %4 : vector<16x32xf32> to vector<16x32xbf16>
    %c0_4 = arith.constant 0 : index
    %c0_5 = arith.constant 0 : index
    %6 = vector.load %arg3[%c0_4, %c0_5] : memref<32x32xf32, #tpu.memory_space<vmem>>, vector<32x32xf32>
    %7 = arith.truncf %6 : vector<32x32xf32> to vector<32x32xbf16>
    %cst = arith.constant dense<0.000000e+00> : vector<16x32xf32>
    %8 = tpu.matmul %5, %7, %cst {dimension_numbers = #tpu.dot_dimension_numbers<[1], [0], [0], [1], [0, 0, 1, 1], [], []>} : vector<16x32xbf16>, vector<32x32xbf16>, vector<16x32xf32> -> vector<16x32xf32>
    %9 = arith.addf %3, %8 : vector<16x32xf32>
    %c0_6 = arith.constant 0 : index
    %c0_7 = arith.constant 0 : index
    %10 = vector.load %arg9[%c0_6, %c0_7] : memref<16x32xf32, #tpu.memory_space<vmem>>, vector<16x32xf32>
    tpu.vector_store %arg9[%c0_6, %c0_7], %9 {strides = array<i32>} : memref<16x32xf32, #tpu.memory_space<vmem>>, vector<16x32xf32>,
    %c0_i32_8 = arith.constant 0 : i32
    %11 = arith.cmpi eq, %arg1, %c0_i32_8 : i32
    %12 = arith.extui %11 : i1 to i32
    %c0_i32_9 = arith.constant 0 : i32
    %13 = arith.cmpi ne, %12, %c0_i32_9 : i32
    scf.if %13 {
      %c0_10 = arith.constant 0 : index
      %c0_11 = arith.constant 0 : index
      %14 = vector.load %arg9[%c0_10, %c0_11] : memref<16x32xf32, #tpu.memory_space<vmem>>, vector<16x32xf32>
      %c0_12 = arith.constant 0 : index
      %c0_13 = arith.constant 0 : index
      %15 = vector.load %arg4[%c0_12, %c0_13] : memref<1x32xf32, #tpu.memory_space<vmem>>, vector<1x32xf32>
      %16 = vector.broadcast %15 : vector<1x32xf32> to vector<16x32xf32>
      %17 = arith.addf %14, %16 : vector<16x32xf32>
      %c0_14 = arith.constant 0 : index
      %c0_15 = arith.constant 0 : index
      %18 = vector.load %arg5[%c0_14, %c0_15] : memref<16x32xf32, #tpu.memory_space<vmem>>, vector<16x32xf32>
      %19 = arith.addf %17, %18 : vector<16x32xf32>
      %cst_16 = arith.constant dense<0.000000e+00> : vector<16xf32>
      %20 = vector.multi_reduction <add>, %19, %cst_16 [1] : vector<16x32xf32> to vector<16xf32>
      %21 = vector.shape_cast %20 : vector<16xf32> to vector<16x1xf32>
      %cst_17 = arith.constant 3.200000e+01 : f32
      %22 = vector.broadcast %cst_17 : f32 to vector<16x1xf32>
      %23 = arith.divf %21, %22 : vector<16x1xf32>
      %24 = vector.broadcast %23 : vector<16x1xf32> to vector<16x32xf32>
      %25 = arith.subf %19, %24 : vector<16x32xf32>
      %26 = arith.mulf %25, %25 : vector<16x32xf32>
      %cst_18 = arith.constant dense<0.000000e+00> : vector<16xf32>
      %27 = vector.multi_reduction <add>, %26, %cst_18 [1] : vector<16x32xf32> to vector<16xf32>
      %28 = vector.shape_cast %27 : vector<16xf32> to vector<16x1xf32>
      %cst_19 = arith.constant 3.200000e+01 : f32
      %29 = vector.broadcast %cst_19 : f32 to vector<16x1xf32>
      %30 = arith.divf %28, %29 : vector<16x1xf32>
      %cst_20 = arith.constant 9.99999974E-6 : f32
      %31 = vector.broadcast %cst_20 : f32 to vector<16x1xf32>
      %32 = arith.addf %30, %31 : vector<16x1xf32>
      %33 = math.rsqrt %32 : vector<16x1xf32>
      %34 = vector.broadcast %33 : vector<16x1xf32> to vector<16x32xf32>
      %35 = arith.mulf %25, %34 : vector<16x32xf32>
      %c0_21 = arith.constant 0 : index
      %c0_22 = arith.constant 0 : index
      %36 = vector.load %arg6[%c0_21, %c0_22] : memref<1x32xf32, #tpu.memory_space<vmem>>, vector<1x32xf32>
      %37 = vector.broadcast %36 : vector<1x32xf32> to vector<16x32xf32>
      %38 = arith.mulf %35, %37 : vector<16x32xf32>
      %c0_23 = arith.constant 0 : index
      %c0_24 = arith.constant 0 : index
      %39 = vector.load %arg7[%c0_23, %c0_24] : memref<1x32xf32, #tpu.memory_space<vmem>>, vector<1x32xf32>
      %40 = vector.broadcast %39 : vector<1x32xf32> to vector<16x32xf32>
      %41 = arith.addf %38, %40 : vector<16x32xf32>
      %c0_25 = arith.constant 0 : index
      %c0_26 = arith.constant 0 : index
      %42 = vector.load %arg8[%c0_25, %c0_26] : memref<16x32xf32, #tpu.memory_space<vmem>>, vector<16x32xf32>
      tpu.vector_store %arg8[%c0_25, %c0_26], %41 {strides = array<i32>} : memref<16x32xf32, #tpu.memory_space<vmem>>, vector<16x32xf32>,
    } else {
    }
    return
  }
  func.func @transform_0(%arg0: i32, %arg1: i32) -> (i32, i32) {
    %c0_i32 = arith.constant 0 : i32
    return %arg0, %arg1 : i32, i32
  }
  func.func @transform_1(%arg0: i32, %arg1: i32) -> (i32, i32) {
    %c0_i32 = arith.constant 0 : i32
    %c0_i32_0 = arith.constant 0 : i32
    return %arg1, %c0_i32 : i32, i32
  }
  func.func @transform_2(%arg0: i32, %arg1: i32) -> (i32, i32) {
    %c0_i32 = arith.constant 0 : i32
    %c0_i32_0 = arith.constant 0 : i32
    %c0_i32_1 = arith.constant 0 : i32
    return %c0_i32, %c0_i32_0 : i32, i32
  }
  func.func @transform_3(%arg0: i32, %arg1: i32) -> (i32, i32) {
    %c0_i32 = arith.constant 0 : i32
    %c0_i32_0 = arith.constant 0 : i32
    return %arg0, %c0_i32 : i32, i32
  }
  func.func @transform_4(%arg0: i32, %arg1: i32) -> (i32, i32) {
    %c0_i32 = arith.constant 0 : i32
    %c0_i32_0 = arith.constant 0 : i32
    %c0_i32_1 = arith.constant 0 : i32
    return %c0_i32, %c0_i32_0 : i32, i32
  }
  func.func @transform_5(%arg0: i32, %arg1: i32) -> (i32, i32) {
    %c0_i32 = arith.constant 0 : i32
    %c0_i32_0 = arith.constant 0 : i32
    %c0_i32_1 = arith.constant 0 : i32
    return %c0_i32, %c0_i32_0 : i32, i32
  }
  func.func @transform_6(%arg0: i32, %arg1: i32) -> (i32, i32) {
    %c0_i32 = arith.constant 0 : i32
    %c0_i32_0 = arith.constant 0 : i32
    return %arg0, %c0_i32 : i32, i32
  }
}

module attributes {stable_mosaic.version = 11 : i64} {
  func.func @_matmul_add_ln_kernel(%arg0: i32, %arg1: i32, %arg2: memref<16x64xf32, #tpu.memory_space<vmem>>, %arg3: memref<64x32xf32, #tpu.memory_space<vmem>>, %arg4: memref<1x32xf32, #tpu.memory_space<vmem>>, %arg5: memref<16x32xf32, #tpu.memory_space<vmem>>, %arg6: memref<1x32xf32, #tpu.memory_space<vmem>>, %arg7: memref<1x32xf32, #tpu.memory_space<vmem>>, %arg8: memref<16x32xf32, #tpu.memory_space<vmem>>, %arg9: memref<16x32xf32, #tpu.memory_space<vmem>>) attributes {dimension_semantics = [#tpu.dimension_semantics<parallel>, #tpu.dimension_semantics<arbitrary>], iteration_bounds = array<i64: 1, 1>, scalar_prefetch = 0 : i64, scratch_operands = 1 : i64, tpu.core_type = #tpu.core_type<tc>, window_params = [{transform_indices = @transform_0, window_bounds = array<i64: 16, 64>}, {transform_indices = @transform_1, window_bounds = array<i64: 64, 32>}, {pipeline_mode = #tpu.pipeline_mode<synchronous>, transform_indices = @transform_2, window_bounds = array<i64: 1, 32>}, {transform_indices = @transform_3, window_bounds = array<i64: 16, 32>}, {pipeline_mode = #tpu.pipeline_mode<synchronous>, transform_indices = @transform_4, window_bounds = array<i64: 1, 32>}, {pipeline_mode = #tpu.pipeline_mode<synchronous>, transform_indices = @transform_5, window_bounds = array<i64: 1, 32>}, {transform_indices = @transform_6, window_bounds = array<i64: 16, 32>}]} {
    %c0_i32 = arith.constant 0 : i32
    %0 = arith.cmpi eq, %arg1, %c0_i32 : i32
    %1 = arith.extui %0 : i1 to i32
    %c0_i32_0 = arith.constant 0 : i32
    %2 = arith.cmpi ne, %1, %c0_i32_0 : i32
    scf.if %2 {
      %cst_10 = arith.constant 0.000000e+00 : f32
      %14 = vector.broadcast %cst_10 : f32 to vector<16x32xf32>
      %c0_11 = arith.constant 0 : index
      %c0_12 = arith.constant 0 : index
      %15 = vector.load %arg9[%c0_11, %c0_12] : memref<16x32xf32, #tpu.memory_space<vmem>>, vector<16x32xf32>
      tpu.vector_store %arg9[%c0_11, %c0_12], %14 {strides = array<i32>} : memref<16x32xf32, #tpu.memory_space<vmem>>, vector<16x32xf32>,
    } else {
    }
    %c0 = arith.constant 0 : index
    %c0_1 = arith.constant 0 : index
    %3 = vector.load %arg9[%c0, %c0_1] : memref<16x32xf32, #tpu.memory_space<vmem>>, vector<16x32xf32>
    %c0_2 = arith.constant 0 : index
    %c0_3 = arith.constant 0 : index
    %4 = vector.load %arg2[%c0_2, %c0_3] : memref<16x64xf32, #tpu.memory_space<vmem>>, vector<16x64xf32>
    %5 = arith.truncf %4 : vector<16x64xf32> to vector<16x64xbf16>
    %c0_4 = arith.constant 0 : index
    %c0_5 = arith.constant 0 : index
    %6 = vector.load %arg3[%c0_4, %c0_5] : memref<64x32xf32, #tpu.memory_space<vmem>>, vector<64x32xf32>
    %7 = arith.truncf %6 : vector<64x32xf32> to vector<64x32xbf16>
    %cst = arith.constant dense<0.000000e+00> : vector<16x32xf32>
    %8 = tpu.matmul %5, %7, %cst {dimension_numbers = #tpu.dot_dimension_numbers<[1], [0], [0], [1], [0, 0, 1, 1], [], []>} : vector<16x64xbf16>, vector<64x32xbf16>, vector<16x32xf32> -> vector<16x32xf32>
    %9 = arith.addf %3, %8 : vector<16x32xf32>
    %c0_6 = arith.constant 0 : index
    %c0_7 = arith.constant 0 : index
    %10 = vector.load %arg9[%c0_6, %c0_7] : memref<16x32xf32, #tpu.memory_space<vmem>>, vector<16x32xf32>
    tpu.vector_store %arg9[%c0_6, %c0_7], %9 {strides = array<i32>} : memref<16x32xf32, #tpu.memory_space<vmem>>, vector<16x32xf32>,
    %c0_i32_8 = arith.constant 0 : i32
    %11 = arith.cmpi eq, %arg1, %c0_i32_8 : i32
    %12 = arith.extui %11 : i1 to i32
    %c0_i32_9 = arith.constant 0 : i32
    %13 = arith.cmpi ne, %12, %c0_i32_9 : i32
    scf.if %13 {
      %c0_10 = arith.constant 0 : index
      %c0_11 = arith.constant 0 : index
      %14 = vector.load %arg9[%c0_10, %c0_11] : memref<16x32xf32, #tpu.memory_space<vmem>>, vector<16x32xf32>
      %c0_12 = arith.constant 0 : index
      %c0_13 = arith.constant 0 : index
      %15 = vector.load %arg4[%c0_12, %c0_13] : memref<1x32xf32, #tpu.memory_space<vmem>>, vector<1x32xf32>
      %16 = vector.broadcast %15 : vector<1x32xf32> to vector<16x32xf32>
      %17 = arith.addf %14, %16 : vector<16x32xf32>
      %c0_14 = arith.constant 0 : index
      %c0_15 = arith.constant 0 : index
      %18 = vector.load %arg5[%c0_14, %c0_15] : memref<16x32xf32, #tpu.memory_space<vmem>>, vector<16x32xf32>
      %19 = arith.addf %17, %18 : vector<16x32xf32>
      %cst_16 = arith.constant dense<0.000000e+00> : vector<16xf32>
      %20 = vector.multi_reduction <add>, %19, %cst_16 [1] : vector<16x32xf32> to vector<16xf32>
      %21 = vector.shape_cast %20 : vector<16xf32> to vector<16x1xf32>
      %cst_17 = arith.constant 3.200000e+01 : f32
      %22 = vector.broadcast %cst_17 : f32 to vector<16x1xf32>
      %23 = arith.divf %21, %22 : vector<16x1xf32>
      %24 = vector.broadcast %23 : vector<16x1xf32> to vector<16x32xf32>
      %25 = arith.subf %19, %24 : vector<16x32xf32>
      %26 = arith.mulf %25, %25 : vector<16x32xf32>
      %cst_18 = arith.constant dense<0.000000e+00> : vector<16xf32>
      %27 = vector.multi_reduction <add>, %26, %cst_18 [1] : vector<16x32xf32> to vector<16xf32>
      %28 = vector.shape_cast %27 : vector<16xf32> to vector<16x1xf32>
      %cst_19 = arith.constant 3.200000e+01 : f32
      %29 = vector.broadcast %cst_19 : f32 to vector<16x1xf32>
      %30 = arith.divf %28, %29 : vector<16x1xf32>
      %cst_20 = arith.constant 9.99999974E-6 : f32
      %31 = vector.broadcast %cst_20 : f32 to vector<16x1xf32>
      %32 = arith.addf %30, %31 : vector<16x1xf32>
      %33 = math.rsqrt %32 : vector<16x1xf32>
      %34 = vector.broadcast %33 : vector<16x1xf32> to vector<16x32xf32>
      %35 = arith.mulf %25, %34 : vector<16x32xf32>
      %c0_21 = arith.constant 0 : index
      %c0_22 = arith.constant 0 : index
      %36 = vector.load %arg6[%c0_21, %c0_22] : memref<1x32xf32, #tpu.memory_space<vmem>>, vector<1x32xf32>
      %37 = vector.broadcast %36 : vector<1x32xf32> to vector<16x32xf32>
      %38 = arith.mulf %35, %37 : vector<16x32xf32>
      %c0_23 = arith.constant 0 : index
      %c0_24 = arith.constant 0 : index
      %39 = vector.load %arg7[%c0_23, %c0_24] : memref<1x32xf32, #tpu.memory_space<vmem>>, vector<1x32xf32>
      %40 = vector.broadcast %39 : vector<1x32xf32> to vector<16x32xf32>
      %41 = arith.addf %38, %40 : vector<16x32xf32>
      %c0_25 = arith.constant 0 : index
      %c0_26 = arith.constant 0 : index
      %42 = vector.load %arg8[%c0_25, %c0_26] : memref<16x32xf32, #tpu.memory_space<vmem>>, vector<16x32xf32>
      tpu.vector_store %arg8[%c0_25, %c0_26], %41 {strides = array<i32>} : memref<16x32xf32, #tpu.memory_space<vmem>>, vector<16x32xf32>,
    } else {
    }
    return
  }
  func.func @transform_0(%arg0: i32, %arg1: i32) -> (i32, i32) {
    %c0_i32 = arith.constant 0 : i32
    return %arg0, %arg1 : i32, i32
  }
  func.func @transform_1(%arg0: i32, %arg1: i32) -> (i32, i32) {
    %c0_i32 = arith.constant 0 : i32
    %c0_i32_0 = arith.constant 0 : i32
    return %arg1, %c0_i32 : i32, i32
  }
  func.func @transform_2(%arg0: i32, %arg1: i32) -> (i32, i32) {
    %c0_i32 = arith.constant 0 : i32
    %c0_i32_0 = arith.constant 0 : i32
    %c0_i32_1 = arith.constant 0 : i32
    return %c0_i32, %c0_i32_0 : i32, i32
  }
  func.func @transform_3(%arg0: i32, %arg1: i32) -> (i32, i32) {
    %c0_i32 = arith.constant 0 : i32
    %c0_i32_0 = arith.constant 0 : i32
    return %arg0, %c0_i32 : i32, i32
  }
  func.func @transform_4(%arg0: i32, %arg1: i32) -> (i32, i32) {
    %c0_i32 = arith.constant 0 : i32
    %c0_i32_0 = arith.constant 0 : i32
    %c0_i32_1 = arith.constant 0 : i32
    return %c0_i32, %c0_i32_0 : i32, i32
  }
  func.func @transform_5(%arg0: i32, %arg1: i32) -> (i32, i32) {
    %c0_i32 = arith.constant 0 : i32
    %c0_i32_0 = arith.constant 0 : i32
    %c0_i32_1 = arith.constant 0 : i32
    return %c0_i32, %c0_i32_0 : i32, i32
  }
  func.func @transform_6(%arg0: i32, %arg1: i32) -> (i32, i32) {
    %c0_i32 = arith.constant 0 : i32
    %c0_i32_0 = arith.constant 0 : i32
    return %arg0, %c0_i32 : i32, i32
  }
}

module attributes {stable_mosaic.version = 11 : i64} {
  func.func @_split_matmul_kernel(%arg0: i32, %arg1: i32, %arg2: i32, %arg3: memref<16x32xf32, #tpu.memory_space<vmem>>, %arg4: memref<1x32x32xf32, #tpu.memory_space<vmem>>, %arg5: memref<1x1x32xf32, #tpu.memory_space<vmem>>, %arg6: memref<1x16x32xf32, #tpu.memory_space<vmem>>, %arg7: memref<16x32xf32, #tpu.memory_space<vmem>>) attributes {dimension_semantics = [#tpu.dimension_semantics<parallel>, #tpu.dimension_semantics<parallel>, #tpu.dimension_semantics<arbitrary>], iteration_bounds = array<i64: 1, 2, 1>, scalar_prefetch = 0 : i64, scratch_operands = 1 : i64, tpu.core_type = #tpu.core_type<tc>, window_params = [{transform_indices = @transform_0, window_bounds = array<i64: 16, 32>}, {transform_indices = @transform_1, window_bounds = array<i64: 1, 32, 32>}, {transform_indices = @transform_2, window_bounds = array<i64: 1, 1, 32>}, {transform_indices = @transform_3, window_bounds = array<i64: 1, 16, 32>}]} {
    %c0_i32 = arith.constant 0 : i32
    %0 = arith.cmpi eq, %arg2, %c0_i32 : i32
    %1 = arith.extui %0 : i1 to i32
    %c0_i32_0 = arith.constant 0 : i32
    %2 = arith.cmpi ne, %1, %c0_i32_0 : i32
    scf.if %2 {
      %cst_11 = arith.constant 0.000000e+00 : f32
      %15 = vector.broadcast %cst_11 : f32 to vector<16x32xf32>
      %c0_12 = arith.constant 0 : index
      %c0_13 = arith.constant 0 : index
      %16 = vector.load %arg7[%c0_12, %c0_13] : memref<16x32xf32, #tpu.memory_space<vmem>>, vector<16x32xf32>
      tpu.vector_store %arg7[%c0_12, %c0_13], %15 {strides = array<i32>} : memref<16x32xf32, #tpu.memory_space<vmem>>, vector<16x32xf32>,
    } else {
    }
    %c0 = arith.constant 0 : index
    %c0_1 = arith.constant 0 : index
    %3 = vector.load %arg7[%c0, %c0_1] : memref<16x32xf32, #tpu.memory_space<vmem>>, vector<16x32xf32>
    %c0_2 = arith.constant 0 : index
    %c0_3 = arith.constant 0 : index
    %4 = vector.load %arg3[%c0_2, %c0_3] : memref<16x32xf32, #tpu.memory_space<vmem>>, vector<16x32xf32>
    %5 = arith.truncf %4 : vector<16x32xf32> to vector<16x32xbf16>
    %c0_4 = arith.constant 0 : index
    %c0_5 = arith.constant 0 : index
    %c0_6 = arith.constant 0 : index
    %6 = vector.load %arg4[%c0_4, %c0_5, %c0_6] : memref<1x32x32xf32, #tpu.memory_space<vmem>>, vector<1x32x32xf32>
    %7 = vector.shape_cast %6 : vector<1x32x32xf32> to vector<32x32xf32>
    %8 = arith.truncf %7 : vector<32x32xf32> to vector<32x32xbf16>
    %cst = arith.constant dense<0.000000e+00> : vector<16x32xf32>
    %9 = tpu.matmul %5, %8, %cst {dimension_numbers = #tpu.dot_dimension_numbers<[1], [0], [0], [1], [0, 0, 1, 1], [], []>} : vector<16x32xbf16>, vector<32x32xbf16>, vector<16x32xf32> -> vector<16x32xf32>
    %10 = arith.addf %3, %9 : vector<16x32xf32>
    %c0_7 = arith.constant 0 : index
    %c0_8 = arith.constant 0 : index
    %11 = vector.load %arg7[%c0_7, %c0_8] : memref<16x32xf32, #tpu.memory_space<vmem>>, vector<16x32xf32>
    tpu.vector_store %arg7[%c0_7, %c0_8], %10 {strides = array<i32>} : memref<16x32xf32, #tpu.memory_space<vmem>>, vector<16x32xf32>,
    %c0_i32_9 = arith.constant 0 : i32
    %12 = arith.cmpi eq, %arg2, %c0_i32_9 : i32
    %13 = arith.extui %12 : i1 to i32
    %c0_i32_10 = arith.constant 0 : i32
    %14 = arith.cmpi ne, %13, %c0_i32_10 : i32
    scf.if %14 {
      %c0_11 = arith.constant 0 : index
      %c0_12 = arith.constant 0 : index
      %15 = vector.load %arg7[%c0_11, %c0_12] : memref<16x32xf32, #tpu.memory_space<vmem>>, vector<16x32xf32>
      %c0_13 = arith.constant 0 : index
      %c0_14 = arith.constant 0 : index
      %c0_15 = arith.constant 0 : index
      %16 = vector.load %arg5[%c0_13, %c0_14, %c0_15] : memref<1x1x32xf32, #tpu.memory_space<vmem>>, vector<1x1x32xf32>
      %17 = vector.shape_cast %16 : vector<1x1x32xf32> to vector<1x32xf32>
      %18 = vector.broadcast %17 : vector<1x32xf32> to vector<16x32xf32>
      %19 = arith.addf %15, %18 : vector<16x32xf32>
      %c0_16 = arith.constant 0 : index
      %c0_17 = arith.constant 0 : index
      %c0_18 = arith.constant 0 : index
      %20 = vector.load %arg6[%c0_16, %c0_17, %c0_18] : memref<1x16x32xf32, #tpu.memory_space<vmem>>, vector<1x16x32xf32>
      %21 = vector.shape_cast %20 : vector<1x16x32xf32> to vector<16x32xf32>
      %22 = vector.shape_cast %19 : vector<16x32xf32> to vector<1x16x32xf32>
      tpu.vector_store %arg6[%c0_16, %c0_17, %c0_18], %22 {strides = array<i32>} : memref<1x16x32xf32, #tpu.memory_space<vmem>>, vector<1x16x32xf32>,
    } else {
    }
    return
  }
  func.func @transform_0(%arg0: i32, %arg1: i32, %arg2: i32) -> (i32, i32) {
    %c0_i32 = arith.constant 0 : i32
    return %arg0, %arg2 : i32, i32
  }
  func.func @transform_1(%arg0: i32, %arg1: i32, %arg2: i32) -> (i32, i32, i32) {
    %c0_i32 = arith.constant 0 : i32
    %c0_i32_0 = arith.constant 0 : i32
    return %arg1, %arg2, %c0_i32 : i32, i32, i32
  }
  func.func @transform_2(%arg0: i32, %arg1: i32, %arg2: i32) -> (i32, i32, i32) {
    %c0_i32 = arith.constant 0 : i32
    %c0_i32_0 = arith.constant 0 : i32
    %c0_i32_1 = arith.constant 0 : i32
    return %arg1, %c0_i32, %c0_i32_0 : i32, i32, i32
  }
  func.func @transform_3(%arg0: i32, %arg1: i32, %arg2: i32) -> (i32, i32, i32) {
    %c0_i32 = arith.constant 0 : i32
    %c0_i32_0 = arith.constant 0 : i32
    return %arg1, %arg0, %c0_i32 : i32, i32, i32
  }
}

module attributes {stable_mosaic.version = 11 : i64} {
  func.func @_matmul_add_ln_kernel(%arg0: i32, %arg1: i32, %arg2: memref<16x32xf32, #tpu.memory_space<vmem>>, %arg3: memref<32x32xf32, #tpu.memory_space<vmem>>, %arg4: memref<1x32xf32, #tpu.memory_space<vmem>>, %arg5: memref<16x32xf32, #tpu.memory_space<vmem>>, %arg6: memref<1x32xf32, #tpu.memory_space<vmem>>, %arg7: memref<1x32xf32, #tpu.memory_space<vmem>>, %arg8: memref<16x32xf32, #tpu.memory_space<vmem>>, %arg9: memref<16x32xf32, #tpu.memory_space<vmem>>) attributes {dimension_semantics = [#tpu.dimension_semantics<parallel>, #tpu.dimension_semantics<arbitrary>], iteration_bounds = array<i64: 1, 1>, scalar_prefetch = 0 : i64, scratch_operands = 1 : i64, tpu.core_type = #tpu.core_type<tc>, window_params = [{transform_indices = @transform_0, window_bounds = array<i64: 16, 32>}, {transform_indices = @transform_1, window_bounds = array<i64: 32, 32>}, {pipeline_mode = #tpu.pipeline_mode<synchronous>, transform_indices = @transform_2, window_bounds = array<i64: 1, 32>}, {transform_indices = @transform_3, window_bounds = array<i64: 16, 32>}, {pipeline_mode = #tpu.pipeline_mode<synchronous>, transform_indices = @transform_4, window_bounds = array<i64: 1, 32>}, {pipeline_mode = #tpu.pipeline_mode<synchronous>, transform_indices = @transform_5, window_bounds = array<i64: 1, 32>}, {transform_indices = @transform_6, window_bounds = array<i64: 16, 32>}]} {
    %c0_i32 = arith.constant 0 : i32
    %0 = arith.cmpi eq, %arg1, %c0_i32 : i32
    %1 = arith.extui %0 : i1 to i32
    %c0_i32_0 = arith.constant 0 : i32
    %2 = arith.cmpi ne, %1, %c0_i32_0 : i32
    scf.if %2 {
      %cst_10 = arith.constant 0.000000e+00 : f32
      %14 = vector.broadcast %cst_10 : f32 to vector<16x32xf32>
      %c0_11 = arith.constant 0 : index
      %c0_12 = arith.constant 0 : index
      %15 = vector.load %arg9[%c0_11, %c0_12] : memref<16x32xf32, #tpu.memory_space<vmem>>, vector<16x32xf32>
      tpu.vector_store %arg9[%c0_11, %c0_12], %14 {strides = array<i32>} : memref<16x32xf32, #tpu.memory_space<vmem>>, vector<16x32xf32>,
    } else {
    }
    %c0 = arith.constant 0 : index
    %c0_1 = arith.constant 0 : index
    %3 = vector.load %arg9[%c0, %c0_1] : memref<16x32xf32, #tpu.memory_space<vmem>>, vector<16x32xf32>
    %c0_2 = arith.constant 0 : index
    %c0_3 = arith.constant 0 : index
    %4 = vector.load %arg2[%c0_2, %c0_3] : memref<16x32xf32, #tpu.memory_space<vmem>>, vector<16x32xf32>
    %5 = arith.truncf %4 : vector<16x32xf32> to vector<16x32xbf16>
    %c0_4 = arith.constant 0 : index
    %c0_5 = arith.constant 0 : index
    %6 = vector.load %arg3[%c0_4, %c0_5] : memref<32x32xf32, #tpu.memory_space<vmem>>, vector<32x32xf32>
    %7 = arith.truncf %6 : vector<32x32xf32> to vector<32x32xbf16>
    %cst = arith.constant dense<0.000000e+00> : vector<16x32xf32>
    %8 = tpu.matmul %5, %7, %cst {dimension_numbers = #tpu.dot_dimension_numbers<[1], [0], [0], [1], [0, 0, 1, 1], [], []>} : vector<16x32xbf16>, vector<32x32xbf16>, vector<16x32xf32> -> vector<16x32xf32>
    %9 = arith.addf %3, %8 : vector<16x32xf32>
    %c0_6 = arith.constant 0 : index
    %c0_7 = arith.constant 0 : index
    %10 = vector.load %arg9[%c0_6, %c0_7] : memref<16x32xf32, #tpu.memory_space<vmem>>, vector<16x32xf32>
    tpu.vector_store %arg9[%c0_6, %c0_7], %9 {strides = array<i32>} : memref<16x32xf32, #tpu.memory_space<vmem>>, vector<16x32xf32>,
    %c0_i32_8 = arith.constant 0 : i32
    %11 = arith.cmpi eq, %arg1, %c0_i32_8 : i32
    %12 = arith.extui %11 : i1 to i32
    %c0_i32_9 = arith.constant 0 : i32
    %13 = arith.cmpi ne, %12, %c0_i32_9 : i32
    scf.if %13 {
      %c0_10 = arith.constant 0 : index
      %c0_11 = arith.constant 0 : index
      %14 = vector.load %arg9[%c0_10, %c0_11] : memref<16x32xf32, #tpu.memory_space<vmem>>, vector<16x32xf32>
      %c0_12 = arith.constant 0 : index
      %c0_13 = arith.constant 0 : index
      %15 = vector.load %arg4[%c0_12, %c0_13] : memref<1x32xf32, #tpu.memory_space<vmem>>, vector<1x32xf32>
      %16 = vector.broadcast %15 : vector<1x32xf32> to vector<16x32xf32>
      %17 = arith.addf %14, %16 : vector<16x32xf32>
      %c0_14 = arith.constant 0 : index
      %c0_15 = arith.constant 0 : index
      %18 = vector.load %arg5[%c0_14, %c0_15] : memref<16x32xf32, #tpu.memory_space<vmem>>, vector<16x32xf32>
      %19 = arith.addf %17, %18 : vector<16x32xf32>
      %cst_16 = arith.constant dense<0.000000e+00> : vector<16xf32>
      %20 = vector.multi_reduction <add>, %19, %cst_16 [1] : vector<16x32xf32> to vector<16xf32>
      %21 = vector.shape_cast %20 : vector<16xf32> to vector<16x1xf32>
      %cst_17 = arith.constant 3.200000e+01 : f32
      %22 = vector.broadcast %cst_17 : f32 to vector<16x1xf32>
      %23 = arith.divf %21, %22 : vector<16x1xf32>
      %24 = vector.broadcast %23 : vector<16x1xf32> to vector<16x32xf32>
      %25 = arith.subf %19, %24 : vector<16x32xf32>
      %26 = arith.mulf %25, %25 : vector<16x32xf32>
      %cst_18 = arith.constant dense<0.000000e+00> : vector<16xf32>
      %27 = vector.multi_reduction <add>, %26, %cst_18 [1] : vector<16x32xf32> to vector<16xf32>
      %28 = vector.shape_cast %27 : vector<16xf32> to vector<16x1xf32>
      %cst_19 = arith.constant 3.200000e+01 : f32
      %29 = vector.broadcast %cst_19 : f32 to vector<16x1xf32>
      %30 = arith.divf %28, %29 : vector<16x1xf32>
      %cst_20 = arith.constant 9.99999974E-6 : f32
      %31 = vector.broadcast %cst_20 : f32 to vector<16x1xf32>
      %32 = arith.addf %30, %31 : vector<16x1xf32>
      %33 = math.rsqrt %32 : vector<16x1xf32>
      %34 = vector.broadcast %33 : vector<16x1xf32> to vector<16x32xf32>
      %35 = arith.mulf %25, %34 : vector<16x32xf32>
      %c0_21 = arith.constant 0 : index
      %c0_22 = arith.constant 0 : index
      %36 = vector.load %arg6[%c0_21, %c0_22] : memref<1x32xf32, #tpu.memory_space<vmem>>, vector<1x32xf32>
      %37 = vector.broadcast %36 : vector<1x32xf32> to vector<16x32xf32>
      %38 = arith.mulf %35, %37 : vector<16x32xf32>
      %c0_23 = arith.constant 0 : index
      %c0_24 = arith.constant 0 : index
      %39 = vector.load %arg7[%c0_23, %c0_24] : memref<1x32xf32, #tpu.memory_space<vmem>>, vector<1x32xf32>
      %40 = vector.broadcast %39 : vector<1x32xf32> to vector<16x32xf32>
      %41 = arith.addf %38, %40 : vector<16x32xf32>
      %c0_25 = arith.constant 0 : index
      %c0_26 = arith.constant 0 : index
      %42 = vector.load %arg8[%c0_25, %c0_26] : memref<16x32xf32, #tpu.memory_space<vmem>>, vector<16x32xf32>
      tpu.vector_store %arg8[%c0_25, %c0_26], %41 {strides = array<i32>} : memref<16x32xf32, #tpu.memory_space<vmem>>, vector<16x32xf32>,
    } else {
    }
    return
  }
  func.func @transform_0(%arg0: i32, %arg1: i32) -> (i32, i32) {
    %c0_i32 = arith.constant 0 : i32
    return %arg0, %arg1 : i32, i32
  }
  func.func @transform_1(%arg0: i32, %arg1: i32) -> (i32, i32) {
    %c0_i32 = arith.constant 0 : i32
    %c0_i32_0 = arith.constant 0 : i32
    return %arg1, %c0_i32 : i32, i32
  }
  func.func @transform_2(%arg0: i32, %arg1: i32) -> (i32, i32) {
    %c0_i32 = arith.constant 0 : i32
    %c0_i32_0 = arith.constant 0 : i32
    %c0_i32_1 = arith.constant 0 : i32
    return %c0_i32, %c0_i32_0 : i32, i32
  }
  func.func @transform_3(%arg0: i32, %arg1: i32) -> (i32, i32) {
    %c0_i32 = arith.constant 0 : i32
    %c0_i32_0 = arith.constant 0 : i32
    return %arg0, %c0_i32 : i32, i32
  }
  func.func @transform_4(%arg0: i32, %arg1: i32) -> (i32, i32) {
    %c0_i32 = arith.constant 0 : i32
    %c0_i32_0 = arith.constant 0 : i32
    %c0_i32_1 = arith.constant 0 : i32
    return %c0_i32, %c0_i32_0 : i32, i32
  }
  func.func @transform_5(%arg0: i32, %arg1: i32) -> (i32, i32) {
    %c0_i32 = arith.constant 0 : i32
    %c0_i32_0 = arith.constant 0 : i32
    %c0_i32_1 = arith.constant 0 : i32
    return %c0_i32, %c0_i32_0 : i32, i32
  }
  func.func @transform_6(%arg0: i32, %arg1: i32) -> (i32, i32) {
    %c0_i32 = arith.constant 0 : i32
    %c0_i32_0 = arith.constant 0 : i32
    return %arg0, %c0_i32 : i32, i32
  }
}

module attributes {stable_mosaic.version = 11 : i64} {
  func.func @_matmul_kernel(%arg0: i32, %arg1: i32, %arg2: i32, %arg3: memref<16x32xf32, #tpu.memory_space<vmem>>, %arg4: memref<32x32xf32, #tpu.memory_space<vmem>>, %arg5: memref<1x32xf32, #tpu.memory_space<vmem>>, %arg6: memref<16x32xf32, #tpu.memory_space<vmem>>, %arg7: memref<16x32xf32, #tpu.memory_space<vmem>>) attributes {dimension_semantics = [#tpu.dimension_semantics<parallel>, #tpu.dimension_semantics<parallel>, #tpu.dimension_semantics<arbitrary>], iteration_bounds = array<i64: 1, 1, 1>, scalar_prefetch = 0 : i64, scratch_operands = 1 : i64, tpu.core_type = #tpu.core_type<tc>, window_params = [{transform_indices = @transform_0, window_bounds = array<i64: 16, 32>}, {transform_indices = @transform_1, window_bounds = array<i64: 32, 32>}, {transform_indices = @transform_2, window_bounds = array<i64: 1, 32>}, {transform_indices = @transform_3, window_bounds = array<i64: 16, 32>}]} {
    %c0_i32 = arith.constant 0 : i32
    %0 = arith.cmpi eq, %arg2, %c0_i32 : i32
    %1 = arith.extui %0 : i1 to i32
    %c0_i32_0 = arith.constant 0 : i32
    %2 = arith.cmpi ne, %1, %c0_i32_0 : i32
    scf.if %2 {
      %cst_10 = arith.constant 0.000000e+00 : f32
      %14 = vector.broadcast %cst_10 : f32 to vector<16x32xf32>
      %c0_11 = arith.constant 0 : index
      %c0_12 = arith.constant 0 : index
      %15 = vector.load %arg7[%c0_11, %c0_12] : memref<16x32xf32, #tpu.memory_space<vmem>>, vector<16x32xf32>
      tpu.vector_store %arg7[%c0_11, %c0_12], %14 {strides = array<i32>} : memref<16x32xf32, #tpu.memory_space<vmem>>, vector<16x32xf32>,
    } else {
    }
    %c0 = arith.constant 0 : index
    %c0_1 = arith.constant 0 : index
    %3 = vector.load %arg7[%c0, %c0_1] : memref<16x32xf32, #tpu.memory_space<vmem>>, vector<16x32xf32>
    %c0_2 = arith.constant 0 : index
    %c0_3 = arith.constant 0 : index
    %4 = vector.load %arg3[%c0_2, %c0_3] : memref<16x32xf32, #tpu.memory_space<vmem>>, vector<16x32xf32>
    %5 = arith.truncf %4 : vector<16x32xf32> to vector<16x32xbf16>
    %c0_4 = arith.constant 0 : index
    %c0_5 = arith.constant 0 : index
    %6 = vector.load %arg4[%c0_4, %c0_5] : memref<32x32xf32, #tpu.memory_space<vmem>>, vector<32x32xf32>
    %7 = arith.truncf %6 : vector<32x32xf32> to vector<32x32xbf16>
    %cst = arith.constant dense<0.000000e+00> : vector<16x32xf32>
    %8 = tpu.matmul %5, %7, %cst {dimension_numbers = #tpu.dot_dimension_numbers<[1], [0], [0], [1], [0, 0, 1, 1], [], []>} : vector<16x32xbf16>, vector<32x32xbf16>, vector<16x32xf32> -> vector<16x32xf32>
    %9 = arith.addf %3, %8 : vector<16x32xf32>
    %c0_6 = arith.constant 0 : index
    %c0_7 = arith.constant 0 : index
    %10 = vector.load %arg7[%c0_6, %c0_7] : memref<16x32xf32, #tpu.memory_space<vmem>>, vector<16x32xf32>
    tpu.vector_store %arg7[%c0_6, %c0_7], %9 {strides = array<i32>} : memref<16x32xf32, #tpu.memory_space<vmem>>, vector<16x32xf32>,
    %c0_i32_8 = arith.constant 0 : i32
    %11 = arith.cmpi eq, %arg2, %c0_i32_8 : i32
    %12 = arith.extui %11 : i1 to i32
    %c0_i32_9 = arith.constant 0 : i32
    %13 = arith.cmpi ne, %12, %c0_i32_9 : i32
    scf.if %13 {
      %c0_10 = arith.constant 0 : index
      %c0_11 = arith.constant 0 : index
      %14 = vector.load %arg7[%c0_10, %c0_11] : memref<16x32xf32, #tpu.memory_space<vmem>>, vector<16x32xf32>
      %c0_12 = arith.constant 0 : index
      %c0_13 = arith.constant 0 : index
      %15 = vector.load %arg5[%c0_12, %c0_13] : memref<1x32xf32, #tpu.memory_space<vmem>>, vector<1x32xf32>
      %16 = vector.broadcast %15 : vector<1x32xf32> to vector<16x32xf32>
      %17 = arith.addf %14, %16 : vector<16x32xf32>
      %c0_14 = arith.constant 0 : index
      %c0_15 = arith.constant 0 : index
      %18 = vector.load %arg6[%c0_14, %c0_15] : memref<16x32xf32, #tpu.memory_space<vmem>>, vector<16x32xf32>
      tpu.vector_store %arg6[%c0_14, %c0_15], %17 {strides = array<i32>} : memref<16x32xf32, #tpu.memory_space<vmem>>, vector<16x32xf32>,
    } else {
    }
    return
  }
  func.func @transform_0(%arg0: i32, %arg1: i32, %arg2: i32) -> (i32, i32) {
    %c0_i32 = arith.constant 0 : i32
    return %arg0, %arg2 : i32, i32
  }
  func.func @transform_1(%arg0: i32, %arg1: i32, %arg2: i32) -> (i32, i32) {
    %c0_i32 = arith.constant 0 : i32
    return %arg2, %arg1 : i32, i32
  }
  func.func @transform_2(%arg0: i32, %arg1: i32, %arg2: i32) -> (i32, i32) {
    %c0_i32 = arith.constant 0 : i32
    %c0_i32_0 = arith.constant 0 : i32
    return %c0_i32, %arg1 : i32, i32
  }
  func.func @transform_3(%arg0: i32, %arg1: i32, %arg2: i32) -> (i32, i32) {
    %c0_i32 = arith.constant 0 : i32
    return %arg0, %arg1 : i32, i32
  }
}

module attributes {stable_mosaic.version = 11 : i64} {
  func.func @_flash_attn_kernel(%arg0: i32, %arg1: i32, %arg2: i32, %arg3: memref<1x1x8x32xf32, #tpu.memory_space<vmem>>, %arg4: memref<1x1x8x32xf32, #tpu.memory_space<vmem>>, %arg5: memref<1x1x8x32xf32, #tpu.memory_space<vmem>>, %arg6: memref<1x8x32xf32, #tpu.memory_space<vmem>>, %arg7: memref<8x32xf32, #tpu.memory_space<vmem>>, %arg8: memref<8x32xf32, #tpu.memory_space<vmem>>, %arg9: memref<8x32xf32, #tpu.memory_space<vmem>>) attributes {dimension_semantics = [#tpu.dimension_semantics<parallel>, #tpu.dimension_semantics<parallel>, #tpu.dimension_semantics<arbitrary>], iteration_bounds = array<i64: 2, 1, 1>, scalar_prefetch = 0 : i64, scratch_operands = 3 : i64, tpu.core_type = #tpu.core_type<tc>, window_params = [{transform_indices = @transform_0, window_bounds = array<i64: 1, 1, 8, 32>}, {transform_indices = @transform_1, window_bounds = array<i64: 1, 1, 8, 32>}, {transform_indices = @transform_2, window_bounds = array<i64: 1, 1, 8, 32>}, {transform_indices = @transform_3, window_bounds = array<i64: 1, 8, 32>}]} {
    %c0_i32 = arith.constant 0 : i32
    %0 = arith.cmpi eq, %arg2, %c0_i32 : i32
    %1 = arith.extui %0 : i1 to i32
    %c0_i32_0 = arith.constant 0 : i32
    %2 = arith.cmpi ne, %1, %c0_i32_0 : i32
    scf.if %2 {
      %cst_78 = arith.constant 0xFF800000 : f32
      %147 = vector.broadcast %cst_78 : f32 to vector<8x32xf32>
      %c0_79 = arith.constant 0 : index
      %c0_80 = arith.constant 0 : index
      %148 = vector.load %arg7[%c0_79, %c0_80] : memref<8x32xf32, #tpu.memory_space<vmem>>, vector<8x32xf32>
      tpu.vector_store %arg7[%c0_79, %c0_80], %147 {strides = array<i32>} : memref<8x32xf32, #tpu.memory_space<vmem>>, vector<8x32xf32>,
      %cst_81 = arith.constant 0.000000e+00 : f32
      %149 = vector.broadcast %cst_81 : f32 to vector<8x32xf32>
      %c0_82 = arith.constant 0 : index
      %c0_83 = arith.constant 0 : index
      %150 = vector.load %arg8[%c0_82, %c0_83] : memref<8x32xf32, #tpu.memory_space<vmem>>, vector<8x32xf32>
      tpu.vector_store %arg8[%c0_82, %c0_83], %149 {strides = array<i32>} : memref<8x32xf32, #tpu.memory_space<vmem>>, vector<8x32xf32>,
      %cst_84 = arith.constant 0.000000e+00 : f32
      %151 = vector.broadcast %cst_84 : f32 to vector<8x32xf32>
      %c0_85 = arith.constant 0 : index
      %c0_86 = arith.constant 0 : index
      %152 = vector.load %arg9[%c0_85, %c0_86] : memref<8x32xf32, #tpu.memory_space<vmem>>, vector<8x32xf32>
      tpu.vector_store %arg9[%c0_85, %c0_86], %151 {strides = array<i32>} : memref<8x32xf32, #tpu.memory_space<vmem>>, vector<8x32xf32>,
    } else {
    }
    %c0 = arith.constant 0 : index
    %c0_1 = arith.constant 0 : index
    %c0_2 = arith.constant 0 : index
    %c0_3 = arith.constant 0 : index
    %3 = vector.load %arg3[%c0, %c0_1, %c0_2, %c0_3] : memref<1x1x8x32xf32, #tpu.memory_space<vmem>>, vector<1x1x8x32xf32>
    %4 = vector.shape_cast %3 : vector<1x1x8x32xf32> to vector<8x32xf32>
    %c0_4 = arith.constant 0 : index
    %c0_5 = arith.constant 0 : index
    %c0_6 = arith.constant 0 : index
    %c0_7 = arith.constant 0 : index
    %5 = vector.load %arg4[%c0_4, %c0_5, %c0_6, %c0_7] : memref<1x1x8x32xf32, #tpu.memory_space<vmem>>, vector<1x1x8x32xf32>
    %6 = vector.shape_cast %5 : vector<1x1x8x32xf32> to vector<8x32xf32>
    %c0_8 = arith.constant 0 : index
    %c0_9 = arith.constant 0 : index
    %c0_10 = arith.constant 0 : index
    %c0_11 = arith.constant 0 : index
    %7 = vector.load %arg5[%c0_8, %c0_9, %c0_10, %c0_11] : memref<1x1x8x32xf32, #tpu.memory_space<vmem>>, vector<1x1x8x32xf32>
    %8 = vector.shape_cast %7 : vector<1x1x8x32xf32> to vector<8x32xf32>
    %9 = arith.truncf %4 : vector<8x32xf32> to vector<8x32xbf16>
    %10 = arith.truncf %6 : vector<8x32xf32> to vector<8x32xbf16>
    %11 = arith.truncf %8 : vector<8x32xf32> to vector<8x32xbf16>
    %12 = vector.extract_strided_slice %9 {offsets = [0, 0], sizes = [8, 8], strides = [1, 1]} : vector<8x32xbf16> to vector<8x8xbf16>
    %13 = vector.extract_strided_slice %10 {offsets = [0, 0], sizes = [8, 8], strides = [1, 1]} : vector<8x32xbf16> to vector<8x8xbf16>
    %cst = arith.constant dense<0.000000e+00> : vector<8x8xf32>
    %14 = tpu.matmul %12, %13, %cst {dimension_numbers = #tpu.dot_dimension_numbers<[1], [1], [0], [0], [0, 0, 1, 0], [], []>} : vector<8x8xbf16>, vector<8x8xbf16>, vector<8x8xf32> -> vector<8x8xf32>
    %cst_12 = arith.constant 0.353553385 : f32
    %15 = vector.broadcast %cst_12 : f32 to vector<8x8xf32>
    %16 = arith.mulf %14, %15 : vector<8x8xf32>
    %c0_13 = arith.constant 0 : index
    %c0_14 = arith.constant 0 : index
    %17 = vector.load %arg7[%c0_13, %c0_14] : memref<8x32xf32, #tpu.memory_space<vmem>>, vector<8x1xf32>
    %c0_15 = arith.constant 0 : index
    %c0_16 = arith.constant 0 : index
    %18 = vector.load %arg8[%c0_15, %c0_16] : memref<8x32xf32, #tpu.memory_space<vmem>>, vector<8x1xf32>
    %cst_17 = arith.constant dense<0xFF800000> : vector<8xf32>
    %19 = vector.multi_reduction <maximumf>, %16, %cst_17 [1] : vector<8x8xf32> to vector<8xf32>
    %20 = vector.shape_cast %19 : vector<8xf32> to vector<8x1xf32>
    %21 = arith.maximumf %17, %20 : vector<8x1xf32>
    %22 = arith.subf %17, %21 : vector<8x1xf32>
    %23 = math.exp %22 : vector<8x1xf32>
    %24 = vector.broadcast %21 : vector<8x1xf32> to vector<8x8xf32>
    %25 = arith.subf %16, %24 : vector<8x8xf32>
    %26 = math.exp %25 : vector<8x8xf32>
    %27 = arith.mulf %23, %18 : vector<8x1xf32>
    %cst_18 = arith.constant dense<0.000000e+00> : vector<8xf32>
    %28 = vector.multi_reduction <add>, %26, %cst_18 [1] : vector<8x8xf32> to vector<8xf32>
    %29 = vector.shape_cast %28 : vector<8xf32> to vector<8x1xf32>
    %30 = arith.addf %27, %29 : vector<8x1xf32>
    %31 = arith.truncf %26 : vector<8x8xf32> to vector<8x8xbf16>
    %32 = vector.extract_strided_slice %11 {offsets = [0, 0], sizes = [8, 8], strides = [1, 1]} : vector<8x32xbf16> to vector<8x8xbf16>
    %cst_19 = arith.constant dense<0.000000e+00> : vector<8x8xf32>
    %33 = tpu.matmul %31, %32, %cst_19 {dimension_numbers = #tpu.dot_dimension_numbers<[1], [0], [0], [1], [0, 0, 1, 1], [], []>} : vector<8x8xbf16>, vector<8x8xbf16>, vector<8x8xf32> -> vector<8x8xf32>
    %c0_20 = arith.constant 0 : index
    %c0_21 = arith.constant 0 : index
    %34 = vector.load %arg9[%c0_20, %c0_21] : memref<8x32xf32, #tpu.memory_space<vmem>>, vector<8x8xf32>
    %35 = vector.broadcast %23 : vector<8x1xf32> to vector<8x8xf32>
    %36 = arith.mulf %35, %34 : vector<8x8xf32>
    %37 = arith.addf %36, %33 : vector<8x8xf32>
    %c0_22 = arith.constant 0 : index
    %c0_23 = arith.constant 0 : index
    %38 = vector.load %arg9[%c0_22, %c0_23] : memref<8x32xf32, #tpu.memory_space<vmem>>, vector<8x8xf32>
    tpu.vector_store %arg9[%c0_22, %c0_23], %37 {strides = array<i32>} : memref<8x32xf32, #tpu.memory_space<vmem>>, vector<8x8xf32>,
    %39 = vector.shape_cast %21 : vector<8x1xf32> to vector<8x1xf32>
    %40 = vector.broadcast %39 : vector<8x1xf32> to vector<8x8xf32>
    %c0_24 = arith.constant 0 : index
    %c0_25 = arith.constant 0 : index
    %41 = vector.load %arg7[%c0_24, %c0_25] : memref<8x32xf32, #tpu.memory_space<vmem>>, vector<8x8xf32>
    tpu.vector_store %arg7[%c0_24, %c0_25], %40 {strides = array<i32>} : memref<8x32xf32, #tpu.memory_space<vmem>>, vector<8x8xf32>,
    %42 = vector.shape_cast %30 : vector<8x1xf32> to vector<8x1xf32>
    %43 = vector.broadcast %42 : vector<8x1xf32> to vector<8x8xf32>
    %c0_26 = arith.constant 0 : index
    %c0_27 = arith.constant 0 : index
    %44 = vector.load %arg8[%c0_26, %c0_27] : memref<8x32xf32, #tpu.memory_space<vmem>>, vector<8x8xf32>
    tpu.vector_store %arg8[%c0_26, %c0_27], %43 {strides = array<i32>} : memref<8x32xf32, #tpu.memory_space<vmem>>, vector<8x8xf32>,
    %45 = vector.extract_strided_slice %9 {offsets = [0, 8], sizes = [8, 8], strides = [1, 1]} : vector<8x32xbf16> to vector<8x8xbf16>
    %46 = vector.extract_strided_slice %10 {offsets = [0, 8], sizes = [8, 8], strides = [1, 1]} : vector<8x32xbf16> to vector<8x8xbf16>
    %cst_28 = arith.constant dense<0.000000e+00> : vector<8x8xf32>
    %47 = tpu.matmul %45, %46, %cst_28 {dimension_numbers = #tpu.dot_dimension_numbers<[1], [1], [0], [0], [0, 0, 1, 0], [], []>} : vector<8x8xbf16>, vector<8x8xbf16>, vector<8x8xf32> -> vector<8x8xf32>
    %cst_29 = arith.constant 0.353553385 : f32
    %48 = vector.broadcast %cst_29 : f32 to vector<8x8xf32>
    %49 = arith.mulf %47, %48 : vector<8x8xf32>
    %c0_30 = arith.constant 0 : index
    %c8 = arith.constant 8 : index
    %50 = vector.load %arg7[%c0_30, %c8] : memref<8x32xf32, #tpu.memory_space<vmem>>, vector<8x1xf32>
    %c0_31 = arith.constant 0 : index
    %c8_32 = arith.constant 8 : index
    %51 = vector.load %arg8[%c0_31, %c8_32] : memref<8x32xf32, #tpu.memory_space<vmem>>, vector<8x1xf32>
    %cst_33 = arith.constant dense<0xFF800000> : vector<8xf32>
    %52 = vector.multi_reduction <maximumf>, %49, %cst_33 [1] : vector<8x8xf32> to vector<8xf32>
    %53 = vector.shape_cast %52 : vector<8xf32> to vector<8x1xf32>
    %54 = arith.maximumf %50, %53 : vector<8x1xf32>
    %55 = arith.subf %50, %54 : vector<8x1xf32>
    %56 = math.exp %55 : vector<8x1xf32>
    %57 = vector.broadcast %54 : vector<8x1xf32> to vector<8x8xf32>
    %58 = arith.subf %49, %57 : vector<8x8xf32>
    %59 = math.exp %58 : vector<8x8xf32>
    %60 = arith.mulf %56, %51 : vector<8x1xf32>
    %cst_34 = arith.constant dense<0.000000e+00> : vector<8xf32>
    %61 = vector.multi_reduction <add>, %59, %cst_34 [1] : vector<8x8xf32> to vector<8xf32>
    %62 = vector.shape_cast %61 : vector<8xf32> to vector<8x1xf32>
    %63 = arith.addf %60, %62 : vector<8x1xf32>
    %64 = arith.truncf %59 : vector<8x8xf32> to vector<8x8xbf16>
    %65 = vector.extract_strided_slice %11 {offsets = [0, 8], sizes = [8, 8], strides = [1, 1]} : vector<8x32xbf16> to vector<8x8xbf16>
    %cst_35 = arith.constant dense<0.000000e+00> : vector<8x8xf32>
    %66 = tpu.matmul %64, %65, %cst_35 {dimension_numbers = #tpu.dot_dimension_numbers<[1], [0], [0], [1], [0, 0, 1, 1], [], []>} : vector<8x8xbf16>, vector<8x8xbf16>, vector<8x8xf32> -> vector<8x8xf32>
    %c0_36 = arith.constant 0 : index
    %c8_37 = arith.constant 8 : index
    %67 = vector.load %arg9[%c0_36, %c8_37] : memref<8x32xf32, #tpu.memory_space<vmem>>, vector<8x8xf32>
    %68 = vector.broadcast %56 : vector<8x1xf32> to vector<8x8xf32>
    %69 = arith.mulf %68, %67 : vector<8x8xf32>
    %70 = arith.addf %69, %66 : vector<8x8xf32>
    %c0_38 = arith.constant 0 : index
    %c8_39 = arith.constant 8 : index
    %71 = vector.load %arg9[%c0_38, %c8_39] : memref<8x32xf32, #tpu.memory_space<vmem>>, vector<8x8xf32>
    tpu.vector_store %arg9[%c0_38, %c8_39], %70 {strides = array<i32>} : memref<8x32xf32, #tpu.memory_space<vmem>>, vector<8x8xf32>,
    %72 = vector.shape_cast %54 : vector<8x1xf32> to vector<8x1xf32>
    %73 = vector.broadcast %72 : vector<8x1xf32> to vector<8x8xf32>
    %c0_40 = arith.constant 0 : index
    %c8_41 = arith.constant 8 : index
    %74 = vector.load %arg7[%c0_40, %c8_41] : memref<8x32xf32, #tpu.memory_space<vmem>>, vector<8x8xf32>
    tpu.vector_store %arg7[%c0_40, %c8_41], %73 {strides = array<i32>} : memref<8x32xf32, #tpu.memory_space<vmem>>, vector<8x8xf32>,
    %75 = vector.shape_cast %63 : vector<8x1xf32> to vector<8x1xf32>
    %76 = vector.broadcast %75 : vector<8x1xf32> to vector<8x8xf32>
    %c0_42 = arith.constant 0 : index
    %c8_43 = arith.constant 8 : index
    %77 = vector.load %arg8[%c0_42, %c8_43] : memref<8x32xf32, #tpu.memory_space<vmem>>, vector<8x8xf32>
    tpu.vector_store %arg8[%c0_42, %c8_43], %76 {strides = array<i32>} : memref<8x32xf32, #tpu.memory_space<vmem>>, vector<8x8xf32>,
    %78 = vector.extract_strided_slice %9 {offsets = [0, 16], sizes = [8, 8], strides = [1, 1]} : vector<8x32xbf16> to vector<8x8xbf16>
    %79 = vector.extract_strided_slice %10 {offsets = [0, 16], sizes = [8, 8], strides = [1, 1]} : vector<8x32xbf16> to vector<8x8xbf16>
    %cst_44 = arith.constant dense<0.000000e+00> : vector<8x8xf32>
    %80 = tpu.matmul %78, %79, %cst_44 {dimension_numbers = #tpu.dot_dimension_numbers<[1], [1], [0], [0], [0, 0, 1, 0], [], []>} : vector<8x8xbf16>, vector<8x8xbf16>, vector<8x8xf32> -> vector<8x8xf32>
    %cst_45 = arith.constant 0.353553385 : f32
    %81 = vector.broadcast %cst_45 : f32 to vector<8x8xf32>
    %82 = arith.mulf %80, %81 : vector<8x8xf32>
    %c0_46 = arith.constant 0 : index
    %c16 = arith.constant 16 : index
    %83 = vector.load %arg7[%c0_46, %c16] : memref<8x32xf32, #tpu.memory_space<vmem>>, vector<8x1xf32>
    %c0_47 = arith.constant 0 : index
    %c16_48 = arith.constant 16 : index
    %84 = vector.load %arg8[%c0_47, %c16_48] : memref<8x32xf32, #tpu.memory_space<vmem>>, vector<8x1xf32>
    %cst_49 = arith.constant dense<0xFF800000> : vector<8xf32>
    %85 = vector.multi_reduction <maximumf>, %82, %cst_49 [1] : vector<8x8xf32> to vector<8xf32>
    %86 = vector.shape_cast %85 : vector<8xf32> to vector<8x1xf32>
    %87 = arith.maximumf %83, %86 : vector<8x1xf32>
    %88 = arith.subf %83, %87 : vector<8x1xf32>
    %89 = math.exp %88 : vector<8x1xf32>
    %90 = vector.broadcast %87 : vector<8x1xf32> to vector<8x8xf32>
    %91 = arith.subf %82, %90 : vector<8x8xf32>
    %92 = math.exp %91 : vector<8x8xf32>
    %93 = arith.mulf %89, %84 : vector<8x1xf32>
    %cst_50 = arith.constant dense<0.000000e+00> : vector<8xf32>
    %94 = vector.multi_reduction <add>, %92, %cst_50 [1] : vector<8x8xf32> to vector<8xf32>
    %95 = vector.shape_cast %94 : vector<8xf32> to vector<8x1xf32>
    %96 = arith.addf %93, %95 : vector<8x1xf32>
    %97 = arith.truncf %92 : vector<8x8xf32> to vector<8x8xbf16>
    %98 = vector.extract_strided_slice %11 {offsets = [0, 16], sizes = [8, 8], strides = [1, 1]} : vector<8x32xbf16> to vector<8x8xbf16>
    %cst_51 = arith.constant dense<0.000000e+00> : vector<8x8xf32>
    %99 = tpu.matmul %97, %98, %cst_51 {dimension_numbers = #tpu.dot_dimension_numbers<[1], [0], [0], [1], [0, 0, 1, 1], [], []>} : vector<8x8xbf16>, vector<8x8xbf16>, vector<8x8xf32> -> vector<8x8xf32>
    %c0_52 = arith.constant 0 : index
    %c16_53 = arith.constant 16 : index
    %100 = vector.load %arg9[%c0_52, %c16_53] : memref<8x32xf32, #tpu.memory_space<vmem>>, vector<8x8xf32>
    %101 = vector.broadcast %89 : vector<8x1xf32> to vector<8x8xf32>
    %102 = arith.mulf %101, %100 : vector<8x8xf32>
    %103 = arith.addf %102, %99 : vector<8x8xf32>
    %c0_54 = arith.constant 0 : index
    %c16_55 = arith.constant 16 : index
    %104 = vector.load %arg9[%c0_54, %c16_55] : memref<8x32xf32, #tpu.memory_space<vmem>>, vector<8x8xf32>
    tpu.vector_store %arg9[%c0_54, %c16_55], %103 {strides = array<i32>} : memref<8x32xf32, #tpu.memory_space<vmem>>, vector<8x8xf32>,
    %105 = vector.shape_cast %87 : vector<8x1xf32> to vector<8x1xf32>
    %106 = vector.broadcast %105 : vector<8x1xf32> to vector<8x8xf32>
    %c0_56 = arith.constant 0 : index
    %c16_57 = arith.constant 16 : index
    %107 = vector.load %arg7[%c0_56, %c16_57] : memref<8x32xf32, #tpu.memory_space<vmem>>, vector<8x8xf32>
    tpu.vector_store %arg7[%c0_56, %c16_57], %106 {strides = array<i32>} : memref<8x32xf32, #tpu.memory_space<vmem>>, vector<8x8xf32>,
    %108 = vector.shape_cast %96 : vector<8x1xf32> to vector<8x1xf32>
    %109 = vector.broadcast %108 : vector<8x1xf32> to vector<8x8xf32>
    %c0_58 = arith.constant 0 : index
    %c16_59 = arith.constant 16 : index
    %110 = vector.load %arg8[%c0_58, %c16_59] : memref<8x32xf32, #tpu.memory_space<vmem>>, vector<8x8xf32>
    tpu.vector_store %arg8[%c0_58, %c16_59], %109 {strides = array<i32>} : memref<8x32xf32, #tpu.memory_space<vmem>>, vector<8x8xf32>,
    %111 = vector.extract_strided_slice %9 {offsets = [0, 24], sizes = [8, 8], strides = [1, 1]} : vector<8x32xbf16> to vector<8x8xbf16>
    %112 = vector.extract_strided_slice %10 {offsets = [0, 24], sizes = [8, 8], strides = [1, 1]} : vector<8x32xbf16> to vector<8x8xbf16>
    %cst_60 = arith.constant dense<0.000000e+00> : vector<8x8xf32>
    %113 = tpu.matmul %111, %112, %cst_60 {dimension_numbers = #tpu.dot_dimension_numbers<[1], [1], [0], [0], [0, 0, 1, 0], [], []>} : vector<8x8xbf16>, vector<8x8xbf16>, vector<8x8xf32> -> vector<8x8xf32>
    %cst_61 = arith.constant 0.353553385 : f32
    %114 = vector.broadcast %cst_61 : f32 to vector<8x8xf32>
    %115 = arith.mulf %113, %114 : vector<8x8xf32>
    %c0_62 = arith.constant 0 : index
    %c24 = arith.constant 24 : index
    %116 = vector.load %arg7[%c0_62, %c24] : memref<8x32xf32, #tpu.memory_space<vmem>>, vector<8x1xf32>
    %c0_63 = arith.constant 0 : index
    %c24_64 = arith.constant 24 : index
    %117 = vector.load %arg8[%c0_63, %c24_64] : memref<8x32xf32, #tpu.memory_space<vmem>>, vector<8x1xf32>
    %cst_65 = arith.constant dense<0xFF800000> : vector<8xf32>
    %118 = vector.multi_reduction <maximumf>, %115, %cst_65 [1] : vector<8x8xf32> to vector<8xf32>
    %119 = vector.shape_cast %118 : vector<8xf32> to vector<8x1xf32>
    %120 = arith.maximumf %116, %119 : vector<8x1xf32>
    %121 = arith.subf %116, %120 : vector<8x1xf32>
    %122 = math.exp %121 : vector<8x1xf32>
    %123 = vector.broadcast %120 : vector<8x1xf32> to vector<8x8xf32>
    %124 = arith.subf %115, %123 : vector<8x8xf32>
    %125 = math.exp %124 : vector<8x8xf32>
    %126 = arith.mulf %122, %117 : vector<8x1xf32>
    %cst_66 = arith.constant dense<0.000000e+00> : vector<8xf32>
    %127 = vector.multi_reduction <add>, %125, %cst_66 [1] : vector<8x8xf32> to vector<8xf32>
    %128 = vector.shape_cast %127 : vector<8xf32> to vector<8x1xf32>
    %129 = arith.addf %126, %128 : vector<8x1xf32>
    %130 = arith.truncf %125 : vector<8x8xf32> to vector<8x8xbf16>
    %131 = vector.extract_strided_slice %11 {offsets = [0, 24], sizes = [8, 8], strides = [1, 1]} : vector<8x32xbf16> to vector<8x8xbf16>
    %cst_67 = arith.constant dense<0.000000e+00> : vector<8x8xf32>
    %132 = tpu.matmul %130, %131, %cst_67 {dimension_numbers = #tpu.dot_dimension_numbers<[1], [0], [0], [1], [0, 0, 1, 1], [], []>} : vector<8x8xbf16>, vector<8x8xbf16>, vector<8x8xf32> -> vector<8x8xf32>
    %c0_68 = arith.constant 0 : index
    %c24_69 = arith.constant 24 : index
    %133 = vector.load %arg9[%c0_68, %c24_69] : memref<8x32xf32, #tpu.memory_space<vmem>>, vector<8x8xf32>
    %134 = vector.broadcast %122 : vector<8x1xf32> to vector<8x8xf32>
    %135 = arith.mulf %134, %133 : vector<8x8xf32>
    %136 = arith.addf %135, %132 : vector<8x8xf32>
    %c0_70 = arith.constant 0 : index
    %c24_71 = arith.constant 24 : index
    %137 = vector.load %arg9[%c0_70, %c24_71] : memref<8x32xf32, #tpu.memory_space<vmem>>, vector<8x8xf32>
    tpu.vector_store %arg9[%c0_70, %c24_71], %136 {strides = array<i32>} : memref<8x32xf32, #tpu.memory_space<vmem>>, vector<8x8xf32>,
    %138 = vector.shape_cast %120 : vector<8x1xf32> to vector<8x1xf32>
    %139 = vector.broadcast %138 : vector<8x1xf32> to vector<8x8xf32>
    %c0_72 = arith.constant 0 : index
    %c24_73 = arith.constant 24 : index
    %140 = vector.load %arg7[%c0_72, %c24_73] : memref<8x32xf32, #tpu.memory_space<vmem>>, vector<8x8xf32>
    tpu.vector_store %arg7[%c0_72, %c24_73], %139 {strides = array<i32>} : memref<8x32xf32, #tpu.memory_space<vmem>>, vector<8x8xf32>,
    %141 = vector.shape_cast %129 : vector<8x1xf32> to vector<8x1xf32>
    %142 = vector.broadcast %141 : vector<8x1xf32> to vector<8x8xf32>
    %c0_74 = arith.constant 0 : index
    %c24_75 = arith.constant 24 : index
    %143 = vector.load %arg8[%c0_74, %c24_75] : memref<8x32xf32, #tpu.memory_space<vmem>>, vector<8x8xf32>
    tpu.vector_store %arg8[%c0_74, %c24_75], %142 {strides = array<i32>} : memref<8x32xf32, #tpu.memory_space<vmem>>, vector<8x8xf32>,
    %c0_i32_76 = arith.constant 0 : i32
    %144 = arith.cmpi eq, %arg2, %c0_i32_76 : i32
    %145 = arith.extui %144 : i1 to i32
    %c0_i32_77 = arith.constant 0 : i32
    %146 = arith.cmpi ne, %145, %c0_i32_77 : i32
    scf.if %146 {
      %c0_78 = arith.constant 0 : index
      %c0_79 = arith.constant 0 : index
      %147 = vector.load %arg9[%c0_78, %c0_79] : memref<8x32xf32, #tpu.memory_space<vmem>>, vector<8x32xf32>
      %c0_80 = arith.constant 0 : index
      %c0_81 = arith.constant 0 : index
      %148 = vector.load %arg8[%c0_80, %c0_81] : memref<8x32xf32, #tpu.memory_space<vmem>>, vector<8x32xf32>
      %149 = arith.divf %147, %148 : vector<8x32xf32>
      %c0_82 = arith.constant 0 : index
      %c0_83 = arith.constant 0 : index
      %c0_84 = arith.constant 0 : index
      %150 = vector.load %arg6[%c0_82, %c0_83, %c0_84] : memref<1x8x32xf32, #tpu.memory_space<vmem>>, vector<1x8x32xf32>
      %151 = vector.shape_cast %150 : vector<1x8x32xf32> to vector<8x32xf32>
      %152 = vector.shape_cast %149 : vector<8x32xf32> to vector<1x8x32xf32>
      tpu.vector_store %arg6[%c0_82, %c0_83, %c0_84], %152 {strides = array<i32>} : memref<1x8x32xf32, #tpu.memory_space<vmem>>, vector<1x8x32xf32>,
    } else {
    }
    return
  }
  func.func @transform_0(%arg0: i32, %arg1: i32, %arg2: i32) -> (i32, i32, i32, i32) {
    %c0_i32 = arith.constant 0 : i32
    %c0_i32_0 = arith.constant 0 : i32
    %c0_i32_1 = arith.constant 0 : i32
    return %c0_i32, %arg0, %arg1, %c0_i32_0 : i32, i32, i32, i32
  }
  func.func @transform_1(%arg0: i32, %arg1: i32, %arg2: i32) -> (i32, i32, i32, i32) {
    %c0_i32 = arith.constant 0 : i32
    %c0_i32_0 = arith.constant 0 : i32
    %c0_i32_1 = arith.constant 0 : i32
    return %c0_i32, %arg0, %arg2, %c0_i32_0 : i32, i32, i32, i32
  }
  func.func @transform_2(%arg0: i32, %arg1: i32, %arg2: i32) -> (i32, i32, i32, i32) {
    %c1_i32 = arith.constant 1 : i32
    %c0_i32 = arith.constant 0 : i32
    %c0_i32_0 = arith.constant 0 : i32
    return %c1_i32, %arg0, %arg2, %c0_i32 : i32, i32, i32, i32
  }
  func.func @transform_3(%arg0: i32, %arg1: i32, %arg2: i32) -> (i32, i32, i32) {
    %c0_i32 = arith.constant 0 : i32
    %c0_i32_0 = arith.constant 0 : i32
    return %arg0, %arg1, %c0_i32 : i32, i32, i32
  }
}

module attributes {stable_mosaic.version = 11 : i64} {
  func.func @_matmul_kernel(%arg0: i32, %arg1: i32, %arg2: i32, %arg3: memref<16x32xf32, #tpu.memory_space<vmem>>, %arg4: memref<32x64xf32, #tpu.memory_space<vmem>>, %arg5: memref<1x64xf32, #tpu.memory_space<vmem>>, %arg6: memref<16x64xf32, #tpu.memory_space<vmem>>, %arg7: memref<16x64xf32, #tpu.memory_space<vmem>>) attributes {dimension_semantics = [#tpu.dimension_semantics<parallel>, #tpu.dimension_semantics<parallel>, #tpu.dimension_semantics<arbitrary>], iteration_bounds = array<i64: 1, 1, 1>, scalar_prefetch = 0 : i64, scratch_operands = 1 : i64, tpu.core_type = #tpu.core_type<tc>, window_params = [{transform_indices = @transform_0, window_bounds = array<i64: 16, 32>}, {transform_indices = @transform_1, window_bounds = array<i64: 32, 64>}, {transform_indices = @transform_2, window_bounds = array<i64: 1, 64>}, {transform_indices = @transform_3, window_bounds = array<i64: 16, 64>}]} {
    %c0_i32 = arith.constant 0 : i32
    %0 = arith.cmpi eq, %arg2, %c0_i32 : i32
    %1 = arith.extui %0 : i1 to i32
    %c0_i32_0 = arith.constant 0 : i32
    %2 = arith.cmpi ne, %1, %c0_i32_0 : i32
    scf.if %2 {
      %cst_10 = arith.constant 0.000000e+00 : f32
      %14 = vector.broadcast %cst_10 : f32 to vector<16x64xf32>
      %c0_11 = arith.constant 0 : index
      %c0_12 = arith.constant 0 : index
      %15 = vector.load %arg7[%c0_11, %c0_12] : memref<16x64xf32, #tpu.memory_space<vmem>>, vector<16x64xf32>
      tpu.vector_store %arg7[%c0_11, %c0_12], %14 {strides = array<i32>} : memref<16x64xf32, #tpu.memory_space<vmem>>, vector<16x64xf32>,
    } else {
    }
    %c0 = arith.constant 0 : index
    %c0_1 = arith.constant 0 : index
    %3 = vector.load %arg7[%c0, %c0_1] : memref<16x64xf32, #tpu.memory_space<vmem>>, vector<16x64xf32>
    %c0_2 = arith.constant 0 : index
    %c0_3 = arith.constant 0 : index
    %4 = vector.load %arg3[%c0_2, %c0_3] : memref<16x32xf32, #tpu.memory_space<vmem>>, vector<16x32xf32>
    %5 = arith.truncf %4 : vector<16x32xf32> to vector<16x32xbf16>
    %c0_4 = arith.constant 0 : index
    %c0_5 = arith.constant 0 : index
    %6 = vector.load %arg4[%c0_4, %c0_5] : memref<32x64xf32, #tpu.memory_space<vmem>>, vector<32x64xf32>
    %7 = arith.truncf %6 : vector<32x64xf32> to vector<32x64xbf16>
    %cst = arith.constant dense<0.000000e+00> : vector<16x64xf32>
    %8 = tpu.matmul %5, %7, %cst {dimension_numbers = #tpu.dot_dimension_numbers<[1], [0], [0], [1], [0, 0, 1, 1], [], []>} : vector<16x32xbf16>, vector<32x64xbf16>, vector<16x64xf32> -> vector<16x64xf32>
    %9 = arith.addf %3, %8 : vector<16x64xf32>
    %c0_6 = arith.constant 0 : index
    %c0_7 = arith.constant 0 : index
    %10 = vector.load %arg7[%c0_6, %c0_7] : memref<16x64xf32, #tpu.memory_space<vmem>>, vector<16x64xf32>
    tpu.vector_store %arg7[%c0_6, %c0_7], %9 {strides = array<i32>} : memref<16x64xf32, #tpu.memory_space<vmem>>, vector<16x64xf32>,
    %c0_i32_8 = arith.constant 0 : i32
    %11 = arith.cmpi eq, %arg2, %c0_i32_8 : i32
    %12 = arith.extui %11 : i1 to i32
    %c0_i32_9 = arith.constant 0 : i32
    %13 = arith.cmpi ne, %12, %c0_i32_9 : i32
    scf.if %13 {
      %c0_10 = arith.constant 0 : index
      %c0_11 = arith.constant 0 : index
      %14 = vector.load %arg7[%c0_10, %c0_11] : memref<16x64xf32, #tpu.memory_space<vmem>>, vector<16x64xf32>
      %c0_12 = arith.constant 0 : index
      %c0_13 = arith.constant 0 : index
      %15 = vector.load %arg5[%c0_12, %c0_13] : memref<1x64xf32, #tpu.memory_space<vmem>>, vector<1x64xf32>
      %16 = vector.broadcast %15 : vector<1x64xf32> to vector<16x64xf32>
      %17 = arith.addf %14, %16 : vector<16x64xf32>
      %cst_14 = arith.constant 0.000000e+00 : f32
      %18 = vector.broadcast %cst_14 : f32 to vector<16x64xf32>
      %19 = arith.maximumf %17, %18 : vector<16x64xf32>
      %c0_15 = arith.constant 0 : index
      %c0_16 = arith.constant 0 : index
      %20 = vector.load %arg6[%c0_15, %c0_16] : memref<16x64xf32, #tpu.memory_space<vmem>>, vector<16x64xf32>
      tpu.vector_store %arg6[%c0_15, %c0_16], %19 {strides = array<i32>} : memref<16x64xf32, #tpu.memory_space<vmem>>, vector<16x64xf32>,
    } else {
    }
    return
  }
  func.func @transform_0(%arg0: i32, %arg1: i32, %arg2: i32) -> (i32, i32) {
    %c0_i32 = arith.constant 0 : i32
    return %arg0, %arg2 : i32, i32
  }
  func.func @transform_1(%arg0: i32, %arg1: i32, %arg2: i32) -> (i32, i32) {
    %c0_i32 = arith.constant 0 : i32
    return %arg2, %arg1 : i32, i32
  }
  func.func @transform_2(%arg0: i32, %arg1: i32, %arg2: i32) -> (i32, i32) {
    %c0_i32 = arith.constant 0 : i32
    %c0_i32_0 = arith.constant 0 : i32
    return %c0_i32, %arg1 : i32, i32
  }
  func.func @transform_3(%arg0: i32, %arg1: i32, %arg2: i32) -> (i32, i32) {
    %c0_i32 = arith.constant 0 : i32
    return %arg0, %arg1 : i32, i32
  }
}

module attributes {stable_mosaic.version = 11 : i64} {
  func.func @_matmul_add_ln_kernel(%arg0: i32, %arg1: i32, %arg2: memref<16x32xf32, #tpu.memory_space<vmem>>, %arg3: memref<32x32xf32, #tpu.memory_space<vmem>>, %arg4: memref<1x32xf32, #tpu.memory_space<vmem>>, %arg5: memref<16x32xf32, #tpu.memory_space<vmem>>, %arg6: memref<1x32xf32, #tpu.memory_space<vmem>>, %arg7: memref<1x32xf32, #tpu.memory_space<vmem>>, %arg8: memref<16x32xf32, #tpu.memory_space<vmem>>, %arg9: memref<16x32xf32, #tpu.memory_space<vmem>>) attributes {dimension_semantics = [#tpu.dimension_semantics<parallel>, #tpu.dimension_semantics<arbitrary>], iteration_bounds = array<i64: 1, 1>, scalar_prefetch = 0 : i64, scratch_operands = 1 : i64, tpu.core_type = #tpu.core_type<tc>, window_params = [{transform_indices = @transform_0, window_bounds = array<i64: 16, 32>}, {transform_indices = @transform_1, window_bounds = array<i64: 32, 32>}, {pipeline_mode = #tpu.pipeline_mode<synchronous>, transform_indices = @transform_2, window_bounds = array<i64: 1, 32>}, {transform_indices = @transform_3, window_bounds = array<i64: 16, 32>}, {pipeline_mode = #tpu.pipeline_mode<synchronous>, transform_indices = @transform_4, window_bounds = array<i64: 1, 32>}, {pipeline_mode = #tpu.pipeline_mode<synchronous>, transform_indices = @transform_5, window_bounds = array<i64: 1, 32>}, {transform_indices = @transform_6, window_bounds = array<i64: 16, 32>}]} {
    %c0_i32 = arith.constant 0 : i32
    %0 = arith.cmpi eq, %arg1, %c0_i32 : i32
    %1 = arith.extui %0 : i1 to i32
    %c0_i32_0 = arith.constant 0 : i32
    %2 = arith.cmpi ne, %1, %c0_i32_0 : i32
    scf.if %2 {
      %cst_10 = arith.constant 0.000000e+00 : f32
      %14 = vector.broadcast %cst_10 : f32 to vector<16x32xf32>
      %c0_11 = arith.constant 0 : index
      %c0_12 = arith.constant 0 : index
      %15 = vector.load %arg9[%c0_11, %c0_12] : memref<16x32xf32, #tpu.memory_space<vmem>>, vector<16x32xf32>
      tpu.vector_store %arg9[%c0_11, %c0_12], %14 {strides = array<i32>} : memref<16x32xf32, #tpu.memory_space<vmem>>, vector<16x32xf32>,
    } else {
    }
    %c0 = arith.constant 0 : index
    %c0_1 = arith.constant 0 : index
    %3 = vector.load %arg9[%c0, %c0_1] : memref<16x32xf32, #tpu.memory_space<vmem>>, vector<16x32xf32>
    %c0_2 = arith.constant 0 : index
    %c0_3 = arith.constant 0 : index
    %4 = vector.load %arg2[%c0_2, %c0_3] : memref<16x32xf32, #tpu.memory_space<vmem>>, vector<16x32xf32>
    %5 = arith.truncf %4 : vector<16x32xf32> to vector<16x32xbf16>
    %c0_4 = arith.constant 0 : index
    %c0_5 = arith.constant 0 : index
    %6 = vector.load %arg3[%c0_4, %c0_5] : memref<32x32xf32, #tpu.memory_space<vmem>>, vector<32x32xf32>
    %7 = arith.truncf %6 : vector<32x32xf32> to vector<32x32xbf16>
    %cst = arith.constant dense<0.000000e+00> : vector<16x32xf32>
    %8 = tpu.matmul %5, %7, %cst {dimension_numbers = #tpu.dot_dimension_numbers<[1], [0], [0], [1], [0, 0, 1, 1], [], []>} : vector<16x32xbf16>, vector<32x32xbf16>, vector<16x32xf32> -> vector<16x32xf32>
    %9 = arith.addf %3, %8 : vector<16x32xf32>
    %c0_6 = arith.constant 0 : index
    %c0_7 = arith.constant 0 : index
    %10 = vector.load %arg9[%c0_6, %c0_7] : memref<16x32xf32, #tpu.memory_space<vmem>>, vector<16x32xf32>
    tpu.vector_store %arg9[%c0_6, %c0_7], %9 {strides = array<i32>} : memref<16x32xf32, #tpu.memory_space<vmem>>, vector<16x32xf32>,
    %c0_i32_8 = arith.constant 0 : i32
    %11 = arith.cmpi eq, %arg1, %c0_i32_8 : i32
    %12 = arith.extui %11 : i1 to i32
    %c0_i32_9 = arith.constant 0 : i32
    %13 = arith.cmpi ne, %12, %c0_i32_9 : i32
    scf.if %13 {
      %c0_10 = arith.constant 0 : index
      %c0_11 = arith.constant 0 : index
      %14 = vector.load %arg9[%c0_10, %c0_11] : memref<16x32xf32, #tpu.memory_space<vmem>>, vector<16x32xf32>
      %c0_12 = arith.constant 0 : index
      %c0_13 = arith.constant 0 : index
      %15 = vector.load %arg4[%c0_12, %c0_13] : memref<1x32xf32, #tpu.memory_space<vmem>>, vector<1x32xf32>
      %16 = vector.broadcast %15 : vector<1x32xf32> to vector<16x32xf32>
      %17 = arith.addf %14, %16 : vector<16x32xf32>
      %c0_14 = arith.constant 0 : index
      %c0_15 = arith.constant 0 : index
      %18 = vector.load %arg5[%c0_14, %c0_15] : memref<16x32xf32, #tpu.memory_space<vmem>>, vector<16x32xf32>
      %19 = arith.addf %17, %18 : vector<16x32xf32>
      %cst_16 = arith.constant dense<0.000000e+00> : vector<16xf32>
      %20 = vector.multi_reduction <add>, %19, %cst_16 [1] : vector<16x32xf32> to vector<16xf32>
      %21 = vector.shape_cast %20 : vector<16xf32> to vector<16x1xf32>
      %cst_17 = arith.constant 3.200000e+01 : f32
      %22 = vector.broadcast %cst_17 : f32 to vector<16x1xf32>
      %23 = arith.divf %21, %22 : vector<16x1xf32>
      %24 = vector.broadcast %23 : vector<16x1xf32> to vector<16x32xf32>
      %25 = arith.subf %19, %24 : vector<16x32xf32>
      %26 = arith.mulf %25, %25 : vector<16x32xf32>
      %cst_18 = arith.constant dense<0.000000e+00> : vector<16xf32>
      %27 = vector.multi_reduction <add>, %26, %cst_18 [1] : vector<16x32xf32> to vector<16xf32>
      %28 = vector.shape_cast %27 : vector<16xf32> to vector<16x1xf32>
      %cst_19 = arith.constant 3.200000e+01 : f32
      %29 = vector.broadcast %cst_19 : f32 to vector<16x1xf32>
      %30 = arith.divf %28, %29 : vector<16x1xf32>
      %cst_20 = arith.constant 9.99999974E-6 : f32
      %31 = vector.broadcast %cst_20 : f32 to vector<16x1xf32>
      %32 = arith.addf %30, %31 : vector<16x1xf32>
      %33 = math.rsqrt %32 : vector<16x1xf32>
      %34 = vector.broadcast %33 : vector<16x1xf32> to vector<16x32xf32>
      %35 = arith.mulf %25, %34 : vector<16x32xf32>
      %c0_21 = arith.constant 0 : index
      %c0_22 = arith.constant 0 : index
      %36 = vector.load %arg6[%c0_21, %c0_22] : memref<1x32xf32, #tpu.memory_space<vmem>>, vector<1x32xf32>
      %37 = vector.broadcast %36 : vector<1x32xf32> to vector<16x32xf32>
      %38 = arith.mulf %35, %37 : vector<16x32xf32>
      %c0_23 = arith.constant 0 : index
      %c0_24 = arith.constant 0 : index
      %39 = vector.load %arg7[%c0_23, %c0_24] : memref<1x32xf32, #tpu.memory_space<vmem>>, vector<1x32xf32>
      %40 = vector.broadcast %39 : vector<1x32xf32> to vector<16x32xf32>
      %41 = arith.addf %38, %40 : vector<16x32xf32>
      %c0_25 = arith.constant 0 : index
      %c0_26 = arith.constant 0 : index
      %42 = vector.load %arg8[%c0_25, %c0_26] : memref<16x32xf32, #tpu.memory_space<vmem>>, vector<16x32xf32>
      tpu.vector_store %arg8[%c0_25, %c0_26], %41 {strides = array<i32>} : memref<16x32xf32, #tpu.memory_space<vmem>>, vector<16x32xf32>,
    } else {
    }
    return
  }
  func.func @transform_0(%arg0: i32, %arg1: i32) -> (i32, i32) {
    %c0_i32 = arith.constant 0 : i32
    return %arg0, %arg1 : i32, i32
  }
  func.func @transform_1(%arg0: i32, %arg1: i32) -> (i32, i32) {
    %c0_i32 = arith.constant 0 : i32
    %c0_i32_0 = arith.constant 0 : i32
    return %arg1, %c0_i32 : i32, i32
  }
  func.func @transform_2(%arg0: i32, %arg1: i32) -> (i32, i32) {
    %c0_i32 = arith.constant 0 : i32
    %c0_i32_0 = arith.constant 0 : i32
    %c0_i32_1 = arith.constant 0 : i32
    return %c0_i32, %c0_i32_0 : i32, i32
  }
  func.func @transform_3(%arg0: i32, %arg1: i32) -> (i32, i32) {
    %c0_i32 = arith.constant 0 : i32
    %c0_i32_0 = arith.constant 0 : i32
    return %arg0, %c0_i32 : i32, i32
  }
  func.func @transform_4(%arg0: i32, %arg1: i32) -> (i32, i32) {
    %c0_i32 = arith.constant 0 : i32
    %c0_i32_0 = arith.constant 0 : i32
    %c0_i32_1 = arith.constant 0 : i32
    return %c0_i32, %c0_i32_0 : i32, i32
  }
  func.func @transform_5(%arg0: i32, %arg1: i32) -> (i32, i32) {
    %c0_i32 = arith.constant 0 : i32
    %c0_i32_0 = arith.constant 0 : i32
    %c0_i32_1 = arith.constant 0 : i32
    return %c0_i32, %c0_i32_0 : i32, i32
  }
  func.func @transform_6(%arg0: i32, %arg1: i32) -> (i32, i32) {
    %c0_i32 = arith.constant 0 : i32
    %c0_i32_0 = arith.constant 0 : i32
    return %arg0, %c0_i32 : i32, i32
  }
}

module attributes {stable_mosaic.version = 11 : i64} {
  func.func @_matmul_kernel(%arg0: i32, %arg1: i32, %arg2: i32, %arg3: memref<16x32xf32, #tpu.memory_space<vmem>>, %arg4: memref<32x32xf32, #tpu.memory_space<vmem>>, %arg5: memref<1x32xf32, #tpu.memory_space<vmem>>, %arg6: memref<16x32xf32, #tpu.memory_space<vmem>>, %arg7: memref<16x32xf32, #tpu.memory_space<vmem>>) attributes {dimension_semantics = [#tpu.dimension_semantics<parallel>, #tpu.dimension_semantics<parallel>, #tpu.dimension_semantics<arbitrary>], iteration_bounds = array<i64: 1, 1, 1>, scalar_prefetch = 0 : i64, scratch_operands = 1 : i64, tpu.core_type = #tpu.core_type<tc>, window_params = [{transform_indices = @transform_0, window_bounds = array<i64: 16, 32>}, {transform_indices = @transform_1, window_bounds = array<i64: 32, 32>}, {transform_indices = @transform_2, window_bounds = array<i64: 1, 32>}, {transform_indices = @transform_3, window_bounds = array<i64: 16, 32>}]} {
    %c0_i32 = arith.constant 0 : i32
    %0 = arith.cmpi eq, %arg2, %c0_i32 : i32
    %1 = arith.extui %0 : i1 to i32
    %c0_i32_0 = arith.constant 0 : i32
    %2 = arith.cmpi ne, %1, %c0_i32_0 : i32
    scf.if %2 {
      %cst_10 = arith.constant 0.000000e+00 : f32
      %14 = vector.broadcast %cst_10 : f32 to vector<16x32xf32>
      %c0_11 = arith.constant 0 : index
      %c0_12 = arith.constant 0 : index
      %15 = vector.load %arg7[%c0_11, %c0_12] : memref<16x32xf32, #tpu.memory_space<vmem>>, vector<16x32xf32>
      tpu.vector_store %arg7[%c0_11, %c0_12], %14 {strides = array<i32>} : memref<16x32xf32, #tpu.memory_space<vmem>>, vector<16x32xf32>,
    } else {
    }
    %c0 = arith.constant 0 : index
    %c0_1 = arith.constant 0 : index
    %3 = vector.load %arg7[%c0, %c0_1] : memref<16x32xf32, #tpu.memory_space<vmem>>, vector<16x32xf32>
    %c0_2 = arith.constant 0 : index
    %c0_3 = arith.constant 0 : index
    %4 = vector.load %arg3[%c0_2, %c0_3] : memref<16x32xf32, #tpu.memory_space<vmem>>, vector<16x32xf32>
    %5 = arith.truncf %4 : vector<16x32xf32> to vector<16x32xbf16>
    %c0_4 = arith.constant 0 : index
    %c0_5 = arith.constant 0 : index
    %6 = vector.load %arg4[%c0_4, %c0_5] : memref<32x32xf32, #tpu.memory_space<vmem>>, vector<32x32xf32>
    %7 = arith.truncf %6 : vector<32x32xf32> to vector<32x32xbf16>
    %cst = arith.constant dense<0.000000e+00> : vector<16x32xf32>
    %8 = tpu.matmul %5, %7, %cst {dimension_numbers = #tpu.dot_dimension_numbers<[1], [0], [0], [1], [0, 0, 1, 1], [], []>} : vector<16x32xbf16>, vector<32x32xbf16>, vector<16x32xf32> -> vector<16x32xf32>
    %9 = arith.addf %3, %8 : vector<16x32xf32>
    %c0_6 = arith.constant 0 : index
    %c0_7 = arith.constant 0 : index
    %10 = vector.load %arg7[%c0_6, %c0_7] : memref<16x32xf32, #tpu.memory_space<vmem>>, vector<16x32xf32>
    tpu.vector_store %arg7[%c0_6, %c0_7], %9 {strides = array<i32>} : memref<16x32xf32, #tpu.memory_space<vmem>>, vector<16x32xf32>,
    %c0_i32_8 = arith.constant 0 : i32
    %11 = arith.cmpi eq, %arg2, %c0_i32_8 : i32
    %12 = arith.extui %11 : i1 to i32
    %c0_i32_9 = arith.constant 0 : i32
    %13 = arith.cmpi ne, %12, %c0_i32_9 : i32
    scf.if %13 {
      %c0_10 = arith.constant 0 : index
      %c0_11 = arith.constant 0 : index
      %14 = vector.load %arg7[%c0_10, %c0_11] : memref<16x32xf32, #tpu.memory_space<vmem>>, vector<16x32xf32>
      %c0_12 = arith.constant 0 : index
      %c0_13 = arith.constant 0 : index
      %15 = vector.load %arg5[%c0_12, %c0_13] : memref<1x32xf32, #tpu.memory_space<vmem>>, vector<1x32xf32>
      %16 = vector.broadcast %15 : vector<1x32xf32> to vector<16x32xf32>
      %17 = arith.addf %14, %16 : vector<16x32xf32>
      %c0_14 = arith.constant 0 : index
      %c0_15 = arith.constant 0 : index
      %18 = vector.load %arg6[%c0_14, %c0_15] : memref<16x32xf32, #tpu.memory_space<vmem>>, vector<16x32xf32>
      tpu.vector_store %arg6[%c0_14, %c0_15], %17 {strides = array<i32>} : memref<16x32xf32, #tpu.memory_space<vmem>>, vector<16x32xf32>,
    } else {
    }
    return
  }
  func.func @transform_0(%arg0: i32, %arg1: i32, %arg2: i32) -> (i32, i32) {
    %c0_i32 = arith.constant 0 : i32
    return %arg0, %arg2 : i32, i32
  }
  func.func @transform_1(%arg0: i32, %arg1: i32, %arg2: i32) -> (i32, i32) {
    %c0_i32 = arith.constant 0 : i32
    return %arg2, %arg1 : i32, i32
  }
  func.func @transform_2(%arg0: i32, %arg1: i32, %arg2: i32) -> (i32, i32) {
    %c0_i32 = arith.constant 0 : i32
    %c0_i32_0 = arith.constant 0 : i32
    return %c0_i32, %arg1 : i32, i32
  }
  func.func @transform_3(%arg0: i32, %arg1: i32, %arg2: i32) -> (i32, i32) {
    %c0_i32 = arith.constant 0 : i32
    return %arg0, %arg1 : i32, i32
  }
}

module attributes {stable_mosaic.version = 11 : i64} {
  func.func @_matmul_kernel(%arg0: i32, %arg1: i32, %arg2: i32, %arg3: memref<16x32xf32, #tpu.memory_space<vmem>>, %arg4: memref<32x64xf32, #tpu.memory_space<vmem>>, %arg5: memref<1x64xf32, #tpu.memory_space<vmem>>, %arg6: memref<16x64xf32, #tpu.memory_space<vmem>>, %arg7: memref<16x64xf32, #tpu.memory_space<vmem>>) attributes {dimension_semantics = [#tpu.dimension_semantics<parallel>, #tpu.dimension_semantics<parallel>, #tpu.dimension_semantics<arbitrary>], iteration_bounds = array<i64: 1, 1, 1>, scalar_prefetch = 0 : i64, scratch_operands = 1 : i64, tpu.core_type = #tpu.core_type<tc>, window_params = [{transform_indices = @transform_0, window_bounds = array<i64: 16, 32>}, {transform_indices = @transform_1, window_bounds = array<i64: 32, 64>}, {transform_indices = @transform_2, window_bounds = array<i64: 1, 64>}, {transform_indices = @transform_3, window_bounds = array<i64: 16, 64>}]} {
    %c0_i32 = arith.constant 0 : i32
    %0 = arith.cmpi eq, %arg2, %c0_i32 : i32
    %1 = arith.extui %0 : i1 to i32
    %c0_i32_0 = arith.constant 0 : i32
    %2 = arith.cmpi ne, %1, %c0_i32_0 : i32
    scf.if %2 {
      %cst_10 = arith.constant 0.000000e+00 : f32
      %14 = vector.broadcast %cst_10 : f32 to vector<16x64xf32>
      %c0_11 = arith.constant 0 : index
      %c0_12 = arith.constant 0 : index
      %15 = vector.load %arg7[%c0_11, %c0_12] : memref<16x64xf32, #tpu.memory_space<vmem>>, vector<16x64xf32>
      tpu.vector_store %arg7[%c0_11, %c0_12], %14 {strides = array<i32>} : memref<16x64xf32, #tpu.memory_space<vmem>>, vector<16x64xf32>,
    } else {
    }
    %c0 = arith.constant 0 : index
    %c0_1 = arith.constant 0 : index
    %3 = vector.load %arg7[%c0, %c0_1] : memref<16x64xf32, #tpu.memory_space<vmem>>, vector<16x64xf32>
    %c0_2 = arith.constant 0 : index
    %c0_3 = arith.constant 0 : index
    %4 = vector.load %arg3[%c0_2, %c0_3] : memref<16x32xf32, #tpu.memory_space<vmem>>, vector<16x32xf32>
    %5 = arith.truncf %4 : vector<16x32xf32> to vector<16x32xbf16>
    %c0_4 = arith.constant 0 : index
    %c0_5 = arith.constant 0 : index
    %6 = vector.load %arg4[%c0_4, %c0_5] : memref<32x64xf32, #tpu.memory_space<vmem>>, vector<32x64xf32>
    %7 = arith.truncf %6 : vector<32x64xf32> to vector<32x64xbf16>
    %cst = arith.constant dense<0.000000e+00> : vector<16x64xf32>
    %8 = tpu.matmul %5, %7, %cst {dimension_numbers = #tpu.dot_dimension_numbers<[1], [0], [0], [1], [0, 0, 1, 1], [], []>} : vector<16x32xbf16>, vector<32x64xbf16>, vector<16x64xf32> -> vector<16x64xf32>
    %9 = arith.addf %3, %8 : vector<16x64xf32>
    %c0_6 = arith.constant 0 : index
    %c0_7 = arith.constant 0 : index
    %10 = vector.load %arg7[%c0_6, %c0_7] : memref<16x64xf32, #tpu.memory_space<vmem>>, vector<16x64xf32>
    tpu.vector_store %arg7[%c0_6, %c0_7], %9 {strides = array<i32>} : memref<16x64xf32, #tpu.memory_space<vmem>>, vector<16x64xf32>,
    %c0_i32_8 = arith.constant 0 : i32
    %11 = arith.cmpi eq, %arg2, %c0_i32_8 : i32
    %12 = arith.extui %11 : i1 to i32
    %c0_i32_9 = arith.constant 0 : i32
    %13 = arith.cmpi ne, %12, %c0_i32_9 : i32
    scf.if %13 {
      %c0_10 = arith.constant 0 : index
      %c0_11 = arith.constant 0 : index
      %14 = vector.load %arg7[%c0_10, %c0_11] : memref<16x64xf32, #tpu.memory_space<vmem>>, vector<16x64xf32>
      %c0_12 = arith.constant 0 : index
      %c0_13 = arith.constant 0 : index
      %15 = vector.load %arg5[%c0_12, %c0_13] : memref<1x64xf32, #tpu.memory_space<vmem>>, vector<1x64xf32>
      %16 = vector.broadcast %15 : vector<1x64xf32> to vector<16x64xf32>
      %17 = arith.addf %14, %16 : vector<16x64xf32>
      %c0_14 = arith.constant 0 : index
      %c0_15 = arith.constant 0 : index
      %18 = vector.load %arg6[%c0_14, %c0_15] : memref<16x64xf32, #tpu.memory_space<vmem>>, vector<16x64xf32>
      tpu.vector_store %arg6[%c0_14, %c0_15], %17 {strides = array<i32>} : memref<16x64xf32, #tpu.memory_space<vmem>>, vector<16x64xf32>,
    } else {
    }
    return
  }
  func.func @transform_0(%arg0: i32, %arg1: i32, %arg2: i32) -> (i32, i32) {
    %c0_i32 = arith.constant 0 : i32
    return %arg0, %arg2 : i32, i32
  }
  func.func @transform_1(%arg0: i32, %arg1: i32, %arg2: i32) -> (i32, i32) {
    %c0_i32 = arith.constant 0 : i32
    return %arg2, %arg1 : i32, i32
  }
  func.func @transform_2(%arg0: i32, %arg1: i32, %arg2: i32) -> (i32, i32) {
    %c0_i32 = arith.constant 0 : i32
    %c0_i32_0 = arith.constant 0 : i32
    return %c0_i32, %arg1 : i32, i32
  }
  func.func @transform_3(%arg0: i32, %arg1: i32, %arg2: i32) -> (i32, i32) {
    %c0_i32 = arith.constant 0 : i32
    return %arg0, %arg1 : i32, i32
  }
}

</mosaic_0001>

<bundles_post_ra>
// kernel: transformer_forward.32
= control target key start
LH: loop header
LB: loop body
LE: loop exit
PB: predicated region body
PF: predicated region fallthrough
CT: control target
= control target key end

     0   :  { %vm19_vm0 = vcmask 523264   ;;  %v78_v3 = vmov 0.0   ;;  %vm33_vm1 = vcmask 261120   ;;  %s132_s1 = inlined_call_operand.vmem [shape: f32[32,64], index: 1, kind: input, shape index: {}]   ;;  %s133_s0 = inlined_call_operand.vmem [shape: f32[16,32], index: 0, kind: input, shape index: {}]   ;;  %s134_s2 = inlined_call_operand.vmem [shape: f32[1,64], index: 2, kind: input, shape index: {}]   ;;  %s135_s3 = inlined_call_operand.vmem [shape: f32[16,64], index: 3, kind: output, shape index: {}]  }
   0x1   :  { %v29_v0 = vld [vmem:[%s132_s1 + $0x10] sm:$0xff]  ;;  %v30_v1 = vld [vmem:[%s132_s1 + $0x18] sm:$0xff]  ;;  %v27_v2 = vld [vmem:[%s132_s1] sm:$0xff]  ;;  %20 = vst.msk [vmem:[#allocation2] sm:$0xff] %vm19_vm0, %v78_v3 }
   0x2   :  { %v32_v4 = vpack.c.bf16 %v30_v1, %v29_v0  ;;  %v28_v5 = vld [vmem:[%s132_s1 + $0x8] sm:$0xff]  ;;  %21 = vst.msk [vmem:[#allocation2 + $0x8] sm:$0xff] %vm19_vm0, %v78_v3  ;;  %v24_v7 = vld [vmem:[%s133_s0] sm:$0xff] }
   0x3   :  { %v31_v6 = vpack.c.bf16 %v28_v5, %v27_v2  ;;  %v25_v8 = vld [vmem:[%s133_s0 + $0x8] sm:$0xff]  ;;  %v77_v14 = vld [vmem:[%s134_s2] ss:$0 sm:$0xff] }
   0x4   :  { %43 = vmatpush.bf16.msra.mxu0 %v32_v4  ;;  %v26_v9 = vpack.c.bf16 %v25_v8, %v24_v7 }
   0x8   :  { %44 = vmatpush.bf16.msra.mxu0 %v31_v6  ;;  %v22_v10 = vld [vmem:[#allocation2] sm:$0xff] }
   0x9   :  { %v23_v13 = vld [vmem:[#allocation2 + $0x8] sm:$0xff] }
   0xb   :  { %75 = vmatmul.msk.bf16.vlgmr.msra.gmra.mxu0 %vm33_vm1, %v26_v9 }
  0x88   :  { %v46_v11 = vpop.f32.mrf.mxu0 }
  0x89   :  { %v51_v12 = vadd.f32 %v46_v11, %v22_v10 }
  0x8b   :  { %54 = vst.msk [vmem:[#allocation2] sm:$0xff] %vm19_vm0, %v51_v12 }
  0x90   :  { %v48_v15 = vpop.f32.mrf.mxu0 }
  0x91   :  { %v52_v16 = vadd.f32 %v48_v15, %v23_v13 }
  0x92   :  { %v59_v17 = vld [vmem:[#allocation2] sm:$0xff] }
  0x93   :  { %v65_v18 = vadd.f32 %v77_v14, %v59_v17  ;;  %55 = vst.msk [vmem:[#allocation2 + $0x8] sm:$0xff] %vm19_vm0, %v52_v16 }
  0x95   :  { %v67_v19 = vmax.f32 %v65_v18, 0.0 }
  0x97   :  { %69 = vst.msk [vmem:[%s135_s3] sm:$0xff] %vm19_vm0, %v67_v19 }
  0x9a   :  { %v60_v20 = vld [vmem:[#allocation2 + $0x8] sm:$0xff] }
  0x9b   :  { %v66_v21 = vadd.f32 %v77_v14, %v60_v20 }
  0x9d   :  { %v68_v22 = vmax.f32 %v66_v21, 0.0 }
  0x9f   :  { %70 = vst.msk [vmem:[%s135_s3 + $0x8] sm:$0xff] %vm19_vm0, %v68_v22 }

// kernel: transformer_forward.29
= control target key start
LH: loop header
LB: loop body
LE: loop exit
PB: predicated region body
PF: predicated region fallthrough
CT: control target
= control target key end

     0   :  { %s521_s12 = smov 0   ;;  %s523_s13 = smov 0   ;;  %s570_s0 = inlined_call_operand.vmem [shape: f32[16,32], index: 0, kind: input, shape index: {}]   ;;  %s571_s1 = inlined_call_operand.vmem [shape: f32[3,32,32], index: 1, kind: input, shape index: {}]   ;;  %s572_s2 = inlined_call_operand.vmem [shape: f32[3,1,32], index: 2, kind: input, shape index: {}]   ;;  %s573_s3 = inlined_call_operand.vmem [shape: f32[3,16,32], index: 3, kind: output, shape index: {}]  }
   0x1   :  { %s525_s14 = smov 0  }
   0x2 LB: > { %s28_s15 = sadd.s32 1, %s494_s13  ;;  %p440_p0 = scmp.ge.s32.totalorder %s498_s14, 1  ;;  %s498_s14 = sphi %s525_s14, %s13_s14   ;;  %s494_s13 = sphi %s523_s13, %s575_s13   ;;  %s490_s12 = sphi %s521_s12, %s574_s12  }
   0x3   : > { %p30_p1 = scmp.ge.s32.totalorder %s28_s15, 3  ;;  %p189_p2 = scmp.lt.s32.totalorder %s498_s14, 4 }
   0x5   : > { %s577_s15 = smov (%p30_p1, %s28_s15), 0  ;;  %p190_p3 = pnand %p440_p0, %p189_p2 }
   0x6   : > { %p242_p4 = scmp.lt.s32.totalorder (!%p190_p3), %s490_s12, 2 }
   0x7   : > { %193 = sbr.rel (%p190_p3) target bundleno = 172 (0xac), region = 32 }
   0xc   : > { %vm269_vm0 = vcmask 261120   ;;  %v500_v0 = vmov 0.0   ;;  %s579_s12 = smov (!%p242_p4, %s490_s12), 2  ;;  %v274_v7 = vld [vmem:[%s570_s0] sm:$0xff]  ;;  %v275_v8 = vld [vmem:[%s570_s0 + $0x8] sm:$0xff] }
   0xd   : > { %270 = vst.msk [vmem:[#allocation2] sm:$0xff] %vm269_vm0, %v500_v0  ;;  %s448_s16 = sshll.u32 %s579_s12, 5  ;;  %s253_s19 = scalar_lea.vmem %s572_s2, %s579_s12  ;;  %v276_v9 = vpack.c.bf16 %v275_v8, %v274_v7 }
   0xe   : > { %271 = vst.msk [vmem:[#allocation2 + $0x8] sm:$0xff] %vm269_vm0, %v500_v0  ;;  %s249_s22 = scalar_lea.vmem %s571_s1, %s448_s16  ;;  %s449_s27 = sshll.u32 %s579_s12, 4  ;;  %v475_v14 = vld [vmem:[%s253_s19] ss:$0 sm:$0xff] }
   0xf   : > { %v279_v1 = vld [vmem:[%s249_s22 + $0x10] sm:$0xff]  ;;  %v280_v2 = vld [vmem:[%s249_s22 + $0x18] sm:$0xff]  ;;  %v277_v3 = vld [vmem:[%s249_s22] sm:$0xff]  ;;  %s262_s30 = scalar_lea.vmem %s573_s3, %s449_s27 }
  0x10   : > { %v282_v4 = vpack.c.bf16 %v280_v2, %v279_v1  ;;  %v278_v5 = vld [vmem:[%s249_s22 + $0x8] sm:$0xff] }
  0x11   : > { %v281_v6 = vpack.c.bf16 %v278_v5, %v277_v3 }
  0x12   : > { %293 = vmatpush.bf16.msra.mxu0 %v282_v4 }
  0x14   : > { %v272_v10 = vld [vmem:[#allocation2] sm:$0xff] }
  0x15   : > { %v273_v13 = vld [vmem:[#allocation2 + $0x8] sm:$0xff] }
  0x16   : > { %294 = vmatpush.bf16.msra.mxu0 %v281_v6 }
  0x19   : > { %445 = vmatmul.msk.bf16.vlgmr.msra.gmra.mxu0 %vm269_vm0, %v276_v9 }
  0x96   : > { %v296_v11 = vpop.f32.mrf.mxu0 }
  0x97   : > { %v301_v12 = vadd.f32 %v296_v11, %v272_v10 }
  0x99   : > { %303 = vst.msk [vmem:[#allocation2] sm:$0xff] %vm269_vm0, %v301_v12 }
  0x9e   : > { %v298_v15 = vpop.f32.mrf.mxu0 }
  0x9f   : > { %v302_v16 = vadd.f32 %v298_v15, %v273_v13 }
  0xa0   : > { %v308_v17 = vld [vmem:[#allocation2] sm:$0xff] }
  0xa1   : > { %v314_v18 = vadd.f32 %v475_v14, %v308_v17  ;;  %304 = vst.msk [vmem:[#allocation2 + $0x8] sm:$0xff] %vm269_vm0, %v302_v16 }
  0xa3   : > { %316 = vst.msk [vmem:[%s262_s30] sm:$0xff] %vm269_vm0, %v314_v18 }
  0xa8   : > { %v309_v19 = vld [vmem:[#allocation2 + $0x8] sm:$0xff] }
  0xa9   : > { %v315_v20 = vadd.f32 %v475_v14, %v309_v19 }
  0xab   : > { %317 = vst.msk [vmem:[%s262_s30 + $0x8] sm:$0xff] %vm269_vm0, %v315_v20 }
  0xac PF: > { %s13_s14 = sadd.s32 1, %s498_s14   ;;  %s574_s12 = smov %s494_s13 }
  0xad   : > { %p10_p5 = scmp.ge.s32.totalorder %s13_s14, 5   ;;  %s575_s13 = smov %s577_s15 }
  0xaf   :  { %12 = sbr.rel (!%p10_p5) target bundleno = 2 (0x2), region = 76 }

// kernel: transformer_forward.31
= control target key start
LH: loop header
LB: loop body
LE: loop exit
PB: predicated region body
PF: predicated region fallthrough
CT: control target
= control target key end

     0   :  { %vm28_vm0 = vcmask 261120   ;;  %v160_v3 = vmov 0.0   ;;  %v161_v27 = vmov 32.0   ;;  %s247_s1 = inlined_call_operand.vmem [shape: f32[32,32], index: 1, kind: input, shape index: {}]   ;;  %s248_s0 = inlined_call_operand.vmem [shape: f32[16,32], index: 0, kind: input, shape index: {}]   ;;  %s249_s2 = inlined_call_operand.vmem [shape: f32[1,32], index: 2, kind: input, shape index: {}]   ;;  %s250_s3 = inlined_call_operand.vmem [shape: f32[16,32], index: 3, kind: input, shape index: {}]   ;;  %s251_s4 = inlined_call_operand.vmem [shape: f32[1,32], index: 4, kind: input, shape index: {}]   ;;  %s252_s5 = inlined_call_operand.vmem [shape: f32[1,32], index: 5, kind: input, shape index: {}]   ;;  %s253_s6 = inlined_call_operand.vmem [shape: f32[16,32], index: 6, kind: output, shape index: {}]  }
   0x1   :  { %v38_v0 = vld [vmem:[%s247_s1 + $0x10] sm:$0xff]  ;;  %v39_v1 = vld [vmem:[%s247_s1 + $0x18] sm:$0xff]  ;;  %v36_v2 = vld [vmem:[%s247_s1] sm:$0xff]  ;;  %29 = vst.msk [vmem:[#allocation2] sm:$0xff] %vm28_vm0, %v160_v3  ;;  %154 = vrcp.f32 %v161_v27 }
   0x2   :  { %v41_v4 = vpack.c.bf16 %v39_v1, %v38_v0  ;;  %v37_v5 = vld [vmem:[%s247_s1 + $0x8] sm:$0xff]  ;;  %30 = vst.msk [vmem:[#allocation2 + $0x8] sm:$0xff] %vm28_vm0, %v160_v3  ;;  %v33_v7 = vld [vmem:[%s248_s0] sm:$0xff] }
   0x3   :  { %v40_v6 = vpack.c.bf16 %v37_v5, %v36_v2  ;;  %v34_v8 = vld [vmem:[%s248_s0 + $0x8] sm:$0xff]  ;;  %v151_v14 = vld [vmem:[%s249_s2] ss:$0 sm:$0xff] }
   0x4   :  { %52 = vmatpush.bf16.msra.mxu0 %v41_v4  ;;  %v35_v9 = vpack.c.bf16 %v34_v8, %v33_v7  ;;  %v75_v18 = vld [vmem:[%s250_s3] sm:$0xff]  ;;  %v76_v23 = vld [vmem:[%s250_s3 + $0x8] sm:$0xff] }
   0x5   :  { %v152_v58 = vld [vmem:[%s251_s4] ss:$0 sm:$0xff] }
   0x6   :  { %v153_v61 = vld [vmem:[%s252_s5] ss:$0 sm:$0xff] }
   0x7   :  { %v155_v28 = vpop.eup %154 }
   0x8   :  { %53 = vmatpush.bf16.msra.mxu0 %v40_v6  ;;  %v31_v10 = vld [vmem:[#allocation2] sm:$0xff]  ;;  %v86_v29 = vmul.f32 32.0, %v155_v28  ;;  %vm90_vm1 = vweird.f32 %v155_v28 }
   0x9   :  { %v32_v13 = vld [vmem:[#allocation2 + $0x8] sm:$0xff] }
   0xa   :  { %v87_v30 = vsub.f32 1.0, %v86_v29 }
   0xb   :  { %148 = vmatmul.msk.bf16.vlgmr.msra.gmra.mxu0 %vm28_vm0, %v35_v9 }
   0xc   :  { %v88_v31 = vmul.f32 %v155_v28, %v87_v30 }
   0xe   :  { %v89_v32 = vadd.f32 %v155_v28, %v88_v31 }
  0x10   :  { %v91_v33 = vsel %vm90_vm1, %v155_v28, %v89_v32 }
  0x88   :  { %v55_v11 = vpop.f32.mrf.mxu0 }
  0x89   :  { %v60_v12 = vadd.f32 %v55_v11, %v31_v10 }
  0x8b   :  { %62 = vst.msk [vmem:[#allocation2] sm:$0xff] %vm28_vm0, %v60_v12 }
  0x90   :  { %v57_v15 = vpop.f32.mrf.mxu0 }
  0x91   :  { %v61_v16 = vadd.f32 %v57_v15, %v32_v13 }
  0x92   :  { %v67_v17 = vld [vmem:[#allocation2] sm:$0xff] }
  0x93   :  { %63 = vst.msk [vmem:[#allocation2 + $0x8] sm:$0xff] %vm28_vm0, %v61_v16  ;;  %v73_v19 = vadd.f32 %v151_v14, %v67_v17 }
  0x95   :  { %v77_v20 = vadd.f32 %v75_v18, %v73_v19 }
  0x97   :  { %v79_v21 = vsel %vm28_vm0, %v77_v20, 0.0 }
  0x98   :  { %80 = vadd.xlane.f32.xlu0 %v79_v21 }
  0x9a   :  { %v68_v22 = vld [vmem:[#allocation2 + $0x8] sm:$0xff] }
  0x9b   :  { %v74_v24 = vadd.f32 %v151_v14, %v68_v22 }
  0x9d   :  { %v78_v25 = vadd.f32 %v76_v23, %v74_v24 }
  0x9f   :  { %v82_v26 = vsel %vm28_vm0, %v78_v25, 0.0 }
  0xa0   :  { %83 = vadd.xlane.f32.xlu0 %v82_v26 }
 0x10b   :  { %v81_v34 = vpop.xlane.xlu0 %80 }
 0x10c   :  { %v92_v35 = vmul.f32 %v91_v33, %v81_v34 }
 0x10e   :  { %v94_v36 = vsub.f32 %v77_v20, %v92_v35 }
 0x110   :  { %v96_v37 = vmul.f32 %v94_v36, %v94_v36 }
 0x112   :  { %v98_v38 = vsel %vm28_vm0, %v96_v37, 0.0 }
 0x113   :  { %99 = vadd.xlane.f32.xlu1 %v98_v38  ;;  %v84_v39 = vpop.xlane.xlu0 %83 }
 0x114   :  { %v93_v40 = vmul.f32 %v91_v33, %v84_v39 }
 0x116   :  { %v95_v41 = vsub.f32 %v78_v25, %v93_v40 }
 0x118   :  { %v97_v42 = vmul.f32 %v95_v41, %v95_v41 }
 0x11a   :  { %v101_v43 = vsel %vm28_vm0, %v97_v42, 0.0 }
 0x11b   :  { %102 = vadd.xlane.f32.xlu1 %v101_v43 }
 0x186   :  { %v100_v44 = vpop.xlane.xlu1 %99 }
 0x187   :  { %v104_v45 = vmul.f32 %v100_v44, %v91_v33 }
 0x189   :  { %v106_v46 = vadd.f32 1e-05, %v104_v45 }
 0x18b   :  { %156 = vrsqrt.f32 %v106_v46  ;;  %vm114_vm3 = vweird.f32 %v106_v46 }
 0x18e   :  { %v103_v47 = vpop.xlane.xlu1 %102 }
 0x18f   :  { %v105_v48 = vmul.f32 %v103_v47, %v91_v33 }
 0x191   :  { %v157_v49 = vpop.eup %156  ;;  %v107_v50 = vadd.f32 1e-05, %v105_v48 }
 0x192   :  { %v109_v51 = vmul.f32 %v157_v49, %v106_v46  ;;  %vm115_vm2 = vweird.f32 %v157_v49 }
 0x193   :  { %158 = vrsqrt.f32 %v107_v50  ;;  %vm116_vm4 = vmor %vm114_vm3, %vm115_vm2  ;;  %vm124_vm6 = vweird.f32 %v107_v50 }
 0x194   :  { %v110_v52 = vmul.f32 %v157_v49, %v109_v51 }
 0x196   :  { %v111_v53 = vmul.f32 0.5, %v110_v52 }
 0x198   :  { %v112_v54 = vsub.f32 1.5, %v111_v53 }
 0x199   :  { %v159_v55 = vpop.eup %158 }
 0x19a   :  { %v113_v56 = vmul.f32 %v157_v49, %v112_v54  ;;  %v119_v57 = vmul.f32 %v159_v55, %v107_v50  ;;  %vm125_vm5 = vweird.f32 %v159_v55 }
 0x19b   :  { %vm126_vm7 = vmor %vm124_vm6, %vm125_vm5 }
 0x19c   :  { %v117_v59 = vsel %vm116_vm4, %v157_v49, %v113_v56  ;;  %v120_v60 = vmul.f32 %v159_v55, %v119_v57 }
 0x19d   :  { %v128_v62 = vmul.f32 %v117_v59, %v94_v36 }
 0x19e   :  { %v121_v63 = vmul.f32 0.5, %v120_v60 }
 0x19f   :  { %v134_v0 = vmul.f32 %v152_v58, %v128_v62 }
 0x1a0   :  { %v122_v1 = vsub.f32 1.5, %v121_v63 }
 0x1a1   :  { %v140_v2 = vadd.f32 %v153_v61, %v134_v0 }
 0x1a2   :  { %v123_v3 = vmul.f32 %v159_v55, %v122_v1 }
 0x1a3   :  { %142 = vst.msk [vmem:[%s253_s6] sm:$0xff] %vm28_vm0, %v140_v2 }
 0x1a4   :  { %v127_v4 = vsel %vm126_vm7, %v159_v55, %v123_v3 }
 0x1a5   :  { %v129_v5 = vmul.f32 %v127_v4, %v95_v41 }
 0x1a7   :  { %v135_v6 = vmul.f32 %v152_v58, %v129_v5 }
 0x1a9   :  { %v141_v7 = vadd.f32 %v153_v61, %v135_v6 }
 0x1ab   :  { %143 = vst.msk [vmem:[%s253_s6 + $0x8] sm:$0xff] %vm28_vm0, %v141_v7 }

// kernel: transformer_forward.30
= control target key start
LH: loop header
LB: loop body
LE: loop exit
PB: predicated region body
PF: predicated region fallthrough
CT: control target
= control target key end

     0   :  { %s913_s12 = smov 0   ;;  %s915_s13 = smov 0   ;;  %s1027_s0 = inlined_call_operand.vmem [shape: f32[3,2,8,32], index: 0, kind: input, shape index: {}, may-alias: {0,1,2}]   ;;  %s1028_s1 = inlined_call_operand.vmem [shape: f32[3,2,8,32], index: 1, kind: input, shape index: {}, may-alias: {0,1,2}]   ;;  %s1029_s2 = inlined_call_operand.vmem [shape: f32[3,2,8,32], index: 2, kind: input, shape index: {}, may-alias: {0,1,2}]   ;;  %s1030_s3 = inlined_call_operand.vmem [shape: f32[2,8,32], index: 3, kind: output, shape index: {}]  }
   0x1   :  { %s917_s14 = smov 0  }
   0x2 LB: > { %s32_s15 = sadd.s32 1, %s875_s13  ;;  %p776_p0 = scmp.ge.s32.totalorder %s879_s14, 1  ;;  %s879_s14 = sphi %s917_s14, %s13_s14   ;;  %s875_s13 = sphi %s915_s13, %s1032_s13   ;;  %s871_s12 = sphi %s913_s12, %s1031_s12  }
   0x3   : > { %p34_p1 = scmp.ge.s32.totalorder %s32_s15, 2  ;;  %p192_p2 = scmp.lt.s32.totalorder %s879_s14, 3 }
   0x5   : > { %s1034_s15 = smov (%p34_p1, %s32_s15), 0  ;;  %p193_p3 = pnand %p776_p0, %p192_p2 }
   0x6   : > { %p236_p4 = scmp.lt.s32.totalorder (!%p193_p3), %s871_s12, 1  ;;  %s882_s23 = smov (!%p193_p3), 120  }
   0x7   : > { %196 = sbr.rel (%p193_p3) target bundleno = 1294 (0x50e), region = 32  ;;  %s883_s24 = smov (!%p193_p3), 112  }
   0x8   : > { %s886_s25 = smov (!%p193_p3), 104   ;;  %s890_s29 = smov (!%p193_p3), 8  }
   0x9   : > { %s891_s30 = smov (!%p193_p3), 16   ;;  %s892_s4 = smov (!%p193_p3), 24  }
   0xc   : > { %s1036_s12 = smov (!%p236_p4, %s871_s12), 1  ;;  %vm281_vm0 = vcmask 64512   ;;  %vm271_vm1 = vcmask 261120   ;;  %v881_v6 = vmov -inf   ;;  %v884_v14 = vmov 0  }
   0xd   : > { %s931_s16 = sshll.u32 %s1036_s12, 3  ;;  %272 = vst.msk [vmem:[#allocation2] sm:$0xff] %vm271_vm1, %v881_v6  ;;  %829 = vset.pattern.permute.xlu1 %v884_v14  ;;  %833 = vset.pattern.permute.xlu0 %v884_v14  ;;  %v885_v15 = vmov 0.0   ;;  %vm328_vm2 = vcmask 1043456   ;;  %v887_v40 = vmov 8   ;;  %v888_v60 = vmov 16  }
   0xe   : > { %s714_s19 = scalar_lea.vmem %s1028_s1, %s931_s16  ;;  %s242_s22 = scalar_lea.vmem %s1027_s0, %s931_s16  ;;  %273 = vst.msk [vmem:[#allocation3] sm:$0xff] %vm271_vm1, %v885_v15  ;;  %830 = vset.pattern.permute.xlu2 %v887_v40  ;;  %vm450_vm3 = vcmask 130112   ;;  %vm539_vm4 = vcmask 195712   ;;  %vm628_vm5 = vcmask 261312  }
   0xf   : > { %v781_v0 = vld [vmem:[%s714_s19 + $0x10] sm:$0xff]  ;;  %v275_v3 = vld [vmem:[%s242_s22] sm:$0xff]  ;;  %274 = vst.msk [vmem:[#allocation4] sm:$0xff] %vm271_vm1, %v885_v15  ;;  %s718_s28 = scalar_lea.vmem %s1029_s2, %s931_s16  ;;  %s265_s7 = scalar_lea.vmem %s1030_s3, %s931_s16 }
  0x10   : > { %v279_v1 = vpack.c.bf16 %v781_v0, %v781_v0  ;;  %v278_v4 = vpack.c.bf16 %v275_v3, %v275_v3  ;;  %v782_v22 = vld [vmem:[%s718_s28 + $0x20] sm:$0xff] }
  0x11   : > { %v280_v23 = vpack.c.bf16 %v782_v22, %v782_v22 }
  0x12   : > { %v286_v2 = vsel %vm281_vm0, %v279_v1, 0  ;;  %v362_v5 = vunpack.c.l.b16 %v278_v4  ;;  %v367_v12 = vunpack.c.l.b16 %v279_v1 }
  0x13   : > { %295 = vmatpush.bf16.xpose.msra.mxu0 %v286_v2  ;;  %v330_v24 = vsel %vm328_vm2, %v280_v23, 0  ;;  %v415_v41 = vunpack.c.l.b16 %v280_v23  ;;  %v889_v23 = vmov 24  }
  0x14   : > { %v363_v7 = vpack.c.b16 %v362_v5, %v362_v5  ;;  %v368_v13 = vpack.c.b16 %v367_v12, %v367_v12  ;;  %v302_v16 = vld [vmem:[#allocation2] sm:$0xff]  ;;  %339 = vmatpush.bf16.msra.mxu1 %v330_v24 }
  0x15   : > { %v416_v42 = vpack.c.b16 %v415_v41, %v415_v41  ;;  %v303_v56 = vld [vmem:[#allocation3] sm:$0xff] }
  0x16   : > { %364 = vrot.lane.b32.xlu1 %v363_v7, %s882_s23  ;;  %461 = vrot.lane.b32.xlu2 %v368_v13, %s883_s24  ;;  %v345_v24 = vld [vmem:[#allocation4] sm:$0xff] }
  0x1a   : > { %783 = vmatmul.msk.bf16.vlgmr.msra.gmra.mxu0 %vm281_vm0, %v278_v4 }
  0x1e   : > { %459 = vrot.lane.b32.xlu2 %v363_v7, %s883_s24 }
  0x26   : > { %548 = vrot.lane.b32.xlu2 %v363_v7, %s886_s25 }
  0x70   : > { %v462_v25 = vpop.permute.xlu2 %461 }
  0x71   : > { %v467_v26 = vsel %vm281_vm0, %v462_v25, 0 }
  0x72   : > { %476 = vmatpush.bf16.xpose.msrb.mxu1 %v467_v26 }
  0x78   : > { %v460_v34 = vpop.permute.xlu2 %459 }
  0x80   : > { %v549_v45 = vpop.permute.xlu2 %548 }
  0x88   : > { %v365_v21 = vpop.permute.xlu1 %364 }
  0x97   : > { %v297_v8 = vpop.f32.mrf.mxu0 }
  0x98   : > { %v301_v9 = vmul.f32 0.35355338, %v297_v8 }
  0x9a   : > { %v304_v10 = vsel %vm281_vm0, %v301_v9, -inf }
  0x9b   : > { %305 = vmax.xlane.f32.xlu0 %v304_v10 }
  0x9f   : > { %v299_v11 = vpop.f32.mrf.mxu0 }
  0xaf   : > { %369 = vrot.lane.b32.xlu0 %v368_v13, %s882_s23 }
 0x10e   : > { %v306_v17 = vpop.xlane.xlu0 %305 }
 0x10f   : > { %v307_v18 = vmax.f32 %v302_v16, %v306_v17 }
 0x111   : > { %313 = vperm.xlu1 %829, %v307_v18   ;;  %v308_v53 = vsub.f32 %v302_v16, %v307_v18 }
 0x113   : > { %v309_v54 = vmul.f32 1.442695, %v308_v53 }
 0x119   : > { %550 = vrot.lane.b32.xlu1 %v368_v13, %s886_s25 }
 0x121   : > { %v370_v19 = vpop.permute.xlu0 %369 }
 0x122   : > { %v375_v20 = vsel %vm281_vm0, %v370_v19, 0 }
 0x123   : > { %384 = vmatpush.bf16.xpose.msra.mxu2 %v375_v20 }
 0x12a   : > { %785 = vmatmul.msk.bf16.vlgmr.msra.gmra.mxu2 %vm281_vm0, %v365_v21 }
 0x183   : > { %v314_v27 = vpop.permute.xlu1 %313 }
 0x184   : > { %v316_v28 = vsub.f32 %v301_v9, %v314_v27  ;;  %354 = vst.msk [vmem:[#allocation2] sm:$0xff] %vm281_vm0, %v314_v27 }
 0x186   : > { %v317_v29 = vmul.f32 1.442695, %v316_v28 }
 0x188   : > { %839 = vpow2.f32 %v317_v29 }
 0x189   : > { %841 = vpow2.f32 %v309_v54 }
 0x18b   : > { %v551_v32 = vpop.permute.xlu1 %550  ;;  %v973_v49 = vld [vmem:[#allocation2] sm:$0xff] }
 0x18c   : > { %v556_v33 = vsel %vm281_vm0, %v551_v32, 0 }
 0x18d   : > { %565 = vmatpush.bf16.xpose.msrb.mxu0 %v556_v33 }
 0x18e   : > { %v840_v30 = vpop.eup %839 }
 0x18f   : > { %v324_v31 = vpack.c.bf16 %v840_v30, %v840_v30  ;;  %v320_v39 = vsel %vm281_vm0, %v840_v30, 0.0  ;;  %v842_v55 = vpop.eup %841 }
 0x190   : > { %v319_v58 = vmul.f32 %v842_v55, %v303_v56 }
 0x191   : > { %784 = vmatmul.msk.bf16.vlgmr.msra.gmra.mxu1 %vm281_vm0, %v324_v31 }
 0x194   : > { %789 = vmatmul.msk.bf16.vlgmr.msrb.gmra.mxu0 %vm281_vm0, %v549_v45 }
 0x1a1   : > { %787 = vmatmul.msk.bf16.vlgmr.msrb.gmra.mxu1 %vm281_vm0, %v460_v34 }
 0x1ad   : > { %v386_v35 = vpop.f32.mrf.mxu2 }
 0x1ae   : > { %v390_v36 = vmul.f32 0.35355338, %v386_v35 }
 0x1b0   : > { %v393_v37 = vsel %vm281_vm0, %v390_v36, -inf }
 0x1b1   : > { %394 = vmax.xlane.f32.xlu1 %v393_v37 }
 0x1b5   : > { %v388_v38 = vpop.f32.mrf.mxu2 }
 0x1b9   : > { %321 = vadd.xlane.f32.xlu1 %v320_v39 }
 0x1d2   : > { %506 = vrot.lane.b32.xlu1 %v416_v42, %s883_s24 }
 0x20e   : > { %v968_v43 = vpop.f32.mrf.mxu1 }
 0x211   : > { %v567_v2 = vpop.f32.mrf.mxu0 }
 0x212   : > { %v986_v12 = vmul.f32 0.35355338, %v567_v2 }
 0x214   : > { %v574_v13 = vsel %vm281_vm0, %v986_v12, -inf }
 0x216   : > { %v343_v44 = vpop.f32.mrf.mxu1 }
 0x219   : > { %v569_v6 = vpop.f32.mrf.mxu0 }
 0x21e   : > { %v478_v46 = vpop.f32.mrf.mxu1 }
 0x21f   : > { %v482_v47 = vmul.f32 0.35355338, %v478_v46 }
 0x221   : > { %v485_v48 = vsel %vm281_vm0, %v482_v47, -inf }
 0x222   : > { %486 = vmax.xlane.f32.xlu0 %v485_v48 }
 0x224   : > { %v395_v50 = vpop.xlane.xlu1 %394 }
 0x225   : > { %v976_v51 = vmax.f32 %v973_v49, %v395_v50 }
 0x226   : > { %v480_v52 = vpop.f32.mrf.mxu1 }
 0x227   : > { %402 = vperm.xlu2 %830, %v976_v51   ;;  %v397_v29 = vsub.f32 %v973_v49, %v976_v51 }
 0x229   : > { %v398_v32 = vmul.f32 1.442695, %v397_v29 }
 0x22c   : > { %v322_v57 = vpop.xlane.xlu1 %321 }
 0x22d   : > { %v323_v59 = vadd.f32 %v322_v57, %v319_v58 }
 0x22f   : > { %831 = vset.pattern.permute.xlu2 %v888_v60 }
 0x236   : > { %417 = vrot.lane.b32.xlu0 %v416_v42, %s882_s23 }
 0x23e   : > { %595 = vrot.lane.b32.xlu0 %v416_v42, %s886_s25 }
 0x244   : > { %v507_v14 = vpop.permute.xlu1 %506 }
 0x245   : > { %v512_v15 = vsel %vm328_vm2, %v507_v14, 0 }
 0x246   : > { %357 = vperm.xlu0 %833, %v323_v59  }
 0x24e   : > { %835 = vset.pattern.permute.xlu0 %v888_v60 }
 0x281   : > { %v403_v61 = vpop.permute.xlu2 %402 }
 0x282   : > { %v405_v62 = vsub.f32 %v390_v36, %v403_v61  ;;  %452 = vst.msk [vmem:[#allocation2] sm:$0xff] %vm450_vm3, %v403_v61 }
 0x284   : > { %v406_v63 = vmul.f32 1.442695, %v405_v62 }
 0x286   : > { %843 = vpow2.f32 %v406_v63 }
 0x289   : > { %v483_v3 = vld [vmem:[#allocation2] sm:$0xff] }
 0x28c   : > { %v844_v0 = vpop.eup %843 }
 0x28d   : > { %v409_v1 = vsel %vm281_vm0, %v844_v0, 0.0  ;;  %v413_v9 = vpack.c.bf16 %v844_v0, %v844_v0 }
 0x28e   : > { %410 = vadd.xlane.f32.xlu1 %v409_v1 }
 0x295   : > { %v487_v4 = vpop.xlane.xlu0 %486 }
 0x296   : > { %v488_v5 = vmax.f32 %v483_v3, %v487_v4 }
 0x298   : > { %494 = vperm.xlu2 %831, %v488_v5   ;;  %v489_v28 = vsub.f32 %v483_v3, %v488_v5 }
 0x29a   : > { %v490_v30 = vmul.f32 1.442695, %v489_v28 }
 0x2a0   : > { %832 = vset.pattern.permute.xlu2 %v889_v23 }
 0x2a7   : > { %348 = vperm.xlu1 %829, %v842_v55  }
 0x2a8   : > { %v418_v7 = vpop.permute.xlu0 %417 }
 0x2a9   : > { %v423_v8 = vsel %vm328_vm2, %v418_v7, 0 }
 0x2aa   : > { %432 = vmatpush.bf16.msra.mxu3 %v423_v8 }
 0x2ad   : > { %786 = vmatmul.msk.bf16.vlgmr.msra.gmra.mxu3 %vm281_vm0, %v413_v9 }
 0x2ae   : > { %521 = vmatpush.bf16.msrb.mxu3 %v512_v15 }
 0x2af   : > { %837 = vset.pattern.permute.xlu1 %v888_v60 }
 0x2b0   : > { %v596_v10 = vpop.permute.xlu0 %595 }
 0x2b1   : > { %v601_v21 = vsel %vm328_vm2, %v596_v10, 0 }
 0x2b2   : > { %610 = vmatpush.bf16.msrb.mxu2 %v601_v21 }
 0x2b8   : > { %v358_v11 = vpop.permute.xlu0 %357 }
 0x2b9   : > { %360 = vst.msk [vmem:[#allocation3] sm:$0xff] %vm281_vm0, %v358_v11 }
 0x2c0   : > { %v392_v39 = vld [vmem:[#allocation3] sm:$0xff] }
 0x2c1   : > { %575 = vmax.xlane.f32.xlu2 %v574_v13 }
 0x2f2   : > { %v495_v16 = vpop.permute.xlu2 %494 }
 0x2f3   : > { %v497_v17 = vsub.f32 %v482_v47, %v495_v16  ;;  %541 = vst.msk [vmem:[#allocation2] sm:$0xff] %vm539_vm4, %v495_v16 }
 0x2f5   : > { %v498_v18 = vmul.f32 1.442695, %v497_v17 }
 0x2f7   : > { %845 = vpow2.f32 %v498_v18 }
 0x2f8   : > { %847 = vpow2.f32 %v490_v30 }
 0x2f9   : > { %849 = vpow2.f32 %v398_v32 }
 0x2fa   : > { %v572_v33 = vld [vmem:[#allocation2] sm:$0xff] }
 0x2fd   : > { %v846_v19 = vpop.eup %845 }
 0x2fe   : > { %v505_v20 = vpack.c.bf16 %v846_v19, %v846_v19  ;;  %v848_v37 = vpop.eup %847  ;;  %v501_v46 = vsel %vm281_vm0, %v846_v19, 0.0 }
 0x2ff   : > { %v850_v42 = vpop.eup %849 }
 0x300   : > { %788 = vmatmul.msk.bf16.vlgmr.msrb.gmra.mxu3 %vm281_vm0, %v505_v20 }
 0x301   : > { %v411_v22 = vpop.xlane.xlu1 %410 }
 0x319   : > { %v349_v25 = vpop.permute.xlu1 %348 }
 0x31a   : > { %v351_v26 = vmul.f32 %v349_v25, %v345_v24 }
 0x31c   : > { %v352_v27 = vadd.f32 %v351_v26, %v968_v43  ;;  %v408_v43 = vmul.f32 %v850_v42, %v392_v39 }
 0x31e   : > { %353 = vst.msk [vmem:[#allocation4] sm:$0xff] %vm281_vm0, %v352_v27  ;;  %v412_v44 = vadd.f32 %v411_v22, %v408_v43 }
 0x325   : > { %v438_v58 = vld [vmem:[#allocation4] sm:$0xff] }
 0x330   : > { %v434_v31 = vpop.f32.mrf.mxu3 }
 0x331   : > { %446 = vrot.lane.b32.xlu1 %v434_v31, %s890_s29 }
 0x334   : > { %v576_v34 = vpop.xlane.xlu2 %575 }
 0x335   : > { %v577_v35 = vmax.f32 %v572_v33, %v576_v34 }
 0x337   : > { %v578_v36 = vsub.f32 %v572_v33, %v577_v35  ;;  %583 = vperm.xlu2 %832, %v577_v35  }
 0x338   : > { %v436_v38 = vpop.f32.mrf.mxu3 }
 0x339   : > { %v579_v41 = vmul.f32 1.442695, %v578_v36  ;;  %530 = vperm.xlu1 %837, %v848_v37  }
 0x33b   : > { %851 = vpow2.f32 %v579_v41 }
 0x33f   : > { %834 = vset.pattern.permute.xlu2 %v887_v40 }
 0x340   : > { %455 = vperm.xlu2 %834, %v412_v44  }
 0x341   : > { %v852_v45 = vpop.eup %851  ;;  %838 = vset.pattern.permute.xlu1 %v889_v23 }
 0x342   : > { %619 = vperm.xlu1 %838, %v852_v45  }
 0x369   : > { %502 = vadd.xlane.f32.xlu2 %v501_v46 }
 0x381   : > { %441 = vperm.xlu2 %834, %v850_v42  }
 0x383   : > { %v523_v47 = vpop.f32.mrf.mxu3 }
 0x389   : > { %535 = vrot.lane.b32.xlu2 %v523_v47, %s891_s30 }
 0x38b   : > { %v525_v48 = vpop.f32.mrf.mxu3 }
 0x391   : > { %v584_v49 = vpop.permute.xlu2 %583 }
 0x392   : > { %v586_v50 = vsub.f32 %v986_v12, %v584_v49  ;;  %630 = vst.msk [vmem:[#allocation2] sm:$0xff] %vm628_vm5, %v584_v49 }
 0x394   : > { %v587_v40 = vmul.f32 1.442695, %v586_v50 }
 0x396   : > { %853 = vpow2.f32 %v587_v40 }
 0x39a   : > { %v456_v51 = vpop.permute.xlu2 %455 }
 0x39b   : > { %458 = vst.msk [vmem:[#allocation3] sm:$0xff] %vm450_vm3, %v456_v51 }
 0x39c   : > { %v854_v52 = vpop.eup %853 }
 0x39d   : > { %v594_v53 = vpack.c.bf16 %v854_v52, %v854_v52  ;;  %v590_v4 = vsel %vm281_vm0, %v854_v52, 0.0 }
 0x39f   : > { %790 = vmatmul.msk.bf16.vlgmr.msrb.gmra.mxu2 %vm281_vm0, %v594_v53 }
 0x3a2   : > { %v484_v54 = vld [vmem:[#allocation3] sm:$0xff] }
 0x3a3   : > { %v500_v55 = vmul.f32 %v848_v37, %v484_v54  ;;  %v447_v61 = vpop.permute.xlu1 %446 }
 0x3ab   : > { %v531_v63 = vpop.permute.xlu1 %530 }
 0x3b4   : > { %v620_v10 = vpop.permute.xlu1 %619 }
 0x3dc   : > { %v503_v56 = vpop.xlane.xlu2 %502 }
 0x3dd   : > { %v504_v57 = vadd.f32 %v503_v56, %v500_v55 }
 0x3df   : > { %544 = vperm.xlu0 %835, %v504_v57  }
 0x3e4   : > { %v442_v59 = vpop.permute.xlu2 %441 }
 0x3e5   : > { %v444_v60 = vmul.f32 %v442_v59, %v438_v58 }
 0x3e7   : > { %v449_v62 = vadd.f32 %v447_v61, %v444_v60  ;;  %836 = vset.pattern.permute.xlu0 %v889_v23 }
 0x3e9   : > { %451 = vst.msk [vmem:[#allocation4] sm:$0xff] %vm450_vm3, %v449_v62 }
 0x3ec   : > { %v536_v2 = vpop.permute.xlu2 %535 }
 0x3f0   : > { %v527_v0 = vld [vmem:[#allocation4] sm:$0xff] }
 0x3f1   : > { %v533_v1 = vmul.f32 %v531_v63, %v527_v0 }
 0x3f3   : > { %v538_v3 = vadd.f32 %v536_v2, %v533_v1 }
 0x3f5   : > { %540 = vst.msk [vmem:[#allocation4] sm:$0xff] %vm539_vm4, %v538_v3 }
 0x3fc   : > { %v616_v9 = vld [vmem:[#allocation4] sm:$0xff] }
 0x3fd   : > { %v622_v13 = vmul.f32 %v620_v10, %v616_v9 }
 0x409   : > { %591 = vadd.xlane.f32.xlu0 %v590_v4 }
 0x422   : > { %v612_v5 = vpop.f32.mrf.mxu2 }
 0x423   : > { %624 = vrot.lane.b32.xlu2 %v612_v5, %s892_s4 }
 0x42a   : > { %v614_v6 = vpop.f32.mrf.mxu2 }
 0x451   : > { %v545_v7 = vpop.permute.xlu0 %544 }
 0x452   : > { %547 = vst.msk [vmem:[#allocation3] sm:$0xff] %vm539_vm4, %v545_v7 }
 0x459   : > { %v573_v8 = vld [vmem:[#allocation3] sm:$0xff] }
 0x45a   : > { %v589_v11 = vmul.f32 %v852_v45, %v573_v8 }
 0x47c   : > { %v592_v12 = vpop.xlane.xlu0 %591 }
 0x47d   : > { %v593_v14 = vadd.f32 %v592_v12, %v589_v11  ;;  %v625_v15 = vpop.permute.xlu2 %624 }
 0x47e   : > { %v627_v16 = vadd.f32 %v625_v15, %v622_v13 }
 0x47f   : > { %633 = vperm.xlu0 %836, %v593_v14  }
 0x480   : > { %629 = vst.msk [vmem:[#allocation4] sm:$0xff] %vm628_vm5, %v627_v16 }
 0x487   : > { %v640_v28 = vld [vmem:[#allocation4] sm:$0xff] }
 0x4f1   : > { %v634_v17 = vpop.permute.xlu0 %633 }
 0x4f2   : > { %636 = vst.msk [vmem:[#allocation3] sm:$0xff] %vm628_vm5, %v634_v17 }
 0x4f9   : > { %v641_v18 = vld [vmem:[#allocation3] sm:$0xff] }
 0x4fa   : > { %855 = vrcp.f32 %v641_v18  ;;  %v653_v22 = vand.u32 2147483648, %v641_v18  ;;  %v651_v24 = vand.u32 2147483647, %v641_v18  ;;  %vm647_vm7 = vweird.f32 %v641_v18 }
 0x4fc   : > { %v654_v26 = vor.u32 1.1754944e-38, %v653_v22  ;;  %vm652_vm9 = vcmp.eq.f32.partialorder %v651_v24, 8.507059e+37 }
 0x500   : > { %v856_v19 = vpop.eup %855 }
 0x501   : > { %v643_v20 = vmul.f32 %v856_v19, %v641_v18  ;;  %vm648_vm6 = vweird.f32 %v856_v19 }
 0x502   : > { %vm649_vm8 = vmor %vm647_vm7, %vm648_vm6 }
 0x503   : > { %v644_v21 = vsub.f32 1.0, %v643_v20 }
 0x505   : > { %v645_v23 = vmul.f32 %v856_v19, %v644_v21 }
 0x507   : > { %v646_v25 = vadd.f32 %v856_v19, %v645_v23 }
 0x509   : > { %v650_v27 = vsel %vm649_vm8, %v856_v19, %v646_v25 }
 0x50a   : > { %v655_v29 = vsel %vm652_vm9, %v654_v26, %v650_v27 }
 0x50b   : > { %v656_v30 = vmul.f32 %v655_v29, %v640_v28 }
 0x50d   : > { %658 = vst.msk [vmem:[%s265_s7] sm:$0xff] %vm271_vm1, %v656_v30 }
 0x50e PF: > { %s13_s14 = sadd.s32 1, %s879_s14   ;;  %s1031_s12 = smov %s875_s13 }
 0x50f   : > { %p10_p5 = scmp.ge.s32.totalorder %s13_s14, 4   ;;  %s1032_s13 = smov %s1034_s15 }
 0x511   :  { %12 = sbr.rel (!%p10_p5) target bundleno = 2 (0x2), region = 76 }

// kernel: transformer_forward.37
= control target key start
LH: loop header
LB: loop body
LE: loop exit
PB: predicated region body
PF: predicated region fallthrough
CT: control target
= control target key end

     0   :  { %8 = vsyncpa [#allocation4], 0  ;;  %s120_s15 = smov [#allocation3]   ;;  %s175_s0 = inlined_call_operand.vmem [shape: f32[16,32], index: 0, kind: input, shape index: {}]   ;;  %s176_s1 = inlined_call_operand.vmem [shape: f32[32,64], index: 1, kind: input, shape index: {}]   ;;  %s177_s2 = inlined_call_operand.hbm [shape: f32[1,64], index: 2, kind: input, shape index: {}]   ;;  %s178_s3 = inlined_call_operand.vmem [shape: f32[16,64], index: 3, kind: output, shape index: {}]  }
   0x1   :  { %s18_s14 = sshll.u32 %s177_s2, 4  ;;  %s20_s16 = sshll.u32 %s120_s15, 4  ;;  %s19_s14 = int_to_ptr.hbm [resolvable:$true] %s18_s14  ;;  %s21_s16 = int_to_ptr.vmem [resolvable:$true] %s20_s16 }
   0x2   :  { %23 = dma.hbm_to_vmem [thread:$0]  %s19_s14, 16, %s21_s16, [#allocation4]  }
   0x3   :  { %118 = dma.done.wait [#allocation4], 16  }
   0x4   :  { %119 = vsyncadd [#allocation4], 4294967280  ;;  %vm33_vm0 = vcmask 523264   ;;  %v121_v0 = vmov 0.0   ;;  %v43_v1 = vld [vmem:[%s176_s1 + $0x10] sm:$0xff]  ;;  %v44_v2 = vld [vmem:[%s176_s1 + $0x18] sm:$0xff] }
   0x5   :  { %34 = vst.msk [vmem:[#allocation2] sm:$0xff] %vm33_vm0, %v121_v0  ;;  %v41_v3 = vld [vmem:[%s176_s1] sm:$0xff]  ;;  %v46_v4 = vpack.c.bf16 %v44_v2, %v43_v1  ;;  %v42_v5 = vld [vmem:[%s176_s1 + $0x8] sm:$0xff]  ;;  %vm47_vm1 = vcmask 261120   ;;  %v93_v14 = vld [vmem:[#allocation3] ss:$0 sm:$0xff] }
   0x6   :  { %35 = vst.msk [vmem:[#allocation2 + $0x8] sm:$0xff] %vm33_vm0, %v121_v0  ;;  %v45_v6 = vpack.c.bf16 %v42_v5, %v41_v3  ;;  %v38_v7 = vld [vmem:[%s175_s0] sm:$0xff]  ;;  %v39_v8 = vld [vmem:[%s175_s0 + $0x8] sm:$0xff] }
   0x7   :  { %57 = vmatpush.bf16.msra.mxu0 %v46_v4  ;;  %v40_v9 = vpack.c.bf16 %v39_v8, %v38_v7 }
   0xb   :  { %58 = vmatpush.bf16.msra.mxu0 %v45_v6 }
   0xc   :  { %v36_v10 = vld [vmem:[#allocation2] sm:$0xff] }
   0xd   :  { %v37_v13 = vld [vmem:[#allocation2 + $0x8] sm:$0xff] }
   0xe   :  { %90 = vmatmul.msk.bf16.vlgmr.msra.gmra.mxu0 %vm47_vm1, %v40_v9 }
  0x8b   :  { %v60_v11 = vpop.f32.mrf.mxu0 }
  0x8c   :  { %v65_v12 = vadd.f32 %v60_v11, %v36_v10 }
  0x8e   :  { %68 = vst.msk [vmem:[#allocation2] sm:$0xff] %vm33_vm0, %v65_v12 }
  0x93   :  { %v62_v15 = vpop.f32.mrf.mxu0 }
  0x94   :  { %v66_v16 = vadd.f32 %v62_v15, %v37_v13 }
  0x95   :  { %v73_v17 = vld [vmem:[#allocation2] sm:$0xff] }
  0x96   :  { %v79_v18 = vadd.f32 %v93_v14, %v73_v17  ;;  %69 = vst.msk [vmem:[#allocation2 + $0x8] sm:$0xff] %vm33_vm0, %v66_v16 }
  0x98   :  { %v81_v19 = vmax.f32 %v79_v18, 0.0 }
  0x9a   :  { %83 = vst.msk [vmem:[%s178_s3] sm:$0xff] %vm33_vm0, %v81_v19 }
  0x9d   :  { %v74_v20 = vld [vmem:[#allocation2 + $0x8] sm:$0xff] }
  0x9e   :  { %v80_v21 = vadd.f32 %v93_v14, %v74_v20 }
  0xa0   :  { %v82_v22 = vmax.f32 %v80_v21, 0.0 }
  0xa2   :  { %84 = vst.msk [vmem:[%s178_s3 + $0x8] sm:$0xff] %vm33_vm0, %v82_v22 }
  0xa3   :  { %89 = vsyncpa [#allocation4], 1 }

// kernel: transformer_forward.33
= control target key start
LH: loop header
LB: loop body
LE: loop exit
PB: predicated region body
PF: predicated region fallthrough
CT: control target
= control target key end

     0   :  { %vm28_vm0 = vcmask 261120   ;;  %v167_v3 = vmov 0.0   ;;  %vm48_vm1 = vcmask 523264   ;;  %v168_v33 = vmov 32.0   ;;  %s265_s1 = inlined_call_operand.vmem [shape: f32[64,32], index: 1, kind: input, shape index: {}]   ;;  %s266_s0 = inlined_call_operand.vmem [shape: f32[16,64], index: 0, kind: input, shape index: {}]   ;;  %s267_s2 = inlined_call_operand.vmem [shape: f32[1,32], index: 2, kind: input, shape index: {}]   ;;  %s268_s3 = inlined_call_operand.vmem [shape: f32[16,32], index: 3, kind: input, shape index: {}]   ;;  %s269_s4 = inlined_call_operand.vmem [shape: f32[1,32], index: 4, kind: input, shape index: {}]   ;;  %s270_s5 = inlined_call_operand.vmem [shape: f32[1,32], index: 5, kind: input, shape index: {}]   ;;  %s271_s6 = inlined_call_operand.vmem [shape: f32[16,32], index: 6, kind: output, shape index: {}]  }
   0x1   :  { %v42_v0 = vld [vmem:[%s265_s1 + $0x30] sm:$0xff]  ;;  %v43_v1 = vld [vmem:[%s265_s1 + $0x38] sm:$0xff]  ;;  %v40_v2 = vld [vmem:[%s265_s1 + $0x20] sm:$0xff]  ;;  %29 = vst.msk [vmem:[#allocation2] sm:$0xff] %vm28_vm0, %v167_v3  ;;  %161 = vrcp.f32 %v168_v33 }
   0x2   :  { %v47_v4 = vpack.c.bf16 %v43_v1, %v42_v0  ;;  %v41_v5 = vld [vmem:[%s265_s1 + $0x28] sm:$0xff]  ;;  %30 = vst.msk [vmem:[#allocation2 + $0x8] sm:$0xff] %vm28_vm0, %v167_v3  ;;  %v38_v7 = vld [vmem:[%s265_s1 + $0x10] sm:$0xff]  ;;  %v39_v8 = vld [vmem:[%s265_s1 + $0x18] sm:$0xff] }
   0x3   :  { %v46_v6 = vpack.c.bf16 %v41_v5, %v40_v2  ;;  %v45_v9 = vpack.c.bf16 %v39_v8, %v38_v7  ;;  %v36_v10 = vld [vmem:[%s265_s1] sm:$0xff]  ;;  %v37_v11 = vld [vmem:[%s265_s1 + $0x8] sm:$0xff] }
   0x4   :  { %56 = vmatpush.bf16.msra.mxu0 %v47_v4  ;;  %v44_v12 = vpack.c.bf16 %v37_v11, %v36_v10  ;;  %v33_v13 = vld [vmem:[%s266_s0] sm:$0xff]  ;;  %v34_v14 = vld [vmem:[%s266_s0 + $0x8] sm:$0xff] }
   0x5   :  { %v35_v15 = vpack.c.bf16 %v34_v14, %v33_v13  ;;  %v158_v20 = vld [vmem:[%s267_s2] ss:$0 sm:$0xff]  ;;  %v83_v29 = vld [vmem:[%s268_s3 + $0x8] sm:$0xff] }
   0x6   :  { %v82_v24 = vld [vmem:[%s268_s3] sm:$0xff] }
   0x7   :  { %v162_v34 = vpop.eup %161  ;;  %v159_v0 = vld [vmem:[%s269_s4] ss:$0 sm:$0xff] }
   0x8   :  { %57 = vmatpush.bf16.msra.mxu0 %v46_v6  ;;  %v31_v16 = vld [vmem:[#allocation2] sm:$0xff]  ;;  %v93_v35 = vmul.f32 32.0, %v162_v34  ;;  %vm97_vm2 = vweird.f32 %v162_v34 }
   0x9   :  { %v32_v19 = vld [vmem:[#allocation2 + $0x8] sm:$0xff]  ;;  %v160_v3 = vld [vmem:[%s270_s5] ss:$0 sm:$0xff] }
   0xa   :  { %v94_v36 = vsub.f32 1.0, %v93_v35 }
   0xc   :  { %58 = vmatpush.bf16.msra.mxu0 %v45_v9  ;;  %v95_v37 = vmul.f32 %v162_v34, %v94_v36 }
   0xe   :  { %v96_v38 = vadd.f32 %v162_v34, %v95_v37 }
  0x10   :  { %59 = vmatpush.bf16.msra.mxu0 %v44_v12  ;;  %v98_v39 = vsel %vm97_vm2, %v162_v34, %v96_v38 }
  0x13   :  { %155 = vmatmul.msk.bf16.vlgmr.msra.gmra.mxu0 %vm48_vm1, %v35_v15 }
  0x90   :  { %v61_v17 = vpop.f32.mrf.mxu0 }
  0x91   :  { %v66_v18 = vadd.f32 %v61_v17, %v31_v16 }
  0x93   :  { %69 = vst.msk [vmem:[#allocation2] sm:$0xff] %vm28_vm0, %v66_v18 }
  0x98   :  { %v63_v21 = vpop.f32.mrf.mxu0 }
  0x99   :  { %v67_v22 = vadd.f32 %v63_v21, %v32_v19 }
  0x9a   :  { %v74_v23 = vld [vmem:[#allocation2] sm:$0xff] }
  0x9b   :  { %70 = vst.msk [vmem:[#allocation2 + $0x8] sm:$0xff] %vm28_vm0, %v67_v22  ;;  %v80_v25 = vadd.f32 %v158_v20, %v74_v23 }
  0x9d   :  { %v84_v26 = vadd.f32 %v82_v24, %v80_v25 }
  0x9f   :  { %v86_v27 = vsel %vm28_vm0, %v84_v26, 0.0 }
  0xa0   :  { %87 = vadd.xlane.f32.xlu0 %v86_v27 }
  0xa2   :  { %v75_v28 = vld [vmem:[#allocation2 + $0x8] sm:$0xff] }
  0xa3   :  { %v81_v30 = vadd.f32 %v158_v20, %v75_v28 }
  0xa5   :  { %v85_v31 = vadd.f32 %v83_v29, %v81_v30 }
  0xa7   :  { %v89_v32 = vsel %vm28_vm0, %v85_v31, 0.0 }
  0xa8   :  { %90 = vadd.xlane.f32.xlu0 %v89_v32 }
 0x113   :  { %v88_v40 = vpop.xlane.xlu0 %87 }
 0x114   :  { %v99_v41 = vmul.f32 %v98_v39, %v88_v40 }
 0x116   :  { %v101_v42 = vsub.f32 %v84_v26, %v99_v41 }
 0x118   :  { %v103_v43 = vmul.f32 %v101_v42, %v101_v42 }
 0x11a   :  { %v105_v44 = vsel %vm28_vm0, %v103_v43, 0.0 }
 0x11b   :  { %106 = vadd.xlane.f32.xlu1 %v105_v44  ;;  %v91_v45 = vpop.xlane.xlu0 %90 }
 0x11c   :  { %v100_v46 = vmul.f32 %v98_v39, %v91_v45 }
 0x11e   :  { %v102_v47 = vsub.f32 %v85_v31, %v100_v46 }
 0x120   :  { %v104_v48 = vmul.f32 %v102_v47, %v102_v47 }
 0x122   :  { %v108_v49 = vsel %vm28_vm0, %v104_v48, 0.0 }
 0x123   :  { %109 = vadd.xlane.f32.xlu1 %v108_v49 }
 0x18e   :  { %v107_v50 = vpop.xlane.xlu1 %106 }
 0x18f   :  { %v111_v51 = vmul.f32 %v107_v50, %v98_v39 }
 0x191   :  { %v113_v52 = vadd.f32 1e-05, %v111_v51 }
 0x193   :  { %163 = vrsqrt.f32 %v113_v52  ;;  %vm121_vm4 = vweird.f32 %v113_v52 }
 0x196   :  { %v110_v53 = vpop.xlane.xlu1 %109 }
 0x197   :  { %v112_v54 = vmul.f32 %v110_v53, %v98_v39 }
 0x199   :  { %v164_v55 = vpop.eup %163  ;;  %v114_v56 = vadd.f32 1e-05, %v112_v54 }
 0x19a   :  { %v116_v57 = vmul.f32 %v164_v55, %v113_v52  ;;  %vm122_vm3 = vweird.f32 %v164_v55 }
 0x19b   :  { %165 = vrsqrt.f32 %v114_v56  ;;  %vm123_vm5 = vmor %vm121_vm4, %vm122_vm3  ;;  %vm131_vm7 = vweird.f32 %v114_v56 }
 0x19c   :  { %v117_v58 = vmul.f32 %v164_v55, %v116_v57 }
 0x19e   :  { %v118_v59 = vmul.f32 0.5, %v117_v58 }
 0x1a0   :  { %v119_v60 = vsub.f32 1.5, %v118_v59 }
 0x1a1   :  { %v166_v61 = vpop.eup %165 }
 0x1a2   :  { %v120_v62 = vmul.f32 %v164_v55, %v119_v60  ;;  %v126_v63 = vmul.f32 %v166_v61, %v114_v56  ;;  %vm132_vm6 = vweird.f32 %v166_v61 }
 0x1a3   :  { %vm133_vm8 = vmor %vm131_vm7, %vm132_vm6 }
 0x1a4   :  { %v124_v1 = vsel %vm123_vm5, %v164_v55, %v120_v62  ;;  %v127_v2 = vmul.f32 %v166_v61, %v126_v63 }
 0x1a5   :  { %v135_v4 = vmul.f32 %v124_v1, %v101_v42 }
 0x1a6   :  { %v128_v5 = vmul.f32 0.5, %v127_v2 }
 0x1a7   :  { %v141_v6 = vmul.f32 %v159_v0, %v135_v4 }
 0x1a8   :  { %v129_v7 = vsub.f32 1.5, %v128_v5 }
 0x1a9   :  { %v147_v8 = vadd.f32 %v160_v3, %v141_v6 }
 0x1aa   :  { %v130_v9 = vmul.f32 %v166_v61, %v129_v7 }
 0x1ab   :  { %149 = vst.msk [vmem:[%s271_s6] sm:$0xff] %vm28_vm0, %v147_v8 }
 0x1ac   :  { %v134_v10 = vsel %vm133_vm8, %v166_v61, %v130_v9 }
 0x1ad   :  { %v136_v11 = vmul.f32 %v134_v10, %v102_v47 }
 0x1af   :  { %v142_v12 = vmul.f32 %v159_v0, %v136_v11 }
 0x1b1   :  { %v148_v13 = vadd.f32 %v160_v3, %v142_v12 }
 0x1b3   :  { %150 = vst.msk [vmem:[%s271_s6 + $0x8] sm:$0xff] %vm28_vm0, %v148_v13 }

// kernel: transformer_forward.36
= control target key start
LH: loop header
LB: loop body
LE: loop exit
PB: predicated region body
PF: predicated region fallthrough
CT: control target
= control target key end

     0   :  { %11 = vsyncpa [#allocation4], 0  ;;  %s202_s24 = smov [#allocation3]   ;;  %s290_s0 = inlined_call_operand.vmem [shape: f32[16,32], index: 0, kind: input, shape index: {}]   ;;  %s291_s1 = inlined_call_operand.vmem [shape: f32[32,32], index: 1, kind: input, shape index: {}]   ;;  %s292_s2 = inlined_call_operand.vmem [shape: f32[1,32], index: 2, kind: input, shape index: {}]   ;;  %s293_s3 = inlined_call_operand.vmem [shape: f32[16,32], index: 3, kind: input, shape index: {}]   ;;  %s294_s4 = inlined_call_operand.vmem [shape: f32[1,32], index: 4, kind: input, shape index: {}]   ;;  %s295_s5 = inlined_call_operand.hbm [shape: f32[1,32], index: 5, kind: input, shape index: {}]   ;;  %s296_s6 = inlined_call_operand.vmem [shape: f32[16,32], index: 6, kind: output, shape index: {}]  }
   0x1   :  { %s27_s23 = sshll.u32 %s295_s5, 4  ;;  %s29_s25 = sshll.u32 %s202_s24, 4  ;;  %s28_s23 = int_to_ptr.hbm [resolvable:$true] %s27_s23  ;;  %s30_s25 = int_to_ptr.vmem [resolvable:$true] %s29_s25 }
   0x2   :  { %32 = dma.hbm_to_vmem [thread:$0]  %s28_s23, 16, %s30_s25, [#allocation4]  }
   0x3   :  { %200 = dma.done.wait [#allocation4], 16  }
   0x4   :  { %201 = vsyncadd [#allocation4], 4294967280  ;;  %vm42_vm0 = vcmask 261120   ;;  %v203_v0 = vmov 0.0   ;;  %v52_v1 = vld [vmem:[%s291_s1 + $0x10] sm:$0xff]  ;;  %v53_v2 = vld [vmem:[%s291_s1 + $0x18] sm:$0xff] }
   0x5   :  { %43 = vst.msk [vmem:[#allocation2] sm:$0xff] %vm42_vm0, %v203_v0  ;;  %v50_v3 = vld [vmem:[%s291_s1] sm:$0xff]  ;;  %v55_v4 = vpack.c.bf16 %v53_v2, %v52_v1  ;;  %v51_v5 = vld [vmem:[%s291_s1 + $0x8] sm:$0xff]  ;;  %v204_v27 = vmov 32.0   ;;  %v169_v61 = vld [vmem:[#allocation3] ss:$0 sm:$0xff] }
   0x6   :  { %44 = vst.msk [vmem:[#allocation2 + $0x8] sm:$0xff] %vm42_vm0, %v203_v0  ;;  %v54_v6 = vpack.c.bf16 %v51_v5, %v50_v3  ;;  %v47_v7 = vld [vmem:[%s290_s0] sm:$0xff]  ;;  %v48_v8 = vld [vmem:[%s290_s0 + $0x8] sm:$0xff]  ;;  %170 = vrcp.f32 %v204_v27 }
   0x7   :  { %66 = vmatpush.bf16.msra.mxu0 %v55_v4  ;;  %v49_v9 = vpack.c.bf16 %v48_v8, %v47_v7  ;;  %v167_v14 = vld [vmem:[%s292_s2] ss:$0 sm:$0xff]  ;;  %v90_v23 = vld [vmem:[%s293_s3 + $0x8] sm:$0xff] }
   0x8   :  { %v89_v18 = vld [vmem:[%s293_s3] sm:$0xff] }
   0x9   :  { %v168_v58 = vld [vmem:[%s294_s4] ss:$0 sm:$0xff] }
   0xb   :  { %67 = vmatpush.bf16.msra.mxu0 %v54_v6 }
   0xc   :  { %v45_v10 = vld [vmem:[#allocation2] sm:$0xff]  ;;  %v171_v28 = vpop.eup %170 }
   0xd   :  { %v46_v13 = vld [vmem:[#allocation2 + $0x8] sm:$0xff]  ;;  %v100_v29 = vmul.f32 32.0, %v171_v28  ;;  %vm104_vm1 = vweird.f32 %v171_v28 }
   0xe   :  { %163 = vmatmul.msk.bf16.vlgmr.msra.gmra.mxu0 %vm42_vm0, %v49_v9 }
   0xf   :  { %v101_v30 = vsub.f32 1.0, %v100_v29 }
  0x11   :  { %v102_v31 = vmul.f32 %v171_v28, %v101_v30 }
  0x13   :  { %v103_v32 = vadd.f32 %v171_v28, %v102_v31 }
  0x15   :  { %v105_v33 = vsel %vm104_vm1, %v171_v28, %v103_v32 }
  0x8b   :  { %v69_v11 = vpop.f32.mrf.mxu0 }
  0x8c   :  { %v74_v12 = vadd.f32 %v69_v11, %v45_v10 }
  0x8e   :  { %76 = vst.msk [vmem:[#allocation2] sm:$0xff] %vm42_vm0, %v74_v12 }
  0x93   :  { %v71_v15 = vpop.f32.mrf.mxu0 }
  0x94   :  { %v75_v16 = vadd.f32 %v71_v15, %v46_v13 }
  0x95   :  { %v81_v17 = vld [vmem:[#allocation2] sm:$0xff] }
  0x96   :  { %77 = vst.msk [vmem:[#allocation2 + $0x8] sm:$0xff] %vm42_vm0, %v75_v16  ;;  %v87_v19 = vadd.f32 %v167_v14, %v81_v17 }
  0x98   :  { %v91_v20 = vadd.f32 %v89_v18, %v87_v19 }
  0x9a   :  { %v93_v21 = vsel %vm42_vm0, %v91_v20, 0.0 }
  0x9b   :  { %94 = vadd.xlane.f32.xlu0 %v93_v21 }
  0x9d   :  { %v82_v22 = vld [vmem:[#allocation2 + $0x8] sm:$0xff] }
  0x9e   :  { %v88_v24 = vadd.f32 %v167_v14, %v82_v22 }
  0xa0   :  { %v92_v25 = vadd.f32 %v90_v23, %v88_v24 }
  0xa2   :  { %v96_v26 = vsel %vm42_vm0, %v92_v25, 0.0 }
  0xa3   :  { %97 = vadd.xlane.f32.xlu0 %v96_v26 }
 0x10e   :  { %v95_v34 = vpop.xlane.xlu0 %94 }
 0x10f   :  { %v106_v35 = vmul.f32 %v105_v33, %v95_v34 }
 0x111   :  { %v108_v36 = vsub.f32 %v91_v20, %v106_v35 }
 0x113   :  { %v110_v37 = vmul.f32 %v108_v36, %v108_v36 }
 0x115   :  { %v112_v38 = vsel %vm42_vm0, %v110_v37, 0.0 }
 0x116   :  { %113 = vadd.xlane.f32.xlu1 %v112_v38  ;;  %v98_v39 = vpop.xlane.xlu0 %97 }
 0x117   :  { %v107_v40 = vmul.f32 %v105_v33, %v98_v39 }
 0x119   :  { %v109_v41 = vsub.f32 %v92_v25, %v107_v40 }
 0x11b   :  { %v111_v42 = vmul.f32 %v109_v41, %v109_v41 }
 0x11d   :  { %v115_v43 = vsel %vm42_vm0, %v111_v42, 0.0 }
 0x11e   :  { %116 = vadd.xlane.f32.xlu1 %v115_v43 }
 0x189   :  { %v114_v44 = vpop.xlane.xlu1 %113 }
 0x18a   :  { %v118_v45 = vmul.f32 %v114_v44, %v105_v33 }
 0x18c   :  { %v120_v46 = vadd.f32 1e-05, %v118_v45 }
 0x18e   :  { %172 = vrsqrt.f32 %v120_v46  ;;  %vm128_vm3 = vweird.f32 %v120_v46 }
 0x191   :  { %v117_v47 = vpop.xlane.xlu1 %116 }
 0x192   :  { %v119_v48 = vmul.f32 %v117_v47, %v105_v33 }
 0x194   :  { %v173_v49 = vpop.eup %172  ;;  %v121_v50 = vadd.f32 1e-05, %v119_v48 }
 0x195   :  { %v123_v51 = vmul.f32 %v173_v49, %v120_v46  ;;  %vm129_vm2 = vweird.f32 %v173_v49 }
 0x196   :  { %174 = vrsqrt.f32 %v121_v50  ;;  %vm130_vm4 = vmor %vm128_vm3, %vm129_vm2  ;;  %vm138_vm6 = vweird.f32 %v121_v50 }
 0x197   :  { %v124_v52 = vmul.f32 %v173_v49, %v123_v51 }
 0x199   :  { %v125_v53 = vmul.f32 0.5, %v124_v52 }
 0x19b   :  { %v126_v54 = vsub.f32 1.5, %v125_v53 }
 0x19c   :  { %v175_v55 = vpop.eup %174 }
 0x19d   :  { %v127_v56 = vmul.f32 %v173_v49, %v126_v54  ;;  %v133_v57 = vmul.f32 %v175_v55, %v121_v50  ;;  %vm139_vm5 = vweird.f32 %v175_v55 }
 0x19e   :  { %vm140_vm7 = vmor %vm138_vm6, %vm139_vm5 }
 0x19f   :  { %v131_v59 = vsel %vm130_vm4, %v173_v49, %v127_v56  ;;  %v134_v60 = vmul.f32 %v175_v55, %v133_v57 }
 0x1a0   :  { %v142_v62 = vmul.f32 %v131_v59, %v108_v36 }
 0x1a1   :  { %v135_v63 = vmul.f32 0.5, %v134_v60 }
 0x1a2   :  { %v148_v0 = vmul.f32 %v168_v58, %v142_v62 }
 0x1a3   :  { %v136_v1 = vsub.f32 1.5, %v135_v63 }
 0x1a4   :  { %v154_v2 = vadd.f32 %v169_v61, %v148_v0 }
 0x1a5   :  { %v137_v3 = vmul.f32 %v175_v55, %v136_v1 }
 0x1a6   :  { %156 = vst.msk [vmem:[%s296_s6] sm:$0xff] %vm42_vm0, %v154_v2 }
 0x1a7   :  { %v141_v4 = vsel %vm140_vm7, %v175_v55, %v137_v3 }
 0x1a8   :  { %v143_v5 = vmul.f32 %v141_v4, %v109_v41 }
 0x1aa   :  { %v149_v6 = vmul.f32 %v168_v58, %v143_v5 }
 0x1ac   :  { %v155_v7 = vadd.f32 %v169_v61, %v149_v6 }
 0x1ae   :  { %157 = vst.msk [vmem:[%s296_s6 + $0x8] sm:$0xff] %vm42_vm0, %v155_v7 }
 0x1af   :  { %162 = vsyncpa [#allocation4], 1 }

// kernel: transformer_forward.38
= control target key start
LH: loop header
LB: loop body
LE: loop exit
PB: predicated region body
PF: predicated region fallthrough
CT: control target
= control target key end

     0   :  { %11 = vsyncpa [#allocation4], 0  ;;  %s390_s0 = inlined_call_operand.vmem [shape: f32[16,64], index: 0, kind: input, shape index: {}]   ;;  %s391_s1 = inlined_call_operand.vmem [shape: f32[64,32], index: 1, kind: input, shape index: {}]   ;;  %s392_s2 = inlined_call_operand.hbm [shape: f32[1,32], index: 2, kind: input, shape index: {}]   ;;  %s393_s3 = inlined_call_operand.vmem [shape: f32[16,32], index: 3, kind: input, shape index: {}]   ;;  %s394_s4 = inlined_call_operand.hbm [shape: f32[1,32], index: 4, kind: input, shape index: {}]   ;;  %s395_s5 = inlined_call_operand.hbm [shape: f32[1,32], index: 5, kind: input, shape index: {}]   ;;  %s396_s6 = inlined_call_operand.vmem [shape: f32[16,32], index: 6, kind: output, shape index: {}]  }
   0x1   :  { %12 = vsyncpa [#allocation6], 0  ;;  %s35_s23 = sshll.u32 %s394_s4, 4  ;;  %s289_s24 = smov [#allocation5]   ;;  %s36_s23 = int_to_ptr.hbm [resolvable:$true] %s35_s23 }
   0x2   :  { %s37_s25 = sshll.u32 %s289_s24, 4  ;;  %s22_s28 = sshll.u32 %s392_s2, 4  ;;  %s38_s25 = int_to_ptr.vmem [resolvable:$true] %s37_s25  ;;  %s23_s28 = int_to_ptr.hbm [resolvable:$true] %s22_s28 }
   0x3   :  { %40 = dma.hbm_to_vmem [thread:$0]  %s36_s23, 16, %s38_s25, [#allocation6]  }
   0x4   :  { %s290_s29 = smov [#allocation3]   ;;  %s46_s9 = sshll.u32 %s395_s5, 4  ;;  %s47_s9 = int_to_ptr.hbm [resolvable:$true] %s46_s9 }
   0x5   :  { %s24_s30 = sshll.u32 %s290_s29, 4  ;;  %s291_s4 = smov [#allocation7]   ;;  %s25_s30 = int_to_ptr.vmem [resolvable:$true] %s24_s30 }
   0x6   :  { %27 = dma.hbm_to_vmem [thread:$0]  %s23_s28, 16, %s25_s30, [#allocation4]  }
   0x7   :  { %s48_s10 = sshll.u32 %s291_s4, 4  ;;  %s49_s10 = int_to_ptr.vmem [resolvable:$true] %s48_s10 }
   0x8   :  { %51 = dma.hbm_to_vmem [thread:$0]  %s47_s9, 16, %s49_s10, [#allocation6]  }
   0x9   :  { %285 = dma.done.wait [#allocation4], 16  }
   0xa   :  { %286 = vsyncadd [#allocation4], 4294967280 }
   0xb   :  { %287 = dma.done.wait [#allocation6], 32  }
   0xc   :  { %288 = vsyncadd [#allocation6], 4294967264  ;;  %vm69_vm0 = vcmask 261120   ;;  %v292_v0 = vmov 0.0   ;;  %v83_v1 = vld [vmem:[%s391_s1 + $0x30] sm:$0xff]  ;;  %v84_v2 = vld [vmem:[%s391_s1 + $0x38] sm:$0xff] }
   0xd   :  { %70 = vst.msk [vmem:[#allocation2] sm:$0xff] %vm69_vm0, %v292_v0  ;;  %v81_v3 = vld [vmem:[%s391_s1 + $0x20] sm:$0xff]  ;;  %v88_v4 = vpack.c.bf16 %v84_v2, %v83_v1  ;;  %v82_v5 = vld [vmem:[%s391_s1 + $0x28] sm:$0xff]  ;;  %v79_v7 = vld [vmem:[%s391_s1 + $0x10] sm:$0xff]  ;;  %vm89_vm1 = vcmask 523264   ;;  %v293_v33 = vmov 32.0  }
   0xe   :  { %71 = vst.msk [vmem:[#allocation2 + $0x8] sm:$0xff] %vm69_vm0, %v292_v0  ;;  %v87_v6 = vpack.c.bf16 %v82_v5, %v81_v3  ;;  %v80_v8 = vld [vmem:[%s391_s1 + $0x18] sm:$0xff]  ;;  %v77_v10 = vld [vmem:[%s391_s1] sm:$0xff]  ;;  %v78_v11 = vld [vmem:[%s391_s1 + $0x8] sm:$0xff]  ;;  %207 = vrcp.f32 %v293_v33 }
   0xf   :  { %97 = vmatpush.bf16.msra.mxu0 %v88_v4  ;;  %v86_v9 = vpack.c.bf16 %v80_v8, %v79_v7  ;;  %v85_v12 = vpack.c.bf16 %v78_v11, %v77_v10  ;;  %v74_v13 = vld [vmem:[%s390_s0] sm:$0xff]  ;;  %v75_v14 = vld [vmem:[%s390_s0 + $0x8] sm:$0xff]  ;;  %v204_v20 = vld [vmem:[#allocation3] ss:$0 sm:$0xff] }
  0x10   :  { %v76_v15 = vpack.c.bf16 %v75_v14, %v74_v13  ;;  %v123_v24 = vld [vmem:[%s393_s3] sm:$0xff]  ;;  %v124_v29 = vld [vmem:[%s393_s3 + $0x8] sm:$0xff]  ;;  %v205_v0 = vld [vmem:[#allocation5] ss:$0 sm:$0xff] }
  0x11   :  { %v206_v3 = vld [vmem:[#allocation7] ss:$0 sm:$0xff] }
  0x13   :  { %98 = vmatpush.bf16.msra.mxu0 %v87_v6 }
  0x14   :  { %v72_v16 = vld [vmem:[#allocation2] sm:$0xff]  ;;  %v208_v34 = vpop.eup %207 }
  0x15   :  { %v73_v19 = vld [vmem:[#allocation2 + $0x8] sm:$0xff]  ;;  %v134_v35 = vmul.f32 32.0, %v208_v34  ;;  %vm138_vm2 = vweird.f32 %v208_v34 }
  0x17   :  { %99 = vmatpush.bf16.msra.mxu0 %v86_v9  ;;  %v135_v36 = vsub.f32 1.0, %v134_v35 }
  0x19   :  { %v136_v37 = vmul.f32 %v208_v34, %v135_v36 }
  0x1b   :  { %100 = vmatpush.bf16.msra.mxu0 %v85_v12  ;;  %v137_v38 = vadd.f32 %v208_v34, %v136_v37 }
  0x1d   :  { %v139_v39 = vsel %vm138_vm2, %v208_v34, %v137_v38 }
  0x1e   :  { %198 = vmatmul.msk.bf16.vlgmr.msra.gmra.mxu0 %vm89_vm1, %v76_v15 }
  0x9b   :  { %v102_v17 = vpop.f32.mrf.mxu0 }
  0x9c   :  { %v107_v18 = vadd.f32 %v102_v17, %v72_v16 }
  0x9e   :  { %110 = vst.msk [vmem:[#allocation2] sm:$0xff] %vm69_vm0, %v107_v18 }
  0xa3   :  { %v104_v21 = vpop.f32.mrf.mxu0 }
  0xa4   :  { %v108_v22 = vadd.f32 %v104_v21, %v73_v19 }
  0xa5   :  { %v115_v23 = vld [vmem:[#allocation2] sm:$0xff] }
  0xa6   :  { %111 = vst.msk [vmem:[#allocation2 + $0x8] sm:$0xff] %vm69_vm0, %v108_v22  ;;  %v121_v25 = vadd.f32 %v204_v20, %v115_v23 }
  0xa8   :  { %v125_v26 = vadd.f32 %v123_v24, %v121_v25 }
  0xaa   :  { %v127_v27 = vsel %vm69_vm0, %v125_v26, 0.0 }
  0xab   :  { %128 = vadd.xlane.f32.xlu0 %v127_v27 }
  0xad   :  { %v116_v28 = vld [vmem:[#allocation2 + $0x8] sm:$0xff] }
  0xae   :  { %v122_v30 = vadd.f32 %v204_v20, %v116_v28 }
  0xb0   :  { %v126_v31 = vadd.f32 %v124_v29, %v122_v30 }
  0xb2   :  { %v130_v32 = vsel %vm69_vm0, %v126_v31, 0.0 }
  0xb3   :  { %131 = vadd.xlane.f32.xlu0 %v130_v32 }
 0x11e   :  { %v129_v40 = vpop.xlane.xlu0 %128 }
 0x11f   :  { %v140_v41 = vmul.f32 %v139_v39, %v129_v40 }
 0x121   :  { %v142_v42 = vsub.f32 %v125_v26, %v140_v41 }
 0x123   :  { %v144_v43 = vmul.f32 %v142_v42, %v142_v42 }
 0x125   :  { %v146_v44 = vsel %vm69_vm0, %v144_v43, 0.0 }
 0x126   :  { %147 = vadd.xlane.f32.xlu1 %v146_v44  ;;  %v132_v45 = vpop.xlane.xlu0 %131 }
 0x127   :  { %v141_v46 = vmul.f32 %v139_v39, %v132_v45 }
 0x129   :  { %v143_v47 = vsub.f32 %v126_v31, %v141_v46 }
 0x12b   :  { %v145_v48 = vmul.f32 %v143_v47, %v143_v47 }
 0x12d   :  { %v149_v49 = vsel %vm69_vm0, %v145_v48, 0.0 }
 0x12e   :  { %150 = vadd.xlane.f32.xlu1 %v149_v49 }
 0x199   :  { %v148_v50 = vpop.xlane.xlu1 %147 }
 0x19a   :  { %v152_v51 = vmul.f32 %v148_v50, %v139_v39 }
 0x19c   :  { %v154_v52 = vadd.f32 1e-05, %v152_v51 }
 0x19e   :  { %209 = vrsqrt.f32 %v154_v52  ;;  %vm162_vm4 = vweird.f32 %v154_v52 }
 0x1a1   :  { %v151_v53 = vpop.xlane.xlu1 %150 }
 0x1a2   :  { %v153_v54 = vmul.f32 %v151_v53, %v139_v39 }
 0x1a4   :  { %v210_v55 = vpop.eup %209  ;;  %v155_v56 = vadd.f32 1e-05, %v153_v54 }
 0x1a5   :  { %v157_v57 = vmul.f32 %v210_v55, %v154_v52  ;;  %vm163_vm3 = vweird.f32 %v210_v55 }
 0x1a6   :  { %211 = vrsqrt.f32 %v155_v56  ;;  %vm164_vm5 = vmor %vm162_vm4, %vm163_vm3  ;;  %vm172_vm7 = vweird.f32 %v155_v56 }
 0x1a7   :  { %v158_v58 = vmul.f32 %v210_v55, %v157_v57 }
 0x1a9   :  { %v159_v59 = vmul.f32 0.5, %v158_v58 }
 0x1ab   :  { %v160_v60 = vsub.f32 1.5, %v159_v59 }
 0x1ac   :  { %v212_v61 = vpop.eup %211 }
 0x1ad   :  { %v161_v62 = vmul.f32 %v210_v55, %v160_v60  ;;  %v167_v63 = vmul.f32 %v212_v61, %v155_v56  ;;  %vm173_vm6 = vweird.f32 %v212_v61 }
 0x1ae   :  { %vm174_vm8 = vmor %vm172_vm7, %vm173_vm6 }
 0x1af   :  { %v165_v1 = vsel %vm164_vm5, %v210_v55, %v161_v62  ;;  %v168_v2 = vmul.f32 %v212_v61, %v167_v63 }
 0x1b0   :  { %v176_v4 = vmul.f32 %v165_v1, %v142_v42 }
 0x1b1   :  { %v169_v5 = vmul.f32 0.5, %v168_v2 }
 0x1b2   :  { %v182_v6 = vmul.f32 %v205_v0, %v176_v4 }
 0x1b3   :  { %v170_v7 = vsub.f32 1.5, %v169_v5 }
 0x1b4   :  { %v188_v8 = vadd.f32 %v206_v3, %v182_v6 }
 0x1b5   :  { %v171_v9 = vmul.f32 %v212_v61, %v170_v7 }
 0x1b6   :  { %190 = vst.msk [vmem:[%s396_s6] sm:$0xff] %vm69_vm0, %v188_v8 }
 0x1b7   :  { %v175_v10 = vsel %vm174_vm8, %v212_v61, %v171_v9 }
 0x1b8   :  { %v177_v11 = vmul.f32 %v175_v10, %v143_v47 }
 0x1ba   :  { %v183_v12 = vmul.f32 %v205_v0, %v177_v11 }
 0x1bc   :  { %v189_v13 = vadd.f32 %v206_v3, %v183_v12 }
 0x1be   :  { %191 = vst.msk [vmem:[%s396_s6 + $0x8] sm:$0xff] %vm69_vm0, %v189_v13 }
 0x1bf   :  { %196 = vsyncpa [#allocation4], 1 }
 0x1c0   :  { %197 = vsyncpa [#allocation6], 1 }

// kernel: transformer_forward.43
= control target key start
LH: loop header
LB: loop body
LE: loop exit
PB: predicated region body
PF: predicated region fallthrough
CT: control target
= control target key end

     0   :  { %s521_s12 = smov 0   ;;  %s523_s13 = smov 0   ;;  %s570_s0 = inlined_call_operand.vmem [shape: f32[16,32], index: 0, kind: input, shape index: {}]   ;;  %s571_s1 = inlined_call_operand.vmem [shape: f32[2,32,32], index: 1, kind: input, shape index: {}]   ;;  %s572_s2 = inlined_call_operand.vmem [shape: f32[2,1,32], index: 2, kind: input, shape index: {}]   ;;  %s573_s3 = inlined_call_operand.vmem [shape: f32[2,16,32], index: 3, kind: output, shape index: {}]  }
   0x1   :  { %s525_s14 = smov 0  }
   0x2 LB: > { %s28_s15 = sadd.s32 1, %s494_s13  ;;  %p440_p0 = scmp.ge.s32.totalorder %s498_s14, 1  ;;  %s498_s14 = sphi %s525_s14, %s13_s14   ;;  %s494_s13 = sphi %s523_s13, %s575_s13   ;;  %s490_s12 = sphi %s521_s12, %s574_s12  }
   0x3   : > { %p30_p1 = scmp.ge.s32.totalorder %s28_s15, 2  ;;  %p189_p2 = scmp.lt.s32.totalorder %s498_s14, 3 }
   0x5   : > { %s577_s15 = smov (%p30_p1, %s28_s15), 0  ;;  %p190_p3 = pnand %p440_p0, %p189_p2 }
   0x6   : > { %p242_p4 = scmp.lt.s32.totalorder (!%p190_p3), %s490_s12, 1 }
   0x7   : > { %193 = sbr.rel (%p190_p3) target bundleno = 172 (0xac), region = 32 }
   0xc   : > { %vm269_vm0 = vcmask 261120   ;;  %v500_v0 = vmov 0.0   ;;  %s579_s12 = smov (!%p242_p4, %s490_s12), 1  ;;  %v274_v7 = vld [vmem:[%s570_s0] sm:$0xff]  ;;  %v275_v8 = vld [vmem:[%s570_s0 + $0x8] sm:$0xff] }
   0xd   : > { %270 = vst.msk [vmem:[#allocation2] sm:$0xff] %vm269_vm0, %v500_v0  ;;  %s448_s16 = sshll.u32 %s579_s12, 5  ;;  %s253_s19 = scalar_lea.vmem %s572_s2, %s579_s12  ;;  %v276_v9 = vpack.c.bf16 %v275_v8, %v274_v7 }
   0xe   : > { %271 = vst.msk [vmem:[#allocation2 + $0x8] sm:$0xff] %vm269_vm0, %v500_v0  ;;  %s249_s22 = scalar_lea.vmem %s571_s1, %s448_s16  ;;  %s449_s27 = sshll.u32 %s579_s12, 4  ;;  %v475_v14 = vld [vmem:[%s253_s19] ss:$0 sm:$0xff] }
   0xf   : > { %v279_v1 = vld [vmem:[%s249_s22 + $0x10] sm:$0xff]  ;;  %v280_v2 = vld [vmem:[%s249_s22 + $0x18] sm:$0xff]  ;;  %v277_v3 = vld [vmem:[%s249_s22] sm:$0xff]  ;;  %s262_s30 = scalar_lea.vmem %s573_s3, %s449_s27 }
  0x10   : > { %v282_v4 = vpack.c.bf16 %v280_v2, %v279_v1  ;;  %v278_v5 = vld [vmem:[%s249_s22 + $0x8] sm:$0xff] }
  0x11   : > { %v281_v6 = vpack.c.bf16 %v278_v5, %v277_v3 }
  0x12   : > { %293 = vmatpush.bf16.msra.mxu0 %v282_v4 }
  0x14   : > { %v272_v10 = vld [vmem:[#allocation2] sm:$0xff] }
  0x15   : > { %v273_v13 = vld [vmem:[#allocation2 + $0x8] sm:$0xff] }
  0x16   : > { %294 = vmatpush.bf16.msra.mxu0 %v281_v6 }
  0x19   : > { %445 = vmatmul.msk.bf16.vlgmr.msra.gmra.mxu0 %vm269_vm0, %v276_v9 }
  0x96   : > { %v296_v11 = vpop.f32.mrf.mxu0 }
  0x97   : > { %v301_v12 = vadd.f32 %v296_v11, %v272_v10 }
  0x99   : > { %303 = vst.msk [vmem:[#allocation2] sm:$0xff] %vm269_vm0, %v301_v12 }
  0x9e   : > { %v298_v15 = vpop.f32.mrf.mxu0 }
  0x9f   : > { %v302_v16 = vadd.f32 %v298_v15, %v273_v13 }
  0xa0   : > { %v308_v17 = vld [vmem:[#allocation2] sm:$0xff] }
  0xa1   : > { %v314_v18 = vadd.f32 %v475_v14, %v308_v17  ;;  %304 = vst.msk [vmem:[#allocation2 + $0x8] sm:$0xff] %vm269_vm0, %v302_v16 }
  0xa3   : > { %316 = vst.msk [vmem:[%s262_s30] sm:$0xff] %vm269_vm0, %v314_v18 }
  0xa8   : > { %v309_v19 = vld [vmem:[#allocation2 + $0x8] sm:$0xff] }
  0xa9   : > { %v315_v20 = vadd.f32 %v475_v14, %v309_v19 }
  0xab   : > { %317 = vst.msk [vmem:[%s262_s30 + $0x8] sm:$0xff] %vm269_vm0, %v315_v20 }
  0xac PF: > { %s13_s14 = sadd.s32 1, %s498_s14   ;;  %s574_s12 = smov %s494_s13 }
  0xad   : > { %p10_p5 = scmp.ge.s32.totalorder %s13_s14, 4   ;;  %s575_s13 = smov %s577_s15 }
  0xaf   :  { %12 = sbr.rel (!%p10_p5) target bundleno = 2 (0x2), region = 76 }

// kernel: transformer_forward.42
= control target key start
LH: loop header
LB: loop body
LE: loop exit
PB: predicated region body
PF: predicated region fallthrough
CT: control target
= control target key end

     0   :  { %8 = vsyncpa [#allocation4], 0  ;;  %s117_s15 = smov [#allocation3]   ;;  %s173_s0 = inlined_call_operand.vmem [shape: f32[16,32], index: 0, kind: input, shape index: {}]   ;;  %s174_s1 = inlined_call_operand.vmem [shape: f32[32,32], index: 1, kind: input, shape index: {}]   ;;  %s175_s2 = inlined_call_operand.hbm [shape: f32[1,32], index: 2, kind: input, shape index: {}]   ;;  %s176_s3 = inlined_call_operand.vmem [shape: f32[16,32], index: 3, kind: output, shape index: {}]  }
   0x1   :  { %s18_s14 = sshll.u32 %s175_s2, 4  ;;  %s20_s16 = sshll.u32 %s117_s15, 4  ;;  %s19_s14 = int_to_ptr.hbm [resolvable:$true] %s18_s14  ;;  %s21_s16 = int_to_ptr.vmem [resolvable:$true] %s20_s16 }
   0x2   :  { %23 = dma.hbm_to_vmem [thread:$0]  %s19_s14, 16, %s21_s16, [#allocation4]  }
   0x3   :  { %115 = dma.done.wait [#allocation4], 16  }
   0x4   :  { %116 = vsyncadd [#allocation4], 4294967280  ;;  %vm33_vm0 = vcmask 261120   ;;  %v118_v0 = vmov 0.0   ;;  %v43_v1 = vld [vmem:[%s174_s1 + $0x10] sm:$0xff]  ;;  %v44_v2 = vld [vmem:[%s174_s1 + $0x18] sm:$0xff] }
   0x5   :  { %34 = vst.msk [vmem:[#allocation2] sm:$0xff] %vm33_vm0, %v118_v0  ;;  %v41_v3 = vld [vmem:[%s174_s1] sm:$0xff]  ;;  %v46_v4 = vpack.c.bf16 %v44_v2, %v43_v1  ;;  %v42_v5 = vld [vmem:[%s174_s1 + $0x8] sm:$0xff]  ;;  %v90_v14 = vld [vmem:[#allocation3] ss:$0 sm:$0xff] }
   0x6   :  { %35 = vst.msk [vmem:[#allocation2 + $0x8] sm:$0xff] %vm33_vm0, %v118_v0  ;;  %v45_v6 = vpack.c.bf16 %v42_v5, %v41_v3  ;;  %v38_v7 = vld [vmem:[%s173_s0] sm:$0xff]  ;;  %v39_v8 = vld [vmem:[%s173_s0 + $0x8] sm:$0xff] }
   0x7   :  { %57 = vmatpush.bf16.msra.mxu0 %v46_v4  ;;  %v40_v9 = vpack.c.bf16 %v39_v8, %v38_v7 }
   0xb   :  { %58 = vmatpush.bf16.msra.mxu0 %v45_v6 }
   0xc   :  { %v36_v10 = vld [vmem:[#allocation2] sm:$0xff] }
   0xd   :  { %v37_v13 = vld [vmem:[#allocation2 + $0x8] sm:$0xff] }
   0xe   :  { %87 = vmatmul.msk.bf16.vlgmr.msra.gmra.mxu0 %vm33_vm0, %v40_v9 }
  0x8b   :  { %v60_v11 = vpop.f32.mrf.mxu0 }
  0x8c   :  { %v65_v12 = vadd.f32 %v60_v11, %v36_v10 }
  0x8e   :  { %67 = vst.msk [vmem:[#allocation2] sm:$0xff] %vm33_vm0, %v65_v12 }
  0x93   :  { %v62_v15 = vpop.f32.mrf.mxu0 }
  0x94   :  { %v66_v16 = vadd.f32 %v62_v15, %v37_v13 }
  0x95   :  { %v72_v17 = vld [vmem:[#allocation2] sm:$0xff] }
  0x96   :  { %v78_v18 = vadd.f32 %v90_v14, %v72_v17  ;;  %68 = vst.msk [vmem:[#allocation2 + $0x8] sm:$0xff] %vm33_vm0, %v66_v16 }
  0x98   :  { %80 = vst.msk [vmem:[%s176_s3] sm:$0xff] %vm33_vm0, %v78_v18 }
  0x9d   :  { %v73_v19 = vld [vmem:[#allocation2 + $0x8] sm:$0xff] }
  0x9e   :  { %v79_v20 = vadd.f32 %v90_v14, %v73_v19 }
  0xa0   :  { %81 = vst.msk [vmem:[%s176_s3 + $0x8] sm:$0xff] %vm33_vm0, %v79_v20 }
  0xa1   :  { %86 = vsyncpa [#allocation4], 1 }

// kernel: transformer_forward.41
= control target key start
LH: loop header
LB: loop body
LE: loop exit
PB: predicated region body
PF: predicated region fallthrough
CT: control target
= control target key end

     0   :  { %11 = vsyncpa [#allocation4], 0  ;;  %s372_s0 = inlined_call_operand.vmem [shape: f32[16,32], index: 0, kind: input, shape index: {}]   ;;  %s373_s1 = inlined_call_operand.vmem [shape: f32[32,32], index: 1, kind: input, shape index: {}]   ;;  %s374_s2 = inlined_call_operand.hbm [shape: f32[1,32], index: 2, kind: input, shape index: {}]   ;;  %s375_s3 = inlined_call_operand.vmem [shape: f32[16,32], index: 3, kind: input, shape index: {}]   ;;  %s376_s4 = inlined_call_operand.hbm [shape: f32[1,32], index: 4, kind: input, shape index: {}]   ;;  %s377_s5 = inlined_call_operand.hbm [shape: f32[1,32], index: 5, kind: input, shape index: {}]   ;;  %s378_s6 = inlined_call_operand.vmem [shape: f32[16,32], index: 6, kind: output, shape index: {}]  }
   0x1   :  { %12 = vsyncpa [#allocation6], 0  ;;  %s35_s23 = sshll.u32 %s376_s4, 4  ;;  %s282_s24 = smov [#allocation5]   ;;  %s36_s23 = int_to_ptr.hbm [resolvable:$true] %s35_s23 }
   0x2   :  { %s37_s25 = sshll.u32 %s282_s24, 4  ;;  %s22_s28 = sshll.u32 %s374_s2, 4  ;;  %s38_s25 = int_to_ptr.vmem [resolvable:$true] %s37_s25  ;;  %s23_s28 = int_to_ptr.hbm [resolvable:$true] %s22_s28 }
   0x3   :  { %40 = dma.hbm_to_vmem [thread:$0]  %s36_s23, 16, %s38_s25, [#allocation6]  }
   0x4   :  { %s283_s29 = smov [#allocation3]   ;;  %s46_s9 = sshll.u32 %s377_s5, 4  ;;  %s47_s9 = int_to_ptr.hbm [resolvable:$true] %s46_s9 }
   0x5   :  { %s24_s30 = sshll.u32 %s283_s29, 4  ;;  %s284_s4 = smov [#allocation7]   ;;  %s25_s30 = int_to_ptr.vmem [resolvable:$true] %s24_s30 }
   0x6   :  { %27 = dma.hbm_to_vmem [thread:$0]  %s23_s28, 16, %s25_s30, [#allocation4]  }
   0x7   :  { %s48_s10 = sshll.u32 %s284_s4, 4  ;;  %s49_s10 = int_to_ptr.vmem [resolvable:$true] %s48_s10 }
   0x8   :  { %51 = dma.hbm_to_vmem [thread:$0]  %s47_s9, 16, %s49_s10, [#allocation6]  }
   0x9   :  { %278 = dma.done.wait [#allocation4], 16  }
   0xa   :  { %279 = vsyncadd [#allocation4], 4294967280 }
   0xb   :  { %280 = dma.done.wait [#allocation6], 32  }
   0xc   :  { %281 = vsyncadd [#allocation6], 4294967264  ;;  %vm69_vm0 = vcmask 261120   ;;  %v285_v0 = vmov 0.0   ;;  %v79_v1 = vld [vmem:[%s373_s1 + $0x10] sm:$0xff]  ;;  %v80_v2 = vld [vmem:[%s373_s1 + $0x18] sm:$0xff] }
   0xd   :  { %70 = vst.msk [vmem:[#allocation2] sm:$0xff] %vm69_vm0, %v285_v0  ;;  %v77_v3 = vld [vmem:[%s373_s1] sm:$0xff]  ;;  %v82_v4 = vpack.c.bf16 %v80_v2, %v79_v1  ;;  %v78_v5 = vld [vmem:[%s373_s1 + $0x8] sm:$0xff]  ;;  %v197_v14 = vld [vmem:[#allocation3] ss:$0 sm:$0xff]  ;;  %v286_v27 = vmov 32.0  }
   0xe   :  { %71 = vst.msk [vmem:[#allocation2 + $0x8] sm:$0xff] %vm69_vm0, %v285_v0  ;;  %v81_v6 = vpack.c.bf16 %v78_v5, %v77_v3  ;;  %v74_v7 = vld [vmem:[%s372_s0] sm:$0xff]  ;;  %v75_v8 = vld [vmem:[%s372_s0 + $0x8] sm:$0xff]  ;;  %200 = vrcp.f32 %v286_v27  ;;  %v198_v58 = vld [vmem:[#allocation5] ss:$0 sm:$0xff] }
   0xf   :  { %93 = vmatpush.bf16.msra.mxu0 %v82_v4  ;;  %v76_v9 = vpack.c.bf16 %v75_v8, %v74_v7  ;;  %v116_v18 = vld [vmem:[%s375_s3] sm:$0xff]  ;;  %v117_v23 = vld [vmem:[%s375_s3 + $0x8] sm:$0xff]  ;;  %v199_v61 = vld [vmem:[#allocation7] ss:$0 sm:$0xff] }
  0x13   :  { %94 = vmatpush.bf16.msra.mxu0 %v81_v6 }
  0x14   :  { %v72_v10 = vld [vmem:[#allocation2] sm:$0xff]  ;;  %v201_v28 = vpop.eup %200 }
  0x15   :  { %v73_v13 = vld [vmem:[#allocation2 + $0x8] sm:$0xff]  ;;  %v127_v29 = vmul.f32 32.0, %v201_v28  ;;  %vm131_vm1 = vweird.f32 %v201_v28 }
  0x16   :  { %191 = vmatmul.msk.bf16.vlgmr.msra.gmra.mxu0 %vm69_vm0, %v76_v9 }
  0x17   :  { %v128_v30 = vsub.f32 1.0, %v127_v29 }
  0x19   :  { %v129_v31 = vmul.f32 %v201_v28, %v128_v30 }
  0x1b   :  { %v130_v32 = vadd.f32 %v201_v28, %v129_v31 }
  0x1d   :  { %v132_v33 = vsel %vm131_vm1, %v201_v28, %v130_v32 }
  0x93   :  { %v96_v11 = vpop.f32.mrf.mxu0 }
  0x94   :  { %v101_v12 = vadd.f32 %v96_v11, %v72_v10 }
  0x96   :  { %103 = vst.msk [vmem:[#allocation2] sm:$0xff] %vm69_vm0, %v101_v12 }
  0x9b   :  { %v98_v15 = vpop.f32.mrf.mxu0 }
  0x9c   :  { %v102_v16 = vadd.f32 %v98_v15, %v73_v13 }
  0x9d   :  { %v108_v17 = vld [vmem:[#allocation2] sm:$0xff] }
  0x9e   :  { %104 = vst.msk [vmem:[#allocation2 + $0x8] sm:$0xff] %vm69_vm0, %v102_v16  ;;  %v114_v19 = vadd.f32 %v197_v14, %v108_v17 }
  0xa0   :  { %v118_v20 = vadd.f32 %v116_v18, %v114_v19 }
  0xa2   :  { %v120_v21 = vsel %vm69_vm0, %v118_v20, 0.0 }
  0xa3   :  { %121 = vadd.xlane.f32.xlu0 %v120_v21 }
  0xa5   :  { %v109_v22 = vld [vmem:[#allocation2 + $0x8] sm:$0xff] }
  0xa6   :  { %v115_v24 = vadd.f32 %v197_v14, %v109_v22 }
  0xa8   :  { %v119_v25 = vadd.f32 %v117_v23, %v115_v24 }
  0xaa   :  { %v123_v26 = vsel %vm69_vm0, %v119_v25, 0.0 }
  0xab   :  { %124 = vadd.xlane.f32.xlu0 %v123_v26 }
 0x116   :  { %v122_v34 = vpop.xlane.xlu0 %121 }
 0x117   :  { %v133_v35 = vmul.f32 %v132_v33, %v122_v34 }
 0x119   :  { %v135_v36 = vsub.f32 %v118_v20, %v133_v35 }
 0x11b   :  { %v137_v37 = vmul.f32 %v135_v36, %v135_v36 }
 0x11d   :  { %v139_v38 = vsel %vm69_vm0, %v137_v37, 0.0 }
 0x11e   :  { %140 = vadd.xlane.f32.xlu1 %v139_v38  ;;  %v125_v39 = vpop.xlane.xlu0 %124 }
 0x11f   :  { %v134_v40 = vmul.f32 %v132_v33, %v125_v39 }
 0x121   :  { %v136_v41 = vsub.f32 %v119_v25, %v134_v40 }
 0x123   :  { %v138_v42 = vmul.f32 %v136_v41, %v136_v41 }
 0x125   :  { %v142_v43 = vsel %vm69_vm0, %v138_v42, 0.0 }
 0x126   :  { %143 = vadd.xlane.f32.xlu1 %v142_v43 }
 0x191   :  { %v141_v44 = vpop.xlane.xlu1 %140 }
 0x192   :  { %v145_v45 = vmul.f32 %v141_v44, %v132_v33 }
 0x194   :  { %v147_v46 = vadd.f32 1e-05, %v145_v45 }
 0x196   :  { %202 = vrsqrt.f32 %v147_v46  ;;  %vm155_vm3 = vweird.f32 %v147_v46 }
 0x199   :  { %v144_v47 = vpop.xlane.xlu1 %143 }
 0x19a   :  { %v146_v48 = vmul.f32 %v144_v47, %v132_v33 }
 0x19c   :  { %v203_v49 = vpop.eup %202  ;;  %v148_v50 = vadd.f32 1e-05, %v146_v48 }
 0x19d   :  { %v150_v51 = vmul.f32 %v203_v49, %v147_v46  ;;  %vm156_vm2 = vweird.f32 %v203_v49 }
 0x19e   :  { %204 = vrsqrt.f32 %v148_v50  ;;  %vm157_vm4 = vmor %vm155_vm3, %vm156_vm2  ;;  %vm165_vm6 = vweird.f32 %v148_v50 }
 0x19f   :  { %v151_v52 = vmul.f32 %v203_v49, %v150_v51 }
 0x1a1   :  { %v152_v53 = vmul.f32 0.5, %v151_v52 }
 0x1a3   :  { %v153_v54 = vsub.f32 1.5, %v152_v53 }
 0x1a4   :  { %v205_v55 = vpop.eup %204 }
 0x1a5   :  { %v154_v56 = vmul.f32 %v203_v49, %v153_v54  ;;  %v160_v57 = vmul.f32 %v205_v55, %v148_v50  ;;  %vm166_vm5 = vweird.f32 %v205_v55 }
 0x1a6   :  { %vm167_vm7 = vmor %vm165_vm6, %vm166_vm5 }
 0x1a7   :  { %v158_v59 = vsel %vm157_vm4, %v203_v49, %v154_v56  ;;  %v161_v60 = vmul.f32 %v205_v55, %v160_v57 }
 0x1a8   :  { %v169_v62 = vmul.f32 %v158_v59, %v135_v36 }
 0x1a9   :  { %v162_v63 = vmul.f32 0.5, %v161_v60 }
 0x1aa   :  { %v175_v0 = vmul.f32 %v198_v58, %v169_v62 }
 0x1ab   :  { %v163_v1 = vsub.f32 1.5, %v162_v63 }
 0x1ac   :  { %v181_v2 = vadd.f32 %v199_v61, %v175_v0 }
 0x1ad   :  { %v164_v3 = vmul.f32 %v205_v55, %v163_v1 }
 0x1ae   :  { %183 = vst.msk [vmem:[%s378_s6] sm:$0xff] %vm69_vm0, %v181_v2 }
 0x1af   :  { %v168_v4 = vsel %vm167_vm7, %v205_v55, %v164_v3 }
 0x1b0   :  { %v170_v5 = vmul.f32 %v168_v4, %v136_v41 }
 0x1b2   :  { %v176_v6 = vmul.f32 %v198_v58, %v170_v5 }
 0x1b4   :  { %v182_v7 = vadd.f32 %v199_v61, %v176_v6 }
 0x1b6   :  { %184 = vst.msk [vmem:[%s378_s6 + $0x8] sm:$0xff] %vm69_vm0, %v182_v7 }
 0x1b7   :  { %189 = vsyncpa [#allocation4], 1 }
 0x1b8   :  { %190 = vsyncpa [#allocation6], 1 }

// kernel: transformer_forward.46
= control target key start
LH: loop header
LB: loop body
LE: loop exit
PB: predicated region body
PF: predicated region fallthrough
CT: control target
= control target key end

     0   :  { %8 = vsyncpa [#allocation4], 0  ;;  %s215_s0 = inlined_call_operand.vmem [shape: f32[16,32], index: 0, kind: input, shape index: {}]   ;;  %s216_s1 = inlined_call_operand.hbm [shape: f32[32,64], index: 1, kind: input, shape index: {}]   ;;  %s217_s2 = inlined_call_operand.hbm [shape: f32[1,64], index: 2, kind: input, shape index: {}]   ;;  %s218_s3 = inlined_call_operand.vmem [shape: f32[16,64], index: 3, kind: output, shape index: {}]  }
   0x1   :  { %s16_s14 = sshll.u32 %s216_s1, 4  ;;  %s17_s14 = int_to_ptr.hbm [resolvable:$true] %s16_s14 }
   0x2   :  { %9 = vsyncpa [#allocation6], 0  ;;  %s166_s15 = smov [#allocation3]   ;;  %s30_s19 = sshll.u32 %s217_s2, 4  ;;  %s31_s19 = int_to_ptr.hbm [resolvable:$true] %s30_s19 }
   0x3   :  { %s18_s16 = sshll.u32 %s166_s15, 4  ;;  %s167_s20 = smov 128   ;;  %s19_s16 = int_to_ptr.vmem [resolvable:$true] %s18_s16 }
   0x4   :  { %s168_s21 = smov 8   ;;  %s169_s22 = smov [#allocation5]  }
   0x5   :  { %24 = dma.hbm_to_vmem [thread:$0]  %s17_s14, 512, %s19_s16, [#allocation4], %s167_s20, %s167_s20, %s168_s21  }
   0x6   :  { %s32_s23 = sshll.u32 %s169_s22, 4  ;;  %s33_s23 = int_to_ptr.vmem [resolvable:$true] %s32_s23 }
   0x7   :  { %35 = dma.hbm_to_vmem [thread:$0]  %s31_s19, 16, %s33_s23, [#allocation6]  }
   0x8   :  { %162 = dma.done.wait [#allocation4], 512  }
   0x9   :  { %163 = vsyncadd [#allocation4], 4294966784 }
   0xa   :  { %164 = dma.done.wait [#allocation6], 16  }
   0xb   :  { %165 = vsyncadd [#allocation6], 4294967280  ;;  %vm49_vm0 = vcmask 523264   ;;  %v170_v0 = vmov 0.0   ;;  %v59_v1 = vld [vmem:[#allocation3 + $0x10] sm:$0xff]  ;;  %v60_v2 = vld [vmem:[#allocation3 + $0x18] sm:$0xff] }
   0xc   :  { %50 = vst.msk [vmem:[#allocation2] sm:$0xff] %vm49_vm0, %v170_v0  ;;  %v57_v3 = vld [vmem:[#allocation3] sm:$0xff]  ;;  %v62_v4 = vpack.c.bf16 %v60_v2, %v59_v1  ;;  %v58_v5 = vld [vmem:[#allocation3 + $0x8] sm:$0xff]  ;;  %v54_v7 = vld [vmem:[%s215_s0] sm:$0xff]  ;;  %vm63_vm1 = vcmask 261120  }
   0xd   :  { %51 = vst.msk [vmem:[#allocation2 + $0x8] sm:$0xff] %vm49_vm0, %v170_v0  ;;  %v61_v6 = vpack.c.bf16 %v58_v5, %v57_v3  ;;  %v55_v8 = vld [vmem:[%s215_s0 + $0x8] sm:$0xff]  ;;  %v113_v14 = vld [vmem:[#allocation5] ss:$0 sm:$0xff] }
   0xe   :  { %73 = vmatpush.bf16.msra.mxu0 %v62_v4  ;;  %v56_v9 = vpack.c.bf16 %v55_v8, %v54_v7 }
  0x12   :  { %74 = vmatpush.bf16.msra.mxu0 %v61_v6 }
  0x13   :  { %v52_v10 = vld [vmem:[#allocation2] sm:$0xff] }
  0x14   :  { %v53_v13 = vld [vmem:[#allocation2 + $0x8] sm:$0xff] }
  0x15   :  { %107 = vmatmul.msk.bf16.vlgmr.msra.gmra.mxu0 %vm63_vm1, %v56_v9 }
  0x92   :  { %v76_v11 = vpop.f32.mrf.mxu0 }
  0x93   :  { %v81_v12 = vadd.f32 %v76_v11, %v52_v10 }
  0x95   :  { %84 = vst.msk [vmem:[#allocation2] sm:$0xff] %vm49_vm0, %v81_v12 }
  0x9a   :  { %v78_v15 = vpop.f32.mrf.mxu0 }
  0x9b   :  { %v82_v16 = vadd.f32 %v78_v15, %v53_v13 }
  0x9c   :  { %v89_v17 = vld [vmem:[#allocation2] sm:$0xff] }
  0x9d   :  { %v95_v18 = vadd.f32 %v113_v14, %v89_v17  ;;  %85 = vst.msk [vmem:[#allocation2 + $0x8] sm:$0xff] %vm49_vm0, %v82_v16 }
  0x9f   :  { %v97_v19 = vmax.f32 %v95_v18, 0.0 }
  0xa1   :  { %99 = vst.msk [vmem:[%s218_s3] sm:$0xff] %vm49_vm0, %v97_v19 }
  0xa4   :  { %v90_v20 = vld [vmem:[#allocation2 + $0x8] sm:$0xff] }
  0xa5   :  { %v96_v21 = vadd.f32 %v113_v14, %v90_v20 }
  0xa7   :  { %v98_v22 = vmax.f32 %v96_v21, 0.0 }
  0xa9   :  { %100 = vst.msk [vmem:[%s218_s3 + $0x8] sm:$0xff] %vm49_vm0, %v98_v22 }
  0xaa   :  { %105 = vsyncpa [#allocation4], 1 }
  0xab   :  { %106 = vsyncpa [#allocation6], 1 }

// kernel: transformer_forward.44
= control target key start
LH: loop header
LB: loop body
LE: loop exit
PB: predicated region body
PF: predicated region fallthrough
CT: control target
= control target key end

     0   :  { %s906_s12 = smov 0   ;;  %s908_s13 = smov 0   ;;  %s1020_s0 = inlined_call_operand.vmem [shape: f32[1,2,8,32], index: 0, kind: input, shape index: {}]   ;;  %s1021_s1 = inlined_call_operand.vmem [shape: f32[2,2,8,32], index: 1, kind: input, shape index: {}, may-alias: {1,2}]   ;;  %s1022_s2 = inlined_call_operand.vmem [shape: f32[2,2,8,32], index: 2, kind: input, shape index: {}, may-alias: {1,2}]   ;;  %s1023_s3 = inlined_call_operand.vmem [shape: f32[2,8,32], index: 3, kind: output, shape index: {}]  }
   0x1   :  { %s910_s14 = smov 0  }
   0x2 LB: > { %s32_s15 = sadd.s32 1, %s868_s13  ;;  %p770_p0 = scmp.ge.s32.totalorder %s872_s14, 1  ;;  %s872_s14 = sphi %s910_s14, %s13_s14   ;;  %s868_s13 = sphi %s908_s13, %s1025_s13   ;;  %s864_s12 = sphi %s906_s12, %s1024_s12  }
   0x3   : > { %p34_p1 = scmp.ge.s32.totalorder %s32_s15, 2  ;;  %p191_p2 = scmp.lt.s32.totalorder %s872_s14, 3 }
   0x5   : > { %s1027_s15 = smov (%p34_p1, %s32_s15), 0  ;;  %p192_p3 = pnand %p770_p0, %p191_p2 }
   0x6   : > { %p234_p4 = scmp.lt.s32.totalorder (!%p192_p3), %s864_s12, 1  ;;  %s875_s23 = smov (!%p192_p3), 120  }
   0x7   : > { %195 = sbr.rel (%p192_p3) target bundleno = 1294 (0x50e), region = 32  ;;  %s876_s24 = smov (!%p192_p3), 112  }
   0x8   : > { %s879_s25 = smov (!%p192_p3), 104   ;;  %s883_s29 = smov (!%p192_p3), 8  }
   0x9   : > { %s884_s30 = smov (!%p192_p3), 16   ;;  %s885_s4 = smov (!%p192_p3), 24  }
   0xc   : > { %s1029_s12 = smov (!%p234_p4, %s864_s12), 1  ;;  %vm278_vm0 = vcmask 64512   ;;  %vm268_vm1 = vcmask 261120   ;;  %v874_v6 = vmov -inf   ;;  %v877_v14 = vmov 0  }
   0xd   : > { %s924_s16 = sshll.u32 %s1029_s12, 3  ;;  %269 = vst.msk [vmem:[#allocation2] sm:$0xff] %vm268_vm1, %v874_v6  ;;  %822 = vset.pattern.permute.xlu1 %v877_v14  ;;  %826 = vset.pattern.permute.xlu0 %v877_v14  ;;  %v878_v15 = vmov 0.0   ;;  %vm325_vm2 = vcmask 1043456   ;;  %v880_v40 = vmov 8   ;;  %v881_v60 = vmov 16  }
   0xe   : > { %s247_s19 = scalar_lea.vmem %s1021_s1, %s924_s16  ;;  %s240_s22 = scalar_lea.vmem %s1020_s0, %s924_s16  ;;  %270 = vst.msk [vmem:[#allocation3] sm:$0xff] %vm268_vm1, %v878_v15  ;;  %823 = vset.pattern.permute.xlu2 %v880_v40  ;;  %vm447_vm3 = vcmask 130112   ;;  %vm536_vm4 = vcmask 195712   ;;  %vm625_vm5 = vcmask 261312  }
   0xf   : > { %v273_v0 = vld [vmem:[%s247_s19] sm:$0xff]  ;;  %271 = vst.msk [vmem:[#allocation4] sm:$0xff] %vm268_vm1, %v878_v15  ;;  %s712_s28 = scalar_lea.vmem %s1022_s2, %s924_s16  ;;  %s262_s7 = scalar_lea.vmem %s1023_s3, %s924_s16 }
  0x10   : > { %v276_v1 = vpack.c.bf16 %v273_v0, %v273_v0  ;;  %v272_v3 = vld [vmem:[%s240_s22] sm:$0xff]  ;;  %v775_v22 = vld [vmem:[%s712_s28 + $0x10] sm:$0xff] }
  0x11   : > { %v275_v4 = vpack.c.bf16 %v272_v3, %v272_v3  ;;  %v277_v23 = vpack.c.bf16 %v775_v22, %v775_v22 }
  0x12   : > { %v283_v2 = vsel %vm278_vm0, %v276_v1, 0  ;;  %v364_v12 = vunpack.c.l.b16 %v276_v1 }
  0x13   : > { %292 = vmatpush.bf16.xpose.msra.mxu0 %v283_v2  ;;  %v359_v5 = vunpack.c.l.b16 %v275_v4  ;;  %v327_v24 = vsel %vm325_vm2, %v277_v23, 0  ;;  %v412_v41 = vunpack.c.l.b16 %v277_v23  ;;  %v882_v23 = vmov 24  }
  0x14   : > { %v365_v13 = vpack.c.b16 %v364_v12, %v364_v12  ;;  %v299_v16 = vld [vmem:[#allocation2] sm:$0xff]  ;;  %336 = vmatpush.bf16.msra.mxu1 %v327_v24 }
  0x15   : > { %v360_v7 = vpack.c.b16 %v359_v5, %v359_v5  ;;  %v413_v42 = vpack.c.b16 %v412_v41, %v412_v41  ;;  %v300_v56 = vld [vmem:[#allocation3] sm:$0xff] }
  0x16   : > { %458 = vrot.lane.b32.xlu2 %v365_v13, %s876_s24  ;;  %v342_v24 = vld [vmem:[#allocation4] sm:$0xff] }
  0x17   : > { %361 = vrot.lane.b32.xlu1 %v360_v7, %s875_s23 }
  0x1a   : > { %776 = vmatmul.msk.bf16.vlgmr.msra.gmra.mxu0 %vm278_vm0, %v275_v4 }
  0x1e   : > { %456 = vrot.lane.b32.xlu2 %v360_v7, %s876_s24 }
  0x26   : > { %545 = vrot.lane.b32.xlu2 %v360_v7, %s879_s25 }
  0x70   : > { %v459_v25 = vpop.permute.xlu2 %458 }
  0x71   : > { %v464_v26 = vsel %vm278_vm0, %v459_v25, 0 }
  0x72   : > { %473 = vmatpush.bf16.xpose.msrb.mxu1 %v464_v26 }
  0x78   : > { %v457_v34 = vpop.permute.xlu2 %456 }
  0x80   : > { %v546_v45 = vpop.permute.xlu2 %545 }
  0x89   : > { %v362_v21 = vpop.permute.xlu1 %361 }
  0x97   : > { %v294_v8 = vpop.f32.mrf.mxu0 }
  0x98   : > { %v298_v9 = vmul.f32 0.35355338, %v294_v8 }
  0x9a   : > { %v301_v10 = vsel %vm278_vm0, %v298_v9, -inf }
  0x9b   : > { %302 = vmax.xlane.f32.xlu0 %v301_v10 }
  0x9f   : > { %v296_v11 = vpop.f32.mrf.mxu0 }
  0xaf   : > { %366 = vrot.lane.b32.xlu0 %v365_v13, %s875_s23 }
 0x10e   : > { %v303_v17 = vpop.xlane.xlu0 %302 }
 0x10f   : > { %v304_v18 = vmax.f32 %v299_v16, %v303_v17 }
 0x111   : > { %310 = vperm.xlu1 %822, %v304_v18   ;;  %v305_v53 = vsub.f32 %v299_v16, %v304_v18 }
 0x113   : > { %v306_v54 = vmul.f32 1.442695, %v305_v53 }
 0x119   : > { %547 = vrot.lane.b32.xlu1 %v365_v13, %s879_s25 }
 0x121   : > { %v367_v19 = vpop.permute.xlu0 %366 }
 0x122   : > { %v372_v20 = vsel %vm278_vm0, %v367_v19, 0 }
 0x123   : > { %381 = vmatpush.bf16.xpose.msra.mxu2 %v372_v20 }
 0x12a   : > { %778 = vmatmul.msk.bf16.vlgmr.msra.gmra.mxu2 %vm278_vm0, %v362_v21 }
 0x183   : > { %v311_v27 = vpop.permute.xlu1 %310 }
 0x184   : > { %v313_v28 = vsub.f32 %v298_v9, %v311_v27  ;;  %351 = vst.msk [vmem:[#allocation2] sm:$0xff] %vm278_vm0, %v311_v27 }
 0x186   : > { %v314_v29 = vmul.f32 1.442695, %v313_v28 }
 0x188   : > { %832 = vpow2.f32 %v314_v29 }
 0x189   : > { %834 = vpow2.f32 %v306_v54 }
 0x18b   : > { %v548_v32 = vpop.permute.xlu1 %547  ;;  %v966_v49 = vld [vmem:[#allocation2] sm:$0xff] }
 0x18c   : > { %v553_v33 = vsel %vm278_vm0, %v548_v32, 0 }
 0x18d   : > { %562 = vmatpush.bf16.xpose.msrb.mxu0 %v553_v33 }
 0x18e   : > { %v833_v30 = vpop.eup %832 }
 0x18f   : > { %v321_v31 = vpack.c.bf16 %v833_v30, %v833_v30  ;;  %v317_v39 = vsel %vm278_vm0, %v833_v30, 0.0  ;;  %v835_v55 = vpop.eup %834 }
 0x190   : > { %v316_v58 = vmul.f32 %v835_v55, %v300_v56 }
 0x191   : > { %777 = vmatmul.msk.bf16.vlgmr.msra.gmra.mxu1 %vm278_vm0, %v321_v31 }
 0x194   : > { %782 = vmatmul.msk.bf16.vlgmr.msrb.gmra.mxu0 %vm278_vm0, %v546_v45 }
 0x1a1   : > { %780 = vmatmul.msk.bf16.vlgmr.msrb.gmra.mxu1 %vm278_vm0, %v457_v34 }
 0x1ad   : > { %v383_v35 = vpop.f32.mrf.mxu2 }
 0x1ae   : > { %v387_v36 = vmul.f32 0.35355338, %v383_v35 }
 0x1b0   : > { %v390_v37 = vsel %vm278_vm0, %v387_v36, -inf }
 0x1b1   : > { %391 = vmax.xlane.f32.xlu1 %v390_v37 }
 0x1b5   : > { %v385_v38 = vpop.f32.mrf.mxu2 }
 0x1b9   : > { %318 = vadd.xlane.f32.xlu1 %v317_v39 }
 0x1d2   : > { %503 = vrot.lane.b32.xlu1 %v413_v42, %s876_s24 }
 0x20e   : > { %v961_v43 = vpop.f32.mrf.mxu1 }
 0x211   : > { %v564_v2 = vpop.f32.mrf.mxu0 }
 0x212   : > { %v979_v12 = vmul.f32 0.35355338, %v564_v2 }
 0x214   : > { %v571_v13 = vsel %vm278_vm0, %v979_v12, -inf }
 0x216   : > { %v340_v44 = vpop.f32.mrf.mxu1 }
 0x219   : > { %v566_v6 = vpop.f32.mrf.mxu0 }
 0x21e   : > { %v475_v46 = vpop.f32.mrf.mxu1 }
 0x21f   : > { %v479_v47 = vmul.f32 0.35355338, %v475_v46 }
 0x221   : > { %v482_v48 = vsel %vm278_vm0, %v479_v47, -inf }
 0x222   : > { %483 = vmax.xlane.f32.xlu0 %v482_v48 }
 0x224   : > { %v392_v50 = vpop.xlane.xlu1 %391 }
 0x225   : > { %v969_v51 = vmax.f32 %v966_v49, %v392_v50 }
 0x226   : > { %v477_v52 = vpop.f32.mrf.mxu1 }
 0x227   : > { %399 = vperm.xlu2 %823, %v969_v51   ;;  %v394_v29 = vsub.f32 %v966_v49, %v969_v51 }
 0x229   : > { %v395_v32 = vmul.f32 1.442695, %v394_v29 }
 0x22c   : > { %v319_v57 = vpop.xlane.xlu1 %318 }
 0x22d   : > { %v320_v59 = vadd.f32 %v319_v57, %v316_v58 }
 0x22f   : > { %824 = vset.pattern.permute.xlu2 %v881_v60 }
 0x236   : > { %414 = vrot.lane.b32.xlu0 %v413_v42, %s875_s23 }
 0x23e   : > { %592 = vrot.lane.b32.xlu0 %v413_v42, %s879_s25 }
 0x244   : > { %v504_v14 = vpop.permute.xlu1 %503 }
 0x245   : > { %v509_v15 = vsel %vm325_vm2, %v504_v14, 0 }
 0x246   : > { %354 = vperm.xlu0 %826, %v320_v59  }
 0x24e   : > { %828 = vset.pattern.permute.xlu0 %v881_v60 }
 0x281   : > { %v400_v61 = vpop.permute.xlu2 %399 }
 0x282   : > { %v402_v62 = vsub.f32 %v387_v36, %v400_v61  ;;  %449 = vst.msk [vmem:[#allocation2] sm:$0xff] %vm447_vm3, %v400_v61 }
 0x284   : > { %v403_v63 = vmul.f32 1.442695, %v402_v62 }
 0x286   : > { %836 = vpow2.f32 %v403_v63 }
 0x289   : > { %v480_v3 = vld [vmem:[#allocation2] sm:$0xff] }
 0x28c   : > { %v837_v0 = vpop.eup %836 }
 0x28d   : > { %v406_v1 = vsel %vm278_vm0, %v837_v0, 0.0  ;;  %v410_v9 = vpack.c.bf16 %v837_v0, %v837_v0 }
 0x28e   : > { %407 = vadd.xlane.f32.xlu1 %v406_v1 }
 0x295   : > { %v484_v4 = vpop.xlane.xlu0 %483 }
 0x296   : > { %v485_v5 = vmax.f32 %v480_v3, %v484_v4 }
 0x298   : > { %491 = vperm.xlu2 %824, %v485_v5   ;;  %v486_v28 = vsub.f32 %v480_v3, %v485_v5 }
 0x29a   : > { %v487_v30 = vmul.f32 1.442695, %v486_v28 }
 0x2a0   : > { %825 = vset.pattern.permute.xlu2 %v882_v23 }
 0x2a7   : > { %345 = vperm.xlu1 %822, %v835_v55  }
 0x2a8   : > { %v415_v7 = vpop.permute.xlu0 %414 }
 0x2a9   : > { %v420_v8 = vsel %vm325_vm2, %v415_v7, 0 }
 0x2aa   : > { %429 = vmatpush.bf16.msra.mxu3 %v420_v8 }
 0x2ad   : > { %779 = vmatmul.msk.bf16.vlgmr.msra.gmra.mxu3 %vm278_vm0, %v410_v9 }
 0x2ae   : > { %518 = vmatpush.bf16.msrb.mxu3 %v509_v15 }
 0x2af   : > { %830 = vset.pattern.permute.xlu1 %v881_v60 }
 0x2b0   : > { %v593_v10 = vpop.permute.xlu0 %592 }
 0x2b1   : > { %v598_v21 = vsel %vm325_vm2, %v593_v10, 0 }
 0x2b2   : > { %607 = vmatpush.bf16.msrb.mxu2 %v598_v21 }
 0x2b8   : > { %v355_v11 = vpop.permute.xlu0 %354 }
 0x2b9   : > { %357 = vst.msk [vmem:[#allocation3] sm:$0xff] %vm278_vm0, %v355_v11 }
 0x2c0   : > { %v389_v39 = vld [vmem:[#allocation3] sm:$0xff] }
 0x2c1   : > { %572 = vmax.xlane.f32.xlu2 %v571_v13 }
 0x2f2   : > { %v492_v16 = vpop.permute.xlu2 %491 }
 0x2f3   : > { %v494_v17 = vsub.f32 %v479_v47, %v492_v16  ;;  %538 = vst.msk [vmem:[#allocation2] sm:$0xff] %vm536_vm4, %v492_v16 }
 0x2f5   : > { %v495_v18 = vmul.f32 1.442695, %v494_v17 }
 0x2f7   : > { %838 = vpow2.f32 %v495_v18 }
 0x2f8   : > { %840 = vpow2.f32 %v487_v30 }
 0x2f9   : > { %842 = vpow2.f32 %v395_v32 }
 0x2fa   : > { %v569_v33 = vld [vmem:[#allocation2] sm:$0xff] }
 0x2fd   : > { %v839_v19 = vpop.eup %838 }
 0x2fe   : > { %v502_v20 = vpack.c.bf16 %v839_v19, %v839_v19  ;;  %v841_v37 = vpop.eup %840  ;;  %v498_v46 = vsel %vm278_vm0, %v839_v19, 0.0 }
 0x2ff   : > { %v843_v42 = vpop.eup %842 }
 0x300   : > { %781 = vmatmul.msk.bf16.vlgmr.msrb.gmra.mxu3 %vm278_vm0, %v502_v20 }
 0x301   : > { %v408_v22 = vpop.xlane.xlu1 %407 }
 0x319   : > { %v346_v25 = vpop.permute.xlu1 %345 }
 0x31a   : > { %v348_v26 = vmul.f32 %v346_v25, %v342_v24 }
 0x31c   : > { %v349_v27 = vadd.f32 %v348_v26, %v961_v43  ;;  %v405_v43 = vmul.f32 %v843_v42, %v389_v39 }
 0x31e   : > { %350 = vst.msk [vmem:[#allocation4] sm:$0xff] %vm278_vm0, %v349_v27  ;;  %v409_v44 = vadd.f32 %v408_v22, %v405_v43 }
 0x325   : > { %v435_v58 = vld [vmem:[#allocation4] sm:$0xff] }
 0x330   : > { %v431_v31 = vpop.f32.mrf.mxu3 }
 0x331   : > { %443 = vrot.lane.b32.xlu1 %v431_v31, %s883_s29 }
 0x334   : > { %v573_v34 = vpop.xlane.xlu2 %572 }
 0x335   : > { %v574_v35 = vmax.f32 %v569_v33, %v573_v34 }
 0x337   : > { %v575_v36 = vsub.f32 %v569_v33, %v574_v35  ;;  %580 = vperm.xlu2 %825, %v574_v35  }
 0x338   : > { %v433_v38 = vpop.f32.mrf.mxu3 }
 0x339   : > { %v576_v41 = vmul.f32 1.442695, %v575_v36  ;;  %527 = vperm.xlu1 %830, %v841_v37  }
 0x33b   : > { %844 = vpow2.f32 %v576_v41 }
 0x33f   : > { %827 = vset.pattern.permute.xlu2 %v880_v40 }
 0x340   : > { %452 = vperm.xlu2 %827, %v409_v44  }
 0x341   : > { %v845_v45 = vpop.eup %844  ;;  %831 = vset.pattern.permute.xlu1 %v882_v23 }
 0x342   : > { %616 = vperm.xlu1 %831, %v845_v45  }
 0x369   : > { %499 = vadd.xlane.f32.xlu2 %v498_v46 }
 0x381   : > { %438 = vperm.xlu2 %827, %v843_v42  }
 0x383   : > { %v520_v47 = vpop.f32.mrf.mxu3 }
 0x389   : > { %532 = vrot.lane.b32.xlu2 %v520_v47, %s884_s30 }
 0x38b   : > { %v522_v48 = vpop.f32.mrf.mxu3 }
 0x391   : > { %v581_v49 = vpop.permute.xlu2 %580 }
 0x392   : > { %v583_v50 = vsub.f32 %v979_v12, %v581_v49  ;;  %627 = vst.msk [vmem:[#allocation2] sm:$0xff] %vm625_vm5, %v581_v49 }
 0x394   : > { %v584_v40 = vmul.f32 1.442695, %v583_v50 }
 0x396   : > { %846 = vpow2.f32 %v584_v40 }
 0x39a   : > { %v453_v51 = vpop.permute.xlu2 %452 }
 0x39b   : > { %455 = vst.msk [vmem:[#allocation3] sm:$0xff] %vm447_vm3, %v453_v51 }
 0x39c   : > { %v847_v52 = vpop.eup %846 }
 0x39d   : > { %v591_v53 = vpack.c.bf16 %v847_v52, %v847_v52  ;;  %v587_v4 = vsel %vm278_vm0, %v847_v52, 0.0 }
 0x39f   : > { %783 = vmatmul.msk.bf16.vlgmr.msrb.gmra.mxu2 %vm278_vm0, %v591_v53 }
 0x3a2   : > { %v481_v54 = vld [vmem:[#allocation3] sm:$0xff] }
 0x3a3   : > { %v497_v55 = vmul.f32 %v841_v37, %v481_v54  ;;  %v444_v61 = vpop.permute.xlu1 %443 }
 0x3ab   : > { %v528_v63 = vpop.permute.xlu1 %527 }
 0x3b4   : > { %v617_v10 = vpop.permute.xlu1 %616 }
 0x3dc   : > { %v500_v56 = vpop.xlane.xlu2 %499 }
 0x3dd   : > { %v501_v57 = vadd.f32 %v500_v56, %v497_v55 }
 0x3df   : > { %541 = vperm.xlu0 %828, %v501_v57  }
 0x3e4   : > { %v439_v59 = vpop.permute.xlu2 %438 }
 0x3e5   : > { %v441_v60 = vmul.f32 %v439_v59, %v435_v58 }
 0x3e7   : > { %v446_v62 = vadd.f32 %v444_v61, %v441_v60  ;;  %829 = vset.pattern.permute.xlu0 %v882_v23 }
 0x3e9   : > { %448 = vst.msk [vmem:[#allocation4] sm:$0xff] %vm447_vm3, %v446_v62 }
 0x3ec   : > { %v533_v2 = vpop.permute.xlu2 %532 }
 0x3f0   : > { %v524_v0 = vld [vmem:[#allocation4] sm:$0xff] }
 0x3f1   : > { %v530_v1 = vmul.f32 %v528_v63, %v524_v0 }
 0x3f3   : > { %v535_v3 = vadd.f32 %v533_v2, %v530_v1 }
 0x3f5   : > { %537 = vst.msk [vmem:[#allocation4] sm:$0xff] %vm536_vm4, %v535_v3 }
 0x3fc   : > { %v613_v9 = vld [vmem:[#allocation4] sm:$0xff] }
 0x3fd   : > { %v619_v13 = vmul.f32 %v617_v10, %v613_v9 }
 0x409   : > { %588 = vadd.xlane.f32.xlu0 %v587_v4 }
 0x422   : > { %v609_v5 = vpop.f32.mrf.mxu2 }
 0x423   : > { %621 = vrot.lane.b32.xlu2 %v609_v5, %s885_s4 }
 0x42a   : > { %v611_v6 = vpop.f32.mrf.mxu2 }
 0x451   : > { %v542_v7 = vpop.permute.xlu0 %541 }
 0x452   : > { %544 = vst.msk [vmem:[#allocation3] sm:$0xff] %vm536_vm4, %v542_v7 }
 0x459   : > { %v570_v8 = vld [vmem:[#allocation3] sm:$0xff] }
 0x45a   : > { %v586_v11 = vmul.f32 %v845_v45, %v570_v8 }
 0x47c   : > { %v589_v12 = vpop.xlane.xlu0 %588 }
 0x47d   : > { %v590_v14 = vadd.f32 %v589_v12, %v586_v11  ;;  %v622_v15 = vpop.permute.xlu2 %621 }
 0x47e   : > { %v624_v16 = vadd.f32 %v622_v15, %v619_v13 }
 0x47f   : > { %630 = vperm.xlu0 %829, %v590_v14  }
 0x480   : > { %626 = vst.msk [vmem:[#allocation4] sm:$0xff] %vm625_vm5, %v624_v16 }
 0x487   : > { %v637_v28 = vld [vmem:[#allocation4] sm:$0xff] }
 0x4f1   : > { %v631_v17 = vpop.permute.xlu0 %630 }
 0x4f2   : > { %633 = vst.msk [vmem:[#allocation3] sm:$0xff] %vm625_vm5, %v631_v17 }
 0x4f9   : > { %v638_v18 = vld [vmem:[#allocation3] sm:$0xff] }
 0x4fa   : > { %848 = vrcp.f32 %v638_v18  ;;  %v650_v22 = vand.u32 2147483648, %v638_v18  ;;  %v648_v24 = vand.u32 2147483647, %v638_v18  ;;  %vm644_vm7 = vweird.f32 %v638_v18 }
 0x4fc   : > { %v651_v26 = vor.u32 1.1754944e-38, %v650_v22  ;;  %vm649_vm9 = vcmp.eq.f32.partialorder %v648_v24, 8.507059e+37 }
 0x500   : > { %v849_v19 = vpop.eup %848 }
 0x501   : > { %v640_v20 = vmul.f32 %v849_v19, %v638_v18  ;;  %vm645_vm6 = vweird.f32 %v849_v19 }
 0x502   : > { %vm646_vm8 = vmor %vm644_vm7, %vm645_vm6 }
 0x503   : > { %v641_v21 = vsub.f32 1.0, %v640_v20 }
 0x505   : > { %v642_v23 = vmul.f32 %v849_v19, %v641_v21 }
 0x507   : > { %v643_v25 = vadd.f32 %v849_v19, %v642_v23 }
 0x509   : > { %v647_v27 = vsel %vm646_vm8, %v849_v19, %v643_v25 }
 0x50a   : > { %v652_v29 = vsel %vm649_vm9, %v651_v26, %v647_v27 }
 0x50b   : > { %v653_v30 = vmul.f32 %v652_v29, %v637_v28 }
 0x50d   : > { %655 = vst.msk [vmem:[%s262_s7] sm:$0xff] %vm268_vm1, %v653_v30 }
 0x50e PF: > { %s13_s14 = sadd.s32 1, %s872_s14   ;;  %s1024_s12 = smov %s868_s13 }
 0x50f   : > { %p10_p5 = scmp.ge.s32.totalorder %s13_s14, 4   ;;  %s1025_s13 = smov %s1027_s15 }
 0x511   :  { %12 = sbr.rel (!%p10_p5) target bundleno = 2 (0x2), region = 76 }

// kernel: transformer_forward.51
= control target key start
LH: loop header
LB: loop body
LE: loop exit
PB: predicated region body
PF: predicated region fallthrough
CT: control target
= control target key end

     0   :  { %8 = vsyncpa [#allocation4], 0  ;;  %s213_s0 = inlined_call_operand.vmem [shape: f32[16,32], index: 0, kind: input, shape index: {}]   ;;  %s214_s1 = inlined_call_operand.hbm [shape: f32[32,32], index: 1, kind: input, shape index: {}]   ;;  %s215_s2 = inlined_call_operand.hbm [shape: f32[1,32], index: 2, kind: input, shape index: {}]   ;;  %s216_s3 = inlined_call_operand.vmem [shape: f32[16,32], index: 3, kind: output, shape index: {}]  }
   0x1   :  { %s16_s14 = sshll.u32 %s214_s1, 4  ;;  %s17_s14 = int_to_ptr.hbm [resolvable:$true] %s16_s14 }
   0x2   :  { %9 = vsyncpa [#allocation6], 0  ;;  %s163_s15 = smov [#allocation3]   ;;  %s30_s19 = sshll.u32 %s215_s2, 4  ;;  %s31_s19 = int_to_ptr.hbm [resolvable:$true] %s30_s19 }
   0x3   :  { %s18_s16 = sshll.u32 %s163_s15, 4  ;;  %s164_s20 = smov 128   ;;  %s19_s16 = int_to_ptr.vmem [resolvable:$true] %s18_s16 }
   0x4   :  { %s165_s21 = smov 8   ;;  %s166_s22 = smov [#allocation5]  }
   0x5   :  { %24 = dma.hbm_to_vmem [thread:$0]  %s17_s14, 512, %s19_s16, [#allocation4], %s164_s20, %s164_s20, %s165_s21  }
   0x6   :  { %s32_s23 = sshll.u32 %s166_s22, 4  ;;  %s33_s23 = int_to_ptr.vmem [resolvable:$true] %s32_s23 }
   0x7   :  { %35 = dma.hbm_to_vmem [thread:$0]  %s31_s19, 16, %s33_s23, [#allocation6]  }
   0x8   :  { %159 = dma.done.wait [#allocation4], 512  }
   0x9   :  { %160 = vsyncadd [#allocation4], 4294966784 }
   0xa   :  { %161 = dma.done.wait [#allocation6], 16  }
   0xb   :  { %162 = vsyncadd [#allocation6], 4294967280  ;;  %vm49_vm0 = vcmask 261120   ;;  %v167_v0 = vmov 0.0   ;;  %v59_v1 = vld [vmem:[#allocation3 + $0x10] sm:$0xff]  ;;  %v60_v2 = vld [vmem:[#allocation3 + $0x18] sm:$0xff] }
   0xc   :  { %50 = vst.msk [vmem:[#allocation2] sm:$0xff] %vm49_vm0, %v167_v0  ;;  %v57_v3 = vld [vmem:[#allocation3] sm:$0xff]  ;;  %v62_v4 = vpack.c.bf16 %v60_v2, %v59_v1  ;;  %v58_v5 = vld [vmem:[#allocation3 + $0x8] sm:$0xff]  ;;  %v54_v7 = vld [vmem:[%s213_s0] sm:$0xff] }
   0xd   :  { %51 = vst.msk [vmem:[#allocation2 + $0x8] sm:$0xff] %vm49_vm0, %v167_v0  ;;  %v61_v6 = vpack.c.bf16 %v58_v5, %v57_v3  ;;  %v55_v8 = vld [vmem:[%s213_s0 + $0x8] sm:$0xff]  ;;  %v110_v14 = vld [vmem:[#allocation5] ss:$0 sm:$0xff] }
   0xe   :  { %73 = vmatpush.bf16.msra.mxu0 %v62_v4  ;;  %v56_v9 = vpack.c.bf16 %v55_v8, %v54_v7 }
  0x12   :  { %74 = vmatpush.bf16.msra.mxu0 %v61_v6 }
  0x13   :  { %v52_v10 = vld [vmem:[#allocation2] sm:$0xff] }
  0x14   :  { %v53_v13 = vld [vmem:[#allocation2 + $0x8] sm:$0xff] }
  0x15   :  { %104 = vmatmul.msk.bf16.vlgmr.msra.gmra.mxu0 %vm49_vm0, %v56_v9 }
  0x92   :  { %v76_v11 = vpop.f32.mrf.mxu0 }
  0x93   :  { %v81_v12 = vadd.f32 %v76_v11, %v52_v10 }
  0x95   :  { %83 = vst.msk [vmem:[#allocation2] sm:$0xff] %vm49_vm0, %v81_v12 }
  0x9a   :  { %v78_v15 = vpop.f32.mrf.mxu0 }
  0x9b   :  { %v82_v16 = vadd.f32 %v78_v15, %v53_v13 }
  0x9c   :  { %v88_v17 = vld [vmem:[#allocation2] sm:$0xff] }
  0x9d   :  { %v94_v18 = vadd.f32 %v110_v14, %v88_v17  ;;  %84 = vst.msk [vmem:[#allocation2 + $0x8] sm:$0xff] %vm49_vm0, %v82_v16 }
  0x9f   :  { %96 = vst.msk [vmem:[%s216_s3] sm:$0xff] %vm49_vm0, %v94_v18 }
  0xa4   :  { %v89_v19 = vld [vmem:[#allocation2 + $0x8] sm:$0xff] }
  0xa5   :  { %v95_v20 = vadd.f32 %v110_v14, %v89_v19 }
  0xa7   :  { %97 = vst.msk [vmem:[%s216_s3 + $0x8] sm:$0xff] %vm49_vm0, %v95_v20 }
  0xa8   :  { %102 = vsyncpa [#allocation4], 1 }
  0xa9   :  { %103 = vsyncpa [#allocation6], 1 }

// kernel: transformer_forward.50
= control target key start
LH: loop header
LB: loop body
LE: loop exit
PB: predicated region body
PF: predicated region fallthrough
CT: control target
= control target key end

     0   :  { %11 = vsyncpa [#allocation4], 0  ;;  %s412_s0 = inlined_call_operand.vmem [shape: f32[16,32], index: 0, kind: input, shape index: {}]   ;;  %s413_s1 = inlined_call_operand.hbm [shape: f32[32,32], index: 1, kind: input, shape index: {}]   ;;  %s414_s2 = inlined_call_operand.hbm [shape: f32[1,32], index: 2, kind: input, shape index: {}]   ;;  %s415_s3 = inlined_call_operand.vmem [shape: f32[16,32], index: 3, kind: input, shape index: {}]   ;;  %s416_s4 = inlined_call_operand.hbm [shape: f32[1,32], index: 4, kind: input, shape index: {}]   ;;  %s417_s5 = inlined_call_operand.hbm [shape: f32[1,32], index: 5, kind: input, shape index: {}]   ;;  %s418_s6 = inlined_call_operand.vmem [shape: f32[16,32], index: 6, kind: output, shape index: {}]  }
   0x1   :  { %12 = vsyncpa [#allocation6], 0  ;;  %s34_s23 = sshll.u32 %s414_s2, 4  ;;  %s35_s23 = int_to_ptr.hbm [resolvable:$true] %s34_s23 }
   0x2   :  { %13 = vsyncpa [#allocation9], 0  ;;  %s328_s24 = smov [#allocation5]   ;;  %s20_s28 = sshll.u32 %s413_s1, 4  ;;  %s21_s28 = int_to_ptr.hbm [resolvable:$true] %s20_s28 }
   0x3   :  { %s36_s25 = sshll.u32 %s328_s24, 4  ;;  %s329_s29 = smov [#allocation3]   ;;  %s37_s25 = int_to_ptr.vmem [resolvable:$true] %s36_s25 }
   0x4   :  { %39 = dma.hbm_to_vmem [thread:$0]  %s35_s23, 16, %s37_s25, [#allocation6]  }
   0x5   :  { %s22_s30 = sshll.u32 %s329_s29, 4  ;;  %s330_s7 = smov 128   ;;  %s23_s30 = int_to_ptr.vmem [resolvable:$true] %s22_s30 }
   0x6   :  { %s331_s8 = smov 8   ;;  %s47_s2 = sshll.u32 %s416_s4, 4  ;;  %s48_s2 = int_to_ptr.hbm [resolvable:$true] %s47_s2 }
   0x7   :  { %28 = dma.hbm_to_vmem [thread:$0]  %s21_s28, 512, %s23_s30, [#allocation4], %s330_s7, %s330_s7, %s331_s8  }
   0x8   :  { %s332_s11 = smov [#allocation7]   ;;  %s58_s1 = sshll.u32 %s417_s5, 4  ;;  %s59_s1 = int_to_ptr.hbm [resolvable:$true] %s58_s1 }
   0x9   :  { %s49_s12 = sshll.u32 %s332_s11, 4  ;;  %s333_s15 = smov [#allocation8]   ;;  %s50_s12 = int_to_ptr.vmem [resolvable:$true] %s49_s12 }
   0xa   :  { %52 = dma.hbm_to_vmem [thread:$0]  %s48_s2, 16, %s50_s12, [#allocation6]  }
   0xb   :  { %s60_s16 = sshll.u32 %s333_s15, 4  ;;  %s61_s16 = int_to_ptr.vmem [resolvable:$true] %s60_s16 }
   0xc   :  { %63 = dma.hbm_to_vmem [thread:$0]  %s59_s1, 16, %s61_s16, [#allocation9]  }
   0xd   :  { %322 = dma.done.wait [#allocation4], 512  }
   0xe   :  { %323 = vsyncadd [#allocation4], 4294966784 }
   0xf   :  { %324 = dma.done.wait [#allocation6], 32  }
  0x10   :  { %325 = vsyncadd [#allocation6], 4294967264 }
  0x11   :  { %326 = dma.done.wait [#allocation9], 16  }
  0x12   :  { %327 = vsyncadd [#allocation9], 4294967280  ;;  %vm85_vm0 = vcmask 261120   ;;  %v334_v0 = vmov 0.0   ;;  %v95_v1 = vld [vmem:[#allocation3 + $0x10] sm:$0xff]  ;;  %v96_v2 = vld [vmem:[#allocation3 + $0x18] sm:$0xff] }
  0x13   :  { %86 = vst.msk [vmem:[#allocation2] sm:$0xff] %vm85_vm0, %v334_v0  ;;  %v93_v3 = vld [vmem:[#allocation3] sm:$0xff]  ;;  %v98_v4 = vpack.c.bf16 %v96_v2, %v95_v1  ;;  %v94_v5 = vld [vmem:[#allocation3 + $0x8] sm:$0xff]  ;;  %v90_v7 = vld [vmem:[%s412_s0] sm:$0xff]  ;;  %v335_v27 = vmov 32.0  }
  0x14   :  { %87 = vst.msk [vmem:[#allocation2 + $0x8] sm:$0xff] %vm85_vm0, %v334_v0  ;;  %v97_v6 = vpack.c.bf16 %v94_v5, %v93_v3  ;;  %v91_v8 = vld [vmem:[%s412_s0 + $0x8] sm:$0xff]  ;;  %v217_v14 = vld [vmem:[#allocation5] ss:$0 sm:$0xff]  ;;  %v132_v18 = vld [vmem:[%s415_s3] sm:$0xff]  ;;  %220 = vrcp.f32 %v335_v27 }
  0x15   :  { %109 = vmatpush.bf16.msra.mxu0 %v98_v4  ;;  %v92_v9 = vpack.c.bf16 %v91_v8, %v90_v7  ;;  %v133_v23 = vld [vmem:[%s415_s3 + $0x8] sm:$0xff]  ;;  %v218_v58 = vld [vmem:[#allocation7] ss:$0 sm:$0xff]  ;;  %v219_v61 = vld [vmem:[#allocation8] ss:$0 sm:$0xff] }
  0x19   :  { %110 = vmatpush.bf16.msra.mxu0 %v97_v6 }
  0x1a   :  { %v88_v10 = vld [vmem:[#allocation2] sm:$0xff]  ;;  %v221_v28 = vpop.eup %220 }
  0x1b   :  { %v89_v13 = vld [vmem:[#allocation2 + $0x8] sm:$0xff]  ;;  %v143_v29 = vmul.f32 32.0, %v221_v28  ;;  %vm147_vm1 = vweird.f32 %v221_v28 }
  0x1c   :  { %208 = vmatmul.msk.bf16.vlgmr.msra.gmra.mxu0 %vm85_vm0, %v92_v9 }
  0x1d   :  { %v144_v30 = vsub.f32 1.0, %v143_v29 }
  0x1f   :  { %v145_v31 = vmul.f32 %v221_v28, %v144_v30 }
  0x21   :  { %v146_v32 = vadd.f32 %v221_v28, %v145_v31 }
  0x23   :  { %v148_v33 = vsel %vm147_vm1, %v221_v28, %v146_v32 }
  0x99   :  { %v112_v11 = vpop.f32.mrf.mxu0 }
  0x9a   :  { %v117_v12 = vadd.f32 %v112_v11, %v88_v10 }
  0x9c   :  { %119 = vst.msk [vmem:[#allocation2] sm:$0xff] %vm85_vm0, %v117_v12 }
  0xa1   :  { %v114_v15 = vpop.f32.mrf.mxu0 }
  0xa2   :  { %v118_v16 = vadd.f32 %v114_v15, %v89_v13 }
  0xa3   :  { %v124_v17 = vld [vmem:[#allocation2] sm:$0xff] }
  0xa4   :  { %120 = vst.msk [vmem:[#allocation2 + $0x8] sm:$0xff] %vm85_vm0, %v118_v16  ;;  %v130_v19 = vadd.f32 %v217_v14, %v124_v17 }
  0xa6   :  { %v134_v20 = vadd.f32 %v132_v18, %v130_v19 }
  0xa8   :  { %v136_v21 = vsel %vm85_vm0, %v134_v20, 0.0 }
  0xa9   :  { %137 = vadd.xlane.f32.xlu0 %v136_v21 }
  0xab   :  { %v125_v22 = vld [vmem:[#allocation2 + $0x8] sm:$0xff] }
  0xac   :  { %v131_v24 = vadd.f32 %v217_v14, %v125_v22 }
  0xae   :  { %v135_v25 = vadd.f32 %v133_v23, %v131_v24 }
  0xb0   :  { %v139_v26 = vsel %vm85_vm0, %v135_v25, 0.0 }
  0xb1   :  { %140 = vadd.xlane.f32.xlu0 %v139_v26 }
 0x11c   :  { %v138_v34 = vpop.xlane.xlu0 %137 }
 0x11d   :  { %v149_v35 = vmul.f32 %v148_v33, %v138_v34 }
 0x11f   :  { %v151_v36 = vsub.f32 %v134_v20, %v149_v35 }
 0x121   :  { %v153_v37 = vmul.f32 %v151_v36, %v151_v36 }
 0x123   :  { %v155_v38 = vsel %vm85_vm0, %v153_v37, 0.0 }
 0x124   :  { %156 = vadd.xlane.f32.xlu1 %v155_v38  ;;  %v141_v39 = vpop.xlane.xlu0 %140 }
 0x125   :  { %v150_v40 = vmul.f32 %v148_v33, %v141_v39 }
 0x127   :  { %v152_v41 = vsub.f32 %v135_v25, %v150_v40 }
 0x129   :  { %v154_v42 = vmul.f32 %v152_v41, %v152_v41 }
 0x12b   :  { %v158_v43 = vsel %vm85_vm0, %v154_v42, 0.0 }
 0x12c   :  { %159 = vadd.xlane.f32.xlu1 %v158_v43 }
 0x197   :  { %v157_v44 = vpop.xlane.xlu1 %156 }
 0x198   :  { %v161_v45 = vmul.f32 %v157_v44, %v148_v33 }
 0x19a   :  { %v163_v46 = vadd.f32 1e-05, %v161_v45 }
 0x19c   :  { %222 = vrsqrt.f32 %v163_v46  ;;  %vm171_vm3 = vweird.f32 %v163_v46 }
 0x19f   :  { %v160_v47 = vpop.xlane.xlu1 %159 }
 0x1a0   :  { %v162_v48 = vmul.f32 %v160_v47, %v148_v33 }
 0x1a2   :  { %v223_v49 = vpop.eup %222  ;;  %v164_v50 = vadd.f32 1e-05, %v162_v48 }
 0x1a3   :  { %v166_v51 = vmul.f32 %v223_v49, %v163_v46  ;;  %vm172_vm2 = vweird.f32 %v223_v49 }
 0x1a4   :  { %224 = vrsqrt.f32 %v164_v50  ;;  %vm173_vm4 = vmor %vm171_vm3, %vm172_vm2  ;;  %vm181_vm6 = vweird.f32 %v164_v50 }
 0x1a5   :  { %v167_v52 = vmul.f32 %v223_v49, %v166_v51 }
 0x1a7   :  { %v168_v53 = vmul.f32 0.5, %v167_v52 }
 0x1a9   :  { %v169_v54 = vsub.f32 1.5, %v168_v53 }
 0x1aa   :  { %v225_v55 = vpop.eup %224 }
 0x1ab   :  { %v170_v56 = vmul.f32 %v223_v49, %v169_v54  ;;  %v176_v57 = vmul.f32 %v225_v55, %v164_v50  ;;  %vm182_vm5 = vweird.f32 %v225_v55 }
 0x1ac   :  { %vm183_vm7 = vmor %vm181_vm6, %vm182_vm5 }
 0x1ad   :  { %v174_v59 = vsel %vm173_vm4, %v223_v49, %v170_v56  ;;  %v177_v60 = vmul.f32 %v225_v55, %v176_v57 }
 0x1ae   :  { %v185_v62 = vmul.f32 %v174_v59, %v151_v36 }
 0x1af   :  { %v178_v63 = vmul.f32 0.5, %v177_v60 }
 0x1b0   :  { %v191_v0 = vmul.f32 %v218_v58, %v185_v62 }
 0x1b1   :  { %v179_v1 = vsub.f32 1.5, %v178_v63 }
 0x1b2   :  { %v197_v2 = vadd.f32 %v219_v61, %v191_v0 }
 0x1b3   :  { %v180_v3 = vmul.f32 %v225_v55, %v179_v1 }
 0x1b4   :  { %199 = vst.msk [vmem:[%s418_s6] sm:$0xff] %vm85_vm0, %v197_v2 }
 0x1b5   :  { %v184_v4 = vsel %vm183_vm7, %v225_v55, %v180_v3 }
 0x1b6   :  { %v186_v5 = vmul.f32 %v184_v4, %v152_v41 }
 0x1b8   :  { %v192_v6 = vmul.f32 %v218_v58, %v186_v5 }
 0x1ba   :  { %v198_v7 = vadd.f32 %v219_v61, %v192_v6 }
 0x1bc   :  { %200 = vst.msk [vmem:[%s418_s6 + $0x8] sm:$0xff] %vm85_vm0, %v198_v7 }
 0x1bd   :  { %205 = vsyncpa [#allocation4], 1 }
 0x1be   :  { %206 = vsyncpa [#allocation6], 1 }
 0x1bf   :  { %207 = vsyncpa [#allocation9], 1 }

// kernel: transformer_forward.57
= control target key start
LH: loop header
LB: loop body
LE: loop exit
PB: predicated region body
PF: predicated region fallthrough
CT: control target
= control target key end

     0   :  { %vm20_vm0 = vcmask 523264   ;;  %v120_v5 = vmov 0.0   ;;  %s174_s0 = inlined_call_operand.vmem [shape: f32[16,32], index: 0, kind: input, shape index: {}]   ;;  %s175_s1 = inlined_call_operand.vmem [shape: f32[32,64], index: 1, kind: input, shape index: {}]   ;;  %s176_s2 = inlined_call_operand.vmem [shape: f32[1,64], index: 2, kind: input, shape index: {}]   ;;  %s177_s3 = inlined_call_operand.hbm [shape: f32[16,64], index: 3, kind: output, shape index: {}]  }
   0x1   :  { %v30_v0 = vld [vmem:[%s175_s1 + $0x10] sm:$0xff]  ;;  %v31_v1 = vld [vmem:[%s175_s1 + $0x18] sm:$0xff]  ;;  %v28_v2 = vld [vmem:[%s175_s1] sm:$0xff]  ;;  %21 = vst.msk [vmem:[#allocation2] sm:$0xff] %vm20_vm0, %v120_v5 }
   0x2   :  { %v33_v3 = vpack.c.bf16 %v31_v1, %v30_v0  ;;  %v29_v4 = vld [vmem:[%s175_s1 + $0x8] sm:$0xff]  ;;  %22 = vst.msk [vmem:[#allocation2 + $0x8] sm:$0xff] %vm20_vm0, %v120_v5 }
   0x3   :  { %8 = vsyncpa [#allocation4], 0  ;;  %v32_v6 = vpack.c.bf16 %v29_v4, %v28_v2  ;;  %v25_v7 = vld [vmem:[%s174_s0] sm:$0xff]  ;;  %v26_v8 = vld [vmem:[%s174_s0 + $0x8] sm:$0xff]  ;;  %vm34_vm1 = vcmask 261120   ;;  %s121_s0 = smov [#allocation3]  }
   0x4   :  { %44 = vmatpush.bf16.msra.mxu0 %v33_v3  ;;  %v27_v9 = vpack.c.bf16 %v26_v8, %v25_v7  ;;  %v93_v14 = vld [vmem:[%s176_s2] ss:$0 sm:$0xff]  ;;  %s74_s25 = sshll.u32 %s121_s0, 4  ;;  %s76_s28 = sshll.u32 %s177_s3, 4  ;;  %s75_s25 = int_to_ptr.vmem [resolvable:$true] %s74_s25  ;;  %s77_s28 = int_to_ptr.hbm [resolvable:$true] %s76_s28 }
   0x5   :  { %s122_s2 = smov 128   ;;  %s123_s29 = smov 8  }
   0x8   :  { %45 = vmatpush.bf16.msra.mxu0 %v32_v6  ;;  %v23_v10 = vld [vmem:[#allocation2] sm:$0xff] }
   0x9   :  { %v24_v13 = vld [vmem:[#allocation2 + $0x8] sm:$0xff] }
   0xb   :  { %88 = vmatmul.msk.bf16.vlgmr.msra.gmra.mxu0 %vm34_vm1, %v27_v9 }
  0x88   :  { %v47_v11 = vpop.f32.mrf.mxu0 }
  0x89   :  { %v52_v12 = vadd.f32 %v47_v11, %v23_v10 }
  0x8b   :  { %55 = vst.msk [vmem:[#allocation2] sm:$0xff] %vm20_vm0, %v52_v12 }
  0x90   :  { %v49_v15 = vpop.f32.mrf.mxu0 }
  0x91   :  { %v53_v16 = vadd.f32 %v49_v15, %v24_v13 }
  0x92   :  { %v60_v17 = vld [vmem:[#allocation2] sm:$0xff] }
  0x93   :  { %56 = vst.msk [vmem:[#allocation2 + $0x8] sm:$0xff] %vm20_vm0, %v53_v16  ;;  %v66_v18 = vadd.f32 %v93_v14, %v60_v17 }
  0x95   :  { %68 = vst.msk [vmem:[#allocation3] sm:$0xff] %vm20_vm0, %v66_v18 }
  0x9a   :  { %v61_v19 = vld [vmem:[#allocation2 + $0x8] sm:$0xff] }
  0x9b   :  { %v67_v20 = vadd.f32 %v93_v14, %v61_v19 }
  0x9d   :  { %69 = vst.msk [vmem:[#allocation3 + $0x8] sm:$0xff] %vm20_vm0, %v67_v20 }
  0x9e   :  { %82 = dma.vmem_to_hbm [thread:$0]  %s75_s25, 256, %s77_s28, [#allocation4], %s122_s2, %s122_s2, %s123_s29  }
  0x9f   :  { %118 = dma.done.wait [#allocation4], 256  }
  0xa0   :  { %119 = vsyncadd [#allocation4], 4294967040 }
  0xa1   :  { %87 = vsyncpa [#allocation4], 1 }

</bundles_post_ra>
